<compile_context>
chip_gen: v7x
topology: tpu7x:2x2x1
jax: 0.10.0
libtpu: 0.0.40
codegen_flags: <defaults>
</compile_context>

<pallas_src>
import math

import jax
import jax.numpy as jnp
from jax.experimental import pallas as pl
from jax.experimental.pallas import tpu as pltpu  # noqa: F401  (imported per convention)

# ---- small, forward-consistent sizes -------------------------------------
B = 2            # batch
M = 8            # num_query
C = 32           # trans_dim (decoder embed_dim)
STEP = 4         # factor = num_points // num_query  (decoder_type == 'fc')
NUM_POINTS = M * STEP
BM = B * M
HID_INC = 1024   # hard-coded hidden width of increase_dim in the module
HID_FC = 512     # SimpleRebuildFCLayer hidden_dim default
N_PTS_IN = 64    # size of the partial input cloud
IMG_H = IMG_W = 16


def _erf(x):
    # Abramowitz & Stegun 7.1.26 rational approximation (|err| ~ 1.5e-7).
    # The divide is routed to the EUP via pl.reciprocal(approx=True).
    a1, a2, a3, a4, a5 = 0.254829592, -0.284496736, 1.421413741, -1.453152027, 1.061405429
    p = 0.3275911
    ax = jnp.abs(x)
    t = pl.reciprocal(1.0 + p * ax, approx=True)
    y = 1.0 - (((((a5 * t + a4) * t) + a3) * t + a2) * t + a1) * t * jnp.exp(-ax * ax)
    return jnp.where(x >= 0.0, y, -y)


def _gelu_exact(x):
    # matches PyTorch nn.GELU() (erf-exact) up to the approximation above
    return 0.5 * x * (1.0 + _erf(x * (1.0 / math.sqrt(2.0))))


def head_kernel(q_ref, coarse_ref,
                w1_ref, w2_ref, wr_ref, wf1_ref, wf2_ref, bias_ref,
                out_ref):
    f32 = jnp.float32
    bf = jnp.bfloat16

    q = q_ref[...]            # (BM, C)  f32
    coarse = coarse_ref[...]  # (BM, 3)  f32

    # packed biases (all f32): row 0 = b1 (BN folded), 1 = b2, 2 = br, 3 = bf1, 4 = bf2
    b1 = bias_ref[0:1, :]                      # (1, 1024)
    b2 = bias_ref[1:2, :]                      # (1, 1024)
    br = bias_ref[2:3, 0:C]                    # (1, C)
    bf1 = bias_ref[3:4, 0:HID_FC]              # (1, 512)
    bf2 = bias_ref[4:5, 0:STEP * 3]            # (1, 12)

    # increase_dim: Conv1d(C,1024,1) [+ folded BatchNorm1d] -> LeakyReLU(0.2)
    #               -> Conv1d(1024,1024,1)
    h = jnp.dot(q.astype(bf), w1_ref[...], preferred_element_type=f32) + b1
    h = jnp.where(h > 0.0, h, 0.2 * h)                                     # f32 VPU
    h = jnp.dot(h.astype(bf), w2_ref[...], preferred_element_type=f32) + b2  # (BM, 1024)

    # global_feature = per-batch max over the M tokens, broadcast back to tokens
    g_parts = []
    for b in range(B):
        gb = jnp.max(h[b * M:(b + 1) * M, :], axis=0, keepdims=True)       # (1, 1024)
        g_parts.append(jnp.broadcast_to(gb, (M, HID_INC)))
    g_exp = jnp.concatenate(g_parts, axis=0)                               # (BM, 1024)

    # reduce_map: Linear(1024 + C + 3 -> C) on concat([global, q, coarse]),
    # expressed as split matmuls against the packed weight (identical math).
    rf = (jnp.dot(g_exp.astype(bf), wr_ref[0:HID_INC, :], preferred_element_type=f32)
          + jnp.dot(q.astype(bf), wr_ref[HID_INC:HID_INC + C, :], preferred_element_type=f32)
          + jnp.dot(coarse.astype(bf), wr_ref[HID_INC + C:, :], preferred_element_type=f32)
          + br)                                                            # (BM, C)

    # SimpleRebuildFCLayer: concat([maxpool(rf), rf]) -> Mlp(2C, 512, STEP*3)
    g2_parts = []
    for b in range(B):
        g2b = jnp.max(rf[b * M:(b + 1) * M, :], axis=0, keepdims=True)     # (1, C)
        g2_parts.append(jnp.broadcast_to(g2b, (M, C)))
    g2_exp = jnp.concatenate(g2_parts, axis=0)                             # (BM, C)

    f = (jnp.dot(g2_exp.astype(bf), wf1_ref[0:C, :], preferred_element_type=f32)
         + jnp.dot(rf.astype(bf), wf1_ref[C:, :], preferred_element_type=f32)
         + bf1)                                                            # (BM, 512)
    f = _gelu_exact(f)
    rel = jnp.dot(f.astype(bf), wf2_ref[...], preferred_element_type=f32) + bf2  # (BM, 12)

    out_ref[...] = rel


def init_params(key):
    ks = jax.random.split(key, 16)

    def w(k, shape, fan_in):
        return jax.random.normal(k, shape, jnp.float32) / jnp.sqrt(jnp.float32(fan_in))

    p = {}
    # base-model stub params
    p["wq_xyz"] = w(ks[0], (3, C), 3)
    p["wq_img"] = w(ks[1], (3, C), 3)
    # increase_dim
    p["w1"] = w(ks[2], (C, HID_INC), C)
    p["b1"] = jnp.zeros((1, HID_INC), jnp.float32)
    gamma = 1.0 + 0.1 * jax.random.normal(ks[3], (HID_INC,), jnp.float32)
    beta = 0.1 * jax.random.normal(ks[4], (HID_INC,), jnp.float32)
    rmean = 0.1 * jax.random.normal(ks[5], (HID_INC,), jnp.float32)
    rvar = 1.0 + 0.1 * jnp.abs(jax.random.normal(ks[6], (HID_INC,), jnp.float32))
    eps = 1e-5
    scale = gamma / jnp.sqrt(rvar + eps)
    p["bn_scale"] = scale.reshape(1, HID_INC)
    p["bn_shift"] = (beta - rmean * scale).reshape(1, HID_INC)
    p["w2"] = w(ks[7], (HID_INC, HID_INC), HID_INC)
    p["b2"] = 0.01 * jax.random.normal(ks[8], (1, HID_INC), jnp.float32)
    # reduce_map Linear(1024 + C + 3, C), split by concat blocks
    fan = HID_INC + C + 3
    p["wr_g"] = w(ks[9], (HID_INC, C), fan)
    p["wr_q"] = w(ks[10], (C, C), fan)
    p["wr_c"] = w(ks[11], (3, C), fan)
    p["br"] = jnp.zeros((1, C), jnp.float32)
    # SimpleRebuildFCLayer: Mlp(2C, 512, STEP*3), fc1 split by concat blocks
    p["wf1_g"] = w(ks[12], (C, HID_FC), 2 * C)
    p["wf1_t"] = w(ks[13], (C, HID_FC), 2 * C)
    p["bf1"] = jnp.zeros((1, HID_FC), jnp.float32)
    p["wf2"] = w(ks[14], (HID_FC, STEP * 3), HID_FC)
    p["bf2"] = jnp.zeros((1, STEP * 3), jnp.float32)
    return p


def pack_params(p):
    """Fold BatchNorm (eval) into conv1, cast matmul weights to bf16, pack biases."""
    bf = jnp.bfloat16
    scale = p["bn_scale"]                     # (1, 1024)
    shift = p["bn_shift"]
    w1f = (p["w1"] * scale).astype(bf)        # (C, 1024)  BN folded into conv1 weight
    b1f = p["b1"] * scale + shift             # (1, 1024)  BN folded into conv1 bias

    wr = jnp.concatenate([p["wr_g"], p["wr_q"], p["wr_c"]], axis=0).astype(bf)   # (1059, C)
    wf1 = jnp.concatenate([p["wf1_g"], p["wf1_t"]], axis=0).astype(bf)           # (2C, 512)

    def pad_row(v):
        v = v.reshape(1, -1)
        return jnp.pad(v, ((0, 0), (0, HID_INC - v.shape[1])))

    biases = jnp.concatenate(
        [pad_row(b1f), pad_row(p["b2"]), pad_row(p["br"]),
         pad_row(p["bf1"]), pad_row(p["bf2"])], axis=0).astype(jnp.float32)      # (5, 1024)

    return {"w1": w1f, "w2": p["w2"].astype(bf), "wr": wr,
            "wf1": wf1, "wf2": p["wf2"].astype(bf), "biases": biases}


def base_model_stub(xyz, img, params):
    # TODO(synk): stand-in for PCTransformerImgOnly (full definition not provided).
    coarse = xyz[:, :M, :]                              # (B, M, 3) proxy coarse queries
    img_feat = jnp.mean(img, axis=(2, 3))               # (B, 3)   NCHW global pool
    q = coarse @ params["wq_xyz"] + (img_feat @ params["wq_img"])[:, None, :]  # (B, M, C)
    return q, coarse, 0                                 # denoise_length = 0 (eval)


def forward(xyz, img, params, packed):
    q, coarse, denoise_length = base_model_stub(xyz, img, params)
    assert denoise_length == 0  # eval branch of the module

    q2 = q.reshape(BM, C)
    coarse2 = coarse.reshape(BM, 3)

    rel = pl.pallas_call(
        head_kernel,
        out_shape=jax.ShapeDtypeStruct((BM, STEP * 3), jnp.float32),
    )(q2, coarse2,
      packed["w1"], packed["w2"], packed["wr"], packed["wf1"], packed["wf2"],
      packed["biases"])

    # relative_xyz + coarse_point_cloud.unsqueeze(-2), then (B, M*STEP, 3)
    rebuild = rel.reshape(B, M, STEP, 3) + coarse[:, :, None, :]
    rebuild_points = rebuild.reshape(B, NUM_POINTS, 3)
    return coarse, rebuild_points


if __name__ == "__main__":
    key = jax.random.PRNGKey(0)
    k_xyz, k_img, k_par = jax.random.split(key, 3)
    xyz = jax.random.normal(k_xyz, (B, N_PTS_IN, 3), jnp.float32)
    img = jax.random.normal(k_img, (B, 3, IMG_H, IMG_W), jnp.float32)   # NCHW like PyTorch
    params = init_params(k_par)
    packed = pack_params(params)

    fwd = jax.jit(forward)
    coarse_pc, rebuild_points = fwd(xyz, img, params, packed)
    jax.block_until_ready((coarse_pc, rebuild_points))

    assert coarse_pc.shape == (B, M, 3)
    assert rebuild_points.shape == (B, NUM_POINTS, 3)   # num_query * factor
    print("KERNEL_OK")
</pallas_src>

<mosaic_0001>
module attributes {stable_mosaic.version = 11 : i64} {
  func.func @head_kernel(%arg0: memref<16x32xf32, #tpu.memory_space<vmem>>, %arg1: memref<16x3xf32, #tpu.memory_space<vmem>>, %arg2: memref<32x1024xbf16, #tpu.memory_space<vmem>>, %arg3: memref<1024x1024xbf16, #tpu.memory_space<vmem>>, %arg4: memref<1059x32xbf16, #tpu.memory_space<vmem>>, %arg5: memref<64x512xbf16, #tpu.memory_space<vmem>>, %arg6: memref<512x12xbf16, #tpu.memory_space<vmem>>, %arg7: memref<5x1024xf32, #tpu.memory_space<vmem>>, %arg8: memref<16x12xf32, #tpu.memory_space<vmem>>) attributes {dimension_semantics = [], scalar_prefetch = 0 : i64, scratch_operands = 0 : i64, tpu.core_type = #tpu.core_type<tc>} {
    %c0 = arith.constant 0 : index
    %c0_0 = arith.constant 0 : index
    %0 = vector.load %arg0[%c0, %c0_0] : memref<16x32xf32, #tpu.memory_space<vmem>>, vector<16x32xf32>
    %c0_1 = arith.constant 0 : index
    %c0_2 = arith.constant 0 : index
    %1 = vector.load %arg1[%c0_1, %c0_2] : memref<16x3xf32, #tpu.memory_space<vmem>>, vector<16x3xf32>
    %c0_3 = arith.constant 0 : index
    %c0_4 = arith.constant 0 : index
    %2 = vector.load %arg7[%c0_3, %c0_4] : memref<5x1024xf32, #tpu.memory_space<vmem>>, vector<1x1024xf32>
    %c1 = arith.constant 1 : index
    %c0_5 = arith.constant 0 : index
    %3 = vector.load %arg7[%c1, %c0_5] : memref<5x1024xf32, #tpu.memory_space<vmem>>, vector<1x1024xf32>
    %c2 = arith.constant 2 : index
    %c0_6 = arith.constant 0 : index
    %4 = vector.load %arg7[%c2, %c0_6] : memref<5x1024xf32, #tpu.memory_space<vmem>>, vector<1x32xf32>
    %c3 = arith.constant 3 : index
    %c0_7 = arith.constant 0 : index
    %5 = vector.load %arg7[%c3, %c0_7] : memref<5x1024xf32, #tpu.memory_space<vmem>>, vector<1x512xf32>
    %c4 = arith.constant 4 : index
    %c0_8 = arith.constant 0 : index
    %6 = vector.load %arg7[%c4, %c0_8] : memref<5x1024xf32, #tpu.memory_space<vmem>>, vector<1x12xf32>
    %7 = arith.truncf %0 : vector<16x32xf32> to vector<16x32xbf16>
    %c0_9 = arith.constant 0 : index
    %c0_10 = arith.constant 0 : index
    %8 = vector.load %arg2[%c0_9, %c0_10] : memref<32x1024xbf16, #tpu.memory_space<vmem>>, vector<32x1024xbf16>
    %cst = arith.constant dense<0.000000e+00> : vector<16x1024xf32>
    %9 = tpu.matmul %7, %8, %cst {dimension_numbers = #tpu.dot_dimension_numbers<[1], [0], [0], [1], [0, 0, 1, 1], [], []>} : vector<16x32xbf16>, vector<32x1024xbf16>, vector<16x1024xf32> -> vector<16x1024xf32>
    %10 = vector.broadcast %2 : vector<1x1024xf32> to vector<16x1024xf32>
    %11 = arith.addf %9, %10 : vector<16x1024xf32>
    %cst_11 = arith.constant 0.000000e+00 : f32
    %12 = vector.broadcast %cst_11 : f32 to vector<16x1024xf32>
    %13 = arith.cmpf ogt, %11, %12 : vector<16x1024xf32>
    %cst_12 = arith.constant 2.000000e-01 : f32
    %14 = vector.broadcast %cst_12 : f32 to vector<16x1024xf32>
    %15 = arith.mulf %14, %11 : vector<16x1024xf32>
    %16 = arith.select %13, %11, %15 : vector<16x1024xi1>, vector<16x1024xf32>
    %17 = arith.truncf %16 : vector<16x1024xf32> to vector<16x1024xbf16>
    %c0_13 = arith.constant 0 : index
    %c0_14 = arith.constant 0 : index
    %18 = vector.load %arg3[%c0_13, %c0_14] : memref<1024x1024xbf16, #tpu.memory_space<vmem>>, vector<1024x1024xbf16>
    %cst_15 = arith.constant dense<0.000000e+00> : vector<16x1024xf32>
    %19 = tpu.matmul %17, %18, %cst_15 {dimension_numbers = #tpu.dot_dimension_numbers<[1], [0], [0], [1], [0, 0, 1, 1], [], []>} : vector<16x1024xbf16>, vector<1024x1024xbf16>, vector<16x1024xf32> -> vector<16x1024xf32>
    %20 = vector.broadcast %3 : vector<1x1024xf32> to vector<16x1024xf32>
    %21 = arith.addf %19, %20 : vector<16x1024xf32>
    %22 = vector.extract_strided_slice %21 {offsets = [0, 0], sizes = [8, 1024], strides = [1, 1]} : vector<16x1024xf32> to vector<8x1024xf32>
    %cst_16 = arith.constant dense<0xFF800000> : vector<1024xf32>
    %23 = vector.multi_reduction <maximumf>, %22, %cst_16 [0] : vector<8x1024xf32> to vector<1024xf32>
    %24 = vector.shape_cast %23 : vector<1024xf32> to vector<1x1024xf32>
    %25 = vector.shape_cast %24 : vector<1x1024xf32> to vector<1x1024xf32>
    %26 = vector.broadcast %25 : vector<1x1024xf32> to vector<8x1024xf32>
    %27 = vector.extract_strided_slice %21 {offsets = [8, 0], sizes = [8, 1024], strides = [1, 1]} : vector<16x1024xf32> to vector<8x1024xf32>
    %cst_17 = arith.constant dense<0xFF800000> : vector<1024xf32>
    %28 = vector.multi_reduction <maximumf>, %27, %cst_17 [0] : vector<8x1024xf32> to vector<1024xf32>
    %29 = vector.shape_cast %28 : vector<1024xf32> to vector<1x1024xf32>
    %30 = vector.shape_cast %29 : vector<1x1024xf32> to vector<1x1024xf32>
    %31 = vector.broadcast %30 : vector<1x1024xf32> to vector<8x1024xf32>
    %32 = tpu.concatenate %26, %31 in 0 : vector<8x1024xf32>, vector<8x1024xf32> -> vector<16x1024xf32>
    %33 = arith.truncf %32 : vector<16x1024xf32> to vector<16x1024xbf16>
    %c0_18 = arith.constant 0 : index
    %c0_19 = arith.constant 0 : index
    %34 = vector.load %arg4[%c0_18, %c0_19] : memref<1059x32xbf16, #tpu.memory_space<vmem>>, vector<1024x32xbf16>
    %cst_20 = arith.constant dense<0.000000e+00> : vector<16x32xf32>
    %35 = tpu.matmul %33, %34, %cst_20 {dimension_numbers = #tpu.dot_dimension_numbers<[1], [0], [0], [1], [0, 0, 1, 1], [], []>} : vector<16x1024xbf16>, vector<1024x32xbf16>, vector<16x32xf32> -> vector<16x32xf32>
    %36 = arith.truncf %0 : vector<16x32xf32> to vector<16x32xbf16>
    %c1024 = arith.constant 1024 : index
    %c0_21 = arith.constant 0 : index
    %37 = vector.load %arg4[%c1024, %c0_21] : memref<1059x32xbf16, #tpu.memory_space<vmem>>, vector<32x32xbf16>
    %cst_22 = arith.constant dense<0.000000e+00> : vector<16x32xf32>
    %38 = tpu.matmul %36, %37, %cst_22 {dimension_numbers = #tpu.dot_dimension_numbers<[1], [0], [0], [1], [0, 0, 1, 1], [], []>} : vector<16x32xbf16>, vector<32x32xbf16>, vector<16x32xf32> -> vector<16x32xf32>
    %39 = arith.addf %35, %38 : vector<16x32xf32>
    %40 = arith.truncf %1 : vector<16x3xf32> to vector<16x3xbf16>
    %c1056 = arith.constant 1056 : index
    %c0_23 = arith.constant 0 : index
    %41 = vector.load %arg4[%c1056, %c0_23] : memref<1059x32xbf16, #tpu.memory_space<vmem>>, vector<3x32xbf16>
    %cst_24 = arith.constant dense<0.000000e+00> : vector<16x32xf32>
    %42 = tpu.matmul %40, %41, %cst_24 {dimension_numbers = #tpu.dot_dimension_numbers<[1], [0], [0], [1], [0, 0, 1, 1], [], []>} : vector<16x3xbf16>, vector<3x32xbf16>, vector<16x32xf32> -> vector<16x32xf32>
    %43 = arith.addf %39, %42 : vector<16x32xf32>
    %44 = vector.broadcast %4 : vector<1x32xf32> to vector<16x32xf32>
    %45 = arith.addf %43, %44 : vector<16x32xf32>
    %46 = vector.extract_strided_slice %45 {offsets = [0, 0], sizes = [8, 32], strides = [1, 1]} : vector<16x32xf32> to vector<8x32xf32>
    %cst_25 = arith.constant dense<0xFF800000> : vector<32xf32>
    %47 = vector.multi_reduction <maximumf>, %46, %cst_25 [0] : vector<8x32xf32> to vector<32xf32>
    %48 = vector.shape_cast %47 : vector<32xf32> to vector<1x32xf32>
    %49 = vector.shape_cast %48 : vector<1x32xf32> to vector<1x32xf32>
    %50 = vector.broadcast %49 : vector<1x32xf32> to vector<8x32xf32>
    %51 = vector.extract_strided_slice %45 {offsets = [8, 0], sizes = [8, 32], strides = [1, 1]} : vector<16x32xf32> to vector<8x32xf32>
    %cst_26 = arith.constant dense<0xFF800000> : vector<32xf32>
    %52 = vector.multi_reduction <maximumf>, %51, %cst_26 [0] : vector<8x32xf32> to vector<32xf32>
    %53 = vector.shape_cast %52 : vector<32xf32> to vector<1x32xf32>
    %54 = vector.shape_cast %53 : vector<1x32xf32> to vector<1x32xf32>
    %55 = vector.broadcast %54 : vector<1x32xf32> to vector<8x32xf32>
    %56 = tpu.concatenate %50, %55 in 0 : vector<8x32xf32>, vector<8x32xf32> -> vector<16x32xf32>
    %57 = arith.truncf %56 : vector<16x32xf32> to vector<16x32xbf16>
    %c0_27 = arith.constant 0 : index
    %c0_28 = arith.constant 0 : index
    %58 = vector.load %arg5[%c0_27, %c0_28] : memref<64x512xbf16, #tpu.memory_space<vmem>>, vector<32x512xbf16>
    %cst_29 = arith.constant dense<0.000000e+00> : vector<16x512xf32>
    %59 = tpu.matmul %57, %58, %cst_29 {dimension_numbers = #tpu.dot_dimension_numbers<[1], [0], [0], [1], [0, 0, 1, 1], [], []>} : vector<16x32xbf16>, vector<32x512xbf16>, vector<16x512xf32> -> vector<16x512xf32>
    %60 = arith.truncf %45 : vector<16x32xf32> to vector<16x32xbf16>
    %c32 = arith.constant 32 : index
    %c0_30 = arith.constant 0 : index
    %61 = vector.load %arg5[%c32, %c0_30] : memref<64x512xbf16, #tpu.memory_space<vmem>>, vector<32x512xbf16>
    %cst_31 = arith.constant dense<0.000000e+00> : vector<16x512xf32>
    %62 = tpu.matmul %60, %61, %cst_31 {dimension_numbers = #tpu.dot_dimension_numbers<[1], [0], [0], [1], [0, 0, 1, 1], [], []>} : vector<16x32xbf16>, vector<32x512xbf16>, vector<16x512xf32> -> vector<16x512xf32>
    %63 = arith.addf %59, %62 : vector<16x512xf32>
    %64 = vector.broadcast %5 : vector<1x512xf32> to vector<16x512xf32>
    %65 = arith.addf %63, %64 : vector<16x512xf32>
    %cst_32 = arith.constant 5.000000e-01 : f32
    %66 = vector.broadcast %cst_32 : f32 to vector<16x512xf32>
    %67 = arith.mulf %66, %65 : vector<16x512xf32>
    %cst_33 = arith.constant 0.707106769 : f32
    %68 = vector.broadcast %cst_33 : f32 to vector<16x512xf32>
    %69 = arith.mulf %65, %68 : vector<16x512xf32>
    %70 = math.absf %69 : vector<16x512xf32>
    %cst_34 = arith.constant 0.327591091 : f32
    %71 = vector.broadcast %cst_34 : f32 to vector<16x512xf32>
    %72 = arith.mulf %71, %70 : vector<16x512xf32>
    %cst_35 = arith.constant 1.000000e+00 : f32
    %73 = vector.broadcast %cst_35 : f32 to vector<16x512xf32>
    %74 = arith.addf %73, %72 : vector<16x512xf32>
    %75 = tpu.reciprocal %74 {approx = true} : vector<16x512xf32> -> vector<16x512xf32>
    %cst_36 = arith.constant 1.06140542 : f32
    %76 = vector.broadcast %cst_36 : f32 to vector<16x512xf32>
    %77 = arith.mulf %76, %75 : vector<16x512xf32>
    %cst_37 = arith.constant -1.45315206 : f32
    %78 = vector.broadcast %cst_37 : f32 to vector<16x512xf32>
    %79 = arith.addf %77, %78 : vector<16x512xf32>
    %80 = arith.mulf %79, %75 : vector<16x512xf32>
    %cst_38 = arith.constant 1.42141378 : f32
    %81 = vector.broadcast %cst_38 : f32 to vector<16x512xf32>
    %82 = arith.addf %80, %81 : vector<16x512xf32>
    %83 = arith.mulf %82, %75 : vector<16x512xf32>
    %cst_39 = arith.constant -0.284496725 : f32
    %84 = vector.broadcast %cst_39 : f32 to vector<16x512xf32>
    %85 = arith.addf %83, %84 : vector<16x512xf32>
    %86 = arith.mulf %85, %75 : vector<16x512xf32>
    %cst_40 = arith.constant 0.254829586 : f32
    %87 = vector.broadcast %cst_40 : f32 to vector<16x512xf32>
    %88 = arith.addf %86, %87 : vector<16x512xf32>
    %89 = arith.mulf %88, %75 : vector<16x512xf32>
    %cst_41 = arith.constant 0.000000e+00 : f32
    %90 = vector.broadcast %cst_41 : f32 to vector<16x512xf32>
    %91 = arith.subf %90, %70 : vector<16x512xf32>
    %92 = arith.mulf %91, %70 : vector<16x512xf32>
    %93 = math.exp %92 : vector<16x512xf32>
    %94 = arith.mulf %89, %93 : vector<16x512xf32>
    %cst_42 = arith.constant 1.000000e+00 : f32
    %95 = vector.broadcast %cst_42 : f32 to vector<16x512xf32>
    %96 = arith.subf %95, %94 : vector<16x512xf32>
    %cst_43 = arith.constant 0.000000e+00 : f32
    %97 = vector.broadcast %cst_43 : f32 to vector<16x512xf32>
    %98 = arith.cmpf oge, %69, %97 : vector<16x512xf32>
    %cst_44 = arith.constant 0.000000e+00 : f32
    %99 = vector.broadcast %cst_44 : f32 to vector<16x512xf32>
    %100 = arith.subf %99, %96 : vector<16x512xf32>
    %101 = arith.select %98, %96, %100 : vector<16x512xi1>, vector<16x512xf32>
    %cst_45 = arith.constant 1.000000e+00 : f32
    %102 = vector.broadcast %cst_45 : f32 to vector<16x512xf32>
    %103 = arith.addf %102, %101 : vector<16x512xf32>
    %104 = arith.mulf %67, %103 : vector<16x512xf32>
    %105 = arith.truncf %104 : vector<16x512xf32> to vector<16x512xbf16>
    %c0_46 = arith.constant 0 : index
    %c0_47 = arith.constant 0 : index
    %106 = vector.load %arg6[%c0_46, %c0_47] : memref<512x12xbf16, #tpu.memory_space<vmem>>, vector<512x12xbf16>
    %cst_48 = arith.constant dense<0.000000e+00> : vector<16x12xf32>
    %107 = tpu.matmul %105, %106, %cst_48 {dimension_numbers = #tpu.dot_dimension_numbers<[1], [0], [0], [1], [0, 0, 1, 1], [], []>} : vector<16x512xbf16>, vector<512x12xbf16>, vector<16x12xf32> -> vector<16x12xf32>
    %108 = vector.broadcast %6 : vector<1x12xf32> to vector<16x12xf32>
    %109 = arith.addf %107, %108 : vector<16x12xf32>
    %c0_49 = arith.constant 0 : index
    %c0_50 = arith.constant 0 : index
    %110 = vector.load %arg8[%c0_49, %c0_50] : memref<16x12xf32, #tpu.memory_space<vmem>>, vector<16x12xf32>
    tpu.vector_store %arg8[%c0_49, %c0_50], %109 {strides = array<i32>} : memref<16x12xf32, #tpu.memory_space<vmem>>, vector<16x12xf32>,
    return
  }
}

</mosaic_0001>

<bundles_post_ra>
// kernel: forward.1
= control target key start
LH: loop header
LB: loop body
LE: loop exit
PB: predicated region body
PF: predicated region fallthrough
CT: control target
= control target key end

     0   :  { %13 = vsyncpa [#allocation3], 0  ;;  %s8078_s0 = inlined_call_operand.vmem [shape: f32[16,32], index: 0, kind: input, shape index: {}]   ;;  %s8079_s1 = inlined_call_operand.vmem [shape: f32[16,3], index: 1, kind: input, shape index: {}]   ;;  %s8080_s2 = inlined_call_operand.hbm [shape: bf16[32,1024], index: 2, kind: input, shape index: {}]   ;;  %s8081_s3 = inlined_call_operand.hbm [shape: bf16[1024,1024], index: 3, kind: input, shape index: {}]   ;;  %s8082_s4 = inlined_call_operand.vmem [shape: bf16[1059,32], index: 4, kind: input, shape index: {}]   ;;  %s8083_s5 = inlined_call_operand.hbm [shape: bf16[64,512], index: 5, kind: input, shape index: {}]   ;;  %s8084_s6 = inlined_call_operand.vmem [shape: bf16[512,12], index: 6, kind: input, shape index: {}]   ;;  %s8085_s7 = inlined_call_operand.hbm [shape: f32[5,1024], index: 7, kind: input, shape index: {}]   ;;  %s8086_s8 = inlined_call_operand.vmem [shape: f32[16,12], index: 8, kind: output, shape index: {}]  }
   0x1   :  { %14 = vsyncpa [#allocation5], 0 }
   0x2   :  { %15 = vsyncpa [#allocation8], 0  ;;  %s7178_s27 = smov [#allocation4]   ;;  %s7179_s29 = smov [#allocation2]  }
   0x3   :  { %s37_s28 = sshll.u32 %s7178_s27, 4  ;;  %s25_s30 = sshll.u32 %s7179_s29, 4  ;;  %s38_s28 = int_to_ptr.vmem [resolvable:$true] %s37_s28  ;;  %s7235_s30 = int_to_ptr.vmem [resolvable:$true] %s25_s30 }
   0x4   :  { %s7084_s11 = scalar_lea.hbm %s8081_s3, 65536 }
   0x5   :  { %p7085_p0 = scmp.ne.s32.totalorder %s8081_s3, %s7084_s11  ;;  %p7088_p1 = scmp.lt.u32.totalorder %s7084_s11, %s8081_s3 }
   0x7   :  { %p7090_p2 = pnand %p7088_p1, %p7085_p0 }
   0x9   :  { %7093 = shalt.err (!%p7090_p2)
}
   0xa   :  { %s7094_s16 = scalar_lea.vmem %s38_s28, 65536  ;;  %p7099_p4 = scmp.lt.s32.totalorder %s38_s28, %s38_s28 }
   0xb   :  { %p7095_p3 = scmp.ne.s32.totalorder %s38_s28, %s7094_s16  ;;  %p7100_p5 = scmp.lt.s32.totalorder %s7094_s16, %s7094_s16 }
   0xd   :  { %p7101_p6 = por %p7100_p5, %p7099_p4 }
   0xf   :  { %p7102_p7 = pnand %p7101_p6, %p7095_p3 }
  0x11   :  { %7105 = shalt.err (!%p7102_p7)
}
  0x12   :  { %s7180_s17 = smov 512   ;;  %s7181_s18 = smov 32  }
  0x13   :  { %43 = dma.hbm_to_vmem [thread:$0]  %s8081_s3, 65536, %s38_s28, [#allocation5], %s7180_s17, %s7180_s17, %s7181_s18  }
  0x14   :  { %s7106_s23 = scalar_lea.hbm %s8080_s2, 2048 }
  0x15   :  { %p7107_p8 = scmp.ne.s32.totalorder %s8080_s2, %s7106_s23  ;;  %p7110_p9 = scmp.lt.u32.totalorder %s7106_s23, %s8080_s2 }
  0x17   :  { %p7112_p10 = pnand %p7110_p9, %p7107_p8 }
  0x19   :  { %7115 = shalt.err (!%p7112_p10)
}
  0x1a   :  { %s7116_s29 = scalar_lea.vmem %s7235_s30, 2048  ;;  %p7121_p12 = scmp.lt.s32.totalorder %s7235_s30, %s7235_s30 }
  0x1b   :  { %p7117_p11 = scmp.ne.s32.totalorder %s7235_s30, %s7116_s29  ;;  %p7122_p13 = scmp.lt.s32.totalorder %s7116_s29, %s7116_s29 }
  0x1d   :  { %p7123_p0 = por %p7122_p13, %p7121_p12 }
  0x1f   :  { %p7124_p1 = pnand %p7123_p0, %p7117_p11 }
  0x21   :  { %7127 = shalt.err (!%p7124_p1)
}
  0x22   :  { %31 = dma.hbm_to_vmem [thread:$0]  %s8080_s2, 2048, %s7235_s30, [#allocation3], %s7180_s17, %s7180_s17, %s7181_s18  }
  0x23   :  { %s7182_s9 = smov [#allocation6]   ;;  %s7128_s13 = scalar_lea.hbm %s8083_s5, 2048 }
  0x24   :  { %s51_s10 = sshll.u32 %s7182_s9, 4  ;;  %p7129_p2 = scmp.ne.s32.totalorder %s8083_s5, %s7128_s13  ;;  %s52_s10 = int_to_ptr.vmem [resolvable:$true] %s51_s10 }
  0x25   :  { %p7132_p3 = scmp.lt.u32.totalorder %s7128_s13, %s8083_s5 }
  0x27   :  { %p7134_p4 = pnand %p7132_p3, %p7129_p2 }
  0x29   :  { %7137 = shalt.err (!%p7134_p4)
}
  0x2a   :  { %s7138_s20 = scalar_lea.vmem %s52_s10, 2048  ;;  %p7143_p6 = scmp.lt.s32.totalorder %s52_s10, %s52_s10 }
  0x2b   :  { %p7139_p5 = scmp.ne.s32.totalorder %s52_s10, %s7138_s20  ;;  %p7144_p7 = scmp.lt.s32.totalorder %s7138_s20, %s7138_s20 }
  0x2d   :  { %p7145_p8 = por %p7144_p7, %p7143_p6 }
  0x2f   :  { %p7146_p9 = pnand %p7145_p8, %p7139_p5 }
  0x31   :  { %7149 = shalt.err (!%p7146_p9)
}
  0x32   :  { %s7183_s2 = smov 256   ;;  %s7184_s30 = smov 16  }
  0x33   :  { %57 = dma.hbm_to_vmem [thread:$0]  %s8083_s5, 2048, %s52_s10, [#allocation5], %s7183_s2, %s7183_s2, %s7184_s30  }
  0x34   :  { %s7185_s21 = smov [#allocation7]   ;;  %s7150_s25 = scalar_lea.hbm %s8085_s7, 1024 }
  0x35   :  { %s66_s22 = sshll.u32 %s7185_s21, 4  ;;  %p7151_p10 = scmp.ne.s32.totalorder %s8085_s7, %s7150_s25  ;;  %s67_s22 = int_to_ptr.vmem [resolvable:$true] %s66_s22 }
  0x36   :  { %p7154_p11 = scmp.lt.u32.totalorder %s7150_s25, %s8085_s7 }
  0x38   :  { %p7156_p12 = pnand %p7154_p11, %p7151_p10 }
  0x3a   :  { %7159 = shalt.err (!%p7156_p12)
}
  0x3b   :  { %s7160_s28 = scalar_lea.vmem %s67_s22, 1024  ;;  %p7165_p0 = scmp.lt.s32.totalorder %s67_s22, %s67_s22 }
  0x3c   :  { %p7161_p13 = scmp.ne.s32.totalorder %s67_s22, %s7160_s28  ;;  %p7166_p1 = scmp.lt.s32.totalorder %s7160_s28, %s7160_s28 }
  0x3e   :  { %p7167_p2 = por %p7166_p1, %p7165_p0 }
  0x40   :  { %p7168_p3 = pnand %p7167_p2, %p7161_p13 }
  0x42   :  { %7171 = shalt.err (!%p7168_p3)
}
  0x43   :  { %69 = dma.hbm_to_vmem [thread:$0]  %s8085_s7, 1024, %s67_s22, [#allocation8]  }
  0x44   :  { %7172 = dma.done.wait [#allocation3], 2048  }
  0x45   :  { %7173 = vsyncadd [#allocation3], 4294965248 }
  0x46   :  { %7174 = dma.done.wait [#allocation5], 67584  }
  0x47   :  { %7175 = vsyncadd [#allocation5], 4294899712 }
  0x48   :  { %7176 = dma.done.wait [#allocation8], 1024  }
  0x49   :  { %7177 = vsyncadd [#allocation8], 4294966272  ;;  %v8087_v0 = vmov 0   ;;  %v99_v1 = vld [vmem:[#allocation2] sm:$0xff]  ;;  %v100_v8 = vld [vmem:[#allocation2 + $0x8] sm:$0xff]  ;;  %vm236_vm0 = vcmask 261120  }
  0x4a   :  { %272 = vmatprep.mubr.bf16.mxu0 %v8087_v0  ;;  %315 = vmatprep.mubr.bf16.mxu1 %v8087_v0  ;;  %v103_v2 = vld [vmem:[#allocation2 + $0x20] sm:$0xff]  ;;  %v104_v9 = vld [vmem:[#allocation2 + $0x28] sm:$0xff]  ;;  %v101_v14 = vld [vmem:[#allocation2 + $0x10] sm:$0xff] }
  0x4b   :  { %v107_v3 = vld [vmem:[#allocation2 + $0x40] sm:$0xff]  ;;  %v6044_v4 = vcombine.high %v99_v1, %v103_v2  ;;  %v6043_v5 = vcombine.low %v99_v1, %v103_v2  ;;  %v108_v10 = vld [vmem:[#allocation2 + $0x48] sm:$0xff]  ;;  %v6046_v11 = vcombine.high %v100_v8, %v104_v9  ;;  %v6045_v12 = vcombine.low %v100_v8, %v104_v9  ;;  %v105_v15 = vld [vmem:[#allocation2 + $0x30] sm:$0xff] }
  0x4c   :  { %v111_v6 = vld [vmem:[#allocation2 + $0x60] sm:$0xff]  ;;  %v112_v13 = vld [vmem:[#allocation2 + $0x68] sm:$0xff]  ;;  %v102_v20 = vld [vmem:[#allocation2 + $0x18] sm:$0xff]  ;;  %v6048_v21 = vcombine.high %v101_v14, %v105_v15  ;;  %v6047_v28 = vcombine.low %v101_v14, %v105_v15 }
  0x4d   :  { %v6052_v7 = vcombine.high %v107_v3, %v111_v6  ;;  %240 = vmatprep.subr.bf16.mxu0 %v6044_v4  ;;  %v6051_v16 = vcombine.low %v107_v3, %v111_v6  ;;  %v83_v17 = vld [vmem:[%s8078_s0] sm:$0xff]  ;;  %v84_v18 = vld [vmem:[%s8078_s0 + $0x8] sm:$0xff]  ;;  %v6054_v19 = vcombine.high %v108_v10, %v112_v13  ;;  %283 = vmatprep.subr.bf16.mxu1 %v6046_v11  ;;  %v106_v22 = vld [vmem:[#allocation2 + $0x38] sm:$0xff] }
  0x4e   :  { %241 = vmatpush1.bf16.msra.mxu0 %v6043_v5  ;;  %284 = vmatpush1.bf16.msra.mxu1 %v6045_v12  ;;  %v6053_v23 = vcombine.low %v108_v10, %v112_v13  ;;  %v109_v24 = vld [vmem:[#allocation2 + $0x50] sm:$0xff]  ;;  %v7298_v26 = vpack.c.bf16 %v84_v18, %v83_v17  ;;  %v6050_v27 = vcombine.high %v102_v20, %v106_v22  ;;  %v110_v29 = vld [vmem:[#allocation2 + $0x58] sm:$0xff]  ;;  %v468_v33 = vld [vmem:[#allocation4] sm:$0xff] }
  0x4f   :  { %242 = vmatprep.subr.bf16.mxu0 %v6052_v7  ;;  %v113_v25 = vld [vmem:[#allocation2 + $0x70] sm:$0xff]  ;;  %285 = vmatprep.subr.bf16.mxu1 %v6054_v19  ;;  %v114_v30 = vld [vmem:[#allocation2 + $0x78] sm:$0xff]  ;;  %v6049_v32 = vcombine.low %v102_v20, %v106_v22  ;;  %v472_v34 = vld [vmem:[#allocation4 + $0x20] sm:$0xff] }
  0x50   :  { %v6056_v31 = vcombine.high %v109_v24, %v113_v25  ;;  %v6058_v35 = vcombine.high %v110_v29, %v114_v30  ;;  %v6055_v36 = vcombine.low %v109_v24, %v113_v25  ;;  %v469_v37 = vld [vmem:[#allocation4 + $0x8] sm:$0xff]  ;;  %v6064_v39 = vcombine.high %v468_v33, %v472_v34  ;;  %v476_v41 = vld [vmem:[#allocation4 + $0x40] sm:$0xff] }
  0x51   :  { %v473_v38 = vld [vmem:[#allocation4 + $0x28] sm:$0xff]  ;;  %v6057_v40 = vcombine.low %v110_v29, %v114_v30  ;;  %v480_v42 = vld [vmem:[#allocation4 + $0x60] sm:$0xff]  ;;  %v6063_v44 = vcombine.low %v468_v33, %v472_v34 }
  0x52   :  { %243 = vmatpush1.bf16.msra.mxu0 %v6051_v16  ;;  %286 = vmatpush1.bf16.msra.mxu1 %v6053_v23  ;;  %v6066_v43 = vcombine.high %v469_v37, %v473_v38  ;;  %v477_v45 = vld [vmem:[#allocation4 + $0x48] sm:$0xff]  ;;  %v6072_v47 = vcombine.high %v476_v41, %v480_v42  ;;  %v6065_v48 = vcombine.low %v469_v37, %v473_v38  ;;  %v484_v49 = vld [vmem:[#allocation4 + $0x80] sm:$0xff] }
  0x53   :  { %326 = vmatprep.subr.bf16.mxu0 %v6048_v21  ;;  %369 = vmatprep.subr.bf16.mxu1 %v6050_v27  ;;  %v481_v46 = vld [vmem:[#allocation4 + $0x68] sm:$0xff]  ;;  %v488_v50 = vld [vmem:[#allocation4 + $0xa0] sm:$0xff]  ;;  %v6071_v52 = vcombine.low %v476_v41, %v480_v42 }
  0x54   :  { %v6074_v51 = vcombine.high %v477_v45, %v481_v46  ;;  %v485_v53 = vld [vmem:[#allocation4 + $0x88] sm:$0xff]  ;;  %v6080_v55 = vcombine.high %v484_v49, %v488_v50  ;;  %v6073_v56 = vcombine.low %v477_v45, %v481_v46  ;;  %v492_v57 = vld [vmem:[#allocation4 + $0xc0] sm:$0xff]  ;;  %v6079_v60 = vcombine.low %v484_v49, %v488_v50 }
  0x55   :  { %6059 = vmatmul.mubr.msk.bf16.vlgmr.msra.gmra.mrb[0].mxu0 %vm236_vm0, %v7298_v26  ;;  %6060 = vmatmul.mubr.msk.bf16.vlgmr.msra.gmra.mrb[0].mxu1 %vm236_vm0, %v7298_v26  ;;  %v489_v54 = vld [vmem:[#allocation4 + $0xa8] sm:$0xff]  ;;  %v496_v58 = vld [vmem:[#allocation4 + $0xe0] sm:$0xff] }
  0x56   :  { %327 = vmatpush1.bf16.msra.mxu0 %v6047_v28  ;;  %358 = vmatprep.mubr.bf16.mxu0 %v8087_v0  ;;  %v6082_v59 = vcombine.high %v485_v53, %v489_v54  ;;  %v493_v61 = vld [vmem:[#allocation4 + $0xc8] sm:$0xff]  ;;  %v500_v63 = vld [vmem:[#allocation4 + $0x100] sm:$0xff]  ;;  %v6088_v1 = vcombine.high %v492_v57, %v496_v58  ;;  %v6081_v3 = vcombine.low %v485_v53, %v489_v54 }
  0x57   :  { %328 = vmatprep.subr.bf16.mxu0 %v6056_v31  ;;  %370 = vmatpush1.bf16.msra.mxu1 %v6049_v32  ;;  %v497_v62 = vld [vmem:[#allocation4 + $0xe8] sm:$0xff]  ;;  %v504_v2 = vld [vmem:[#allocation4 + $0x120] sm:$0xff]  ;;  %v6087_v7 = vcombine.low %v492_v57, %v496_v58 }
  0x58   :  { %401 = vmatprep.mubr.bf16.mxu1 %v8087_v0  ;;  %371 = vmatprep.subr.bf16.mxu1 %v6058_v35  ;;  %v501_v4 = vld [vmem:[#allocation4 + $0x108] sm:$0xff]  ;;  %v6090_v6 = vcombine.high %v493_v61, %v497_v62  ;;  %v508_v8 = vld [vmem:[#allocation4 + $0x140] sm:$0xff]  ;;  %v6096_v10 = vcombine.high %v500_v63, %v504_v2  ;;  %v6089_v11 = vcombine.low %v493_v61, %v497_v62 }
  0x59   :  { %v505_v5 = vld [vmem:[#allocation4 + $0x128] sm:$0xff]  ;;  %v512_v9 = vld [vmem:[#allocation4 + $0x160] sm:$0xff]  ;;  %v6095_v15 = vcombine.low %v500_v63, %v504_v2 }
  0x5a   :  { %329 = vmatpush1.bf16.msra.mxu0 %v6055_v36  ;;  %v509_v12 = vld [vmem:[#allocation4 + $0x148] sm:$0xff]  ;;  %v6098_v14 = vcombine.high %v501_v4, %v505_v5  ;;  %v516_v16 = vld [vmem:[#allocation4 + $0x180] sm:$0xff]  ;;  %v6104_v18 = vcombine.high %v508_v8, %v512_v9  ;;  %v6097_v19 = vcombine.low %v501_v4, %v505_v5  ;;  %v6103_v23 = vcombine.low %v508_v8, %v512_v9 }
  0x5b   :  { %3581 = vmatprep.subr.bf16.mxu0 %v6064_v39  ;;  %372 = vmatpush1.bf16.msra.mxu1 %v6057_v40  ;;  %v513_v13 = vld [vmem:[#allocation4 + $0x168] sm:$0xff]  ;;  %v520_v17 = vld [vmem:[#allocation4 + $0x1a0] sm:$0xff] }
  0x5c   :  { %3753 = vmatprep.subr.bf16.mxu1 %v6066_v43  ;;  %v517_v20 = vld [vmem:[#allocation4 + $0x188] sm:$0xff]  ;;  %v6106_v22 = vcombine.high %v509_v12, %v513_v13  ;;  %v524_v24 = vld [vmem:[#allocation4 + $0x1c0] sm:$0xff]  ;;  %v6112_v27 = vcombine.high %v516_v16, %v520_v17  ;;  %v6105_v28 = vcombine.low %v509_v12, %v513_v13  ;;  %v6111_v32 = vcombine.low %v516_v16, %v520_v17 }
  0x5d   :  { %6061 = vmatmul.mubr.msk.bf16.vlgmr.msra.gmra.mrb[4].mxu0 %vm236_vm0, %v7298_v26  ;;  %v521_v21 = vld [vmem:[#allocation4 + $0x1a8] sm:$0xff]  ;;  %v528_v25 = vld [vmem:[#allocation4 + $0x1e0] sm:$0xff] }
  0x5e   :  { %3582 = vmatpush1.bf16.msra.mxu0 %v6063_v44  ;;  %6062 = vmatmul.mubr.msk.bf16.vlgmr.msra.gmra.mrb[4].mxu1 %vm236_vm0, %v7298_v26  ;;  %v525_v29 = vld [vmem:[#allocation4 + $0x1c8] sm:$0xff]  ;;  %v6114_v31 = vcombine.high %v517_v20, %v521_v21  ;;  %v532_v33 = vld [vmem:[#allocation4 + $0x200] sm:$0xff]  ;;  %v6120_v35 = vcombine.high %v524_v24, %v528_v25  ;;  %v6113_v36 = vcombine.low %v517_v20, %v521_v21 }
  0x5f   :  { %3583 = vmatprep.subr.bf16.mxu0 %v6072_v47  ;;  %3754 = vmatpush1.bf16.msra.mxu1 %v6065_v48  ;;  %v529_v30 = vld [vmem:[#allocation4 + $0x1e8] sm:$0xff]  ;;  %v536_v34 = vld [vmem:[#allocation4 + $0x220] sm:$0xff]  ;;  %v6119_v40 = vcombine.low %v524_v24, %v528_v25 }
  0x60   :  { %3755 = vmatprep.subr.bf16.mxu1 %v6074_v51  ;;  %v533_v37 = vld [vmem:[#allocation4 + $0x208] sm:$0xff]  ;;  %v6122_v39 = vcombine.high %v525_v29, %v529_v30  ;;  %v540_v41 = vld [vmem:[#allocation4 + $0x240] sm:$0xff]  ;;  %v6128_v43 = vcombine.high %v532_v33, %v536_v34  ;;  %v6121_v44 = vcombine.low %v525_v29, %v529_v30  ;;  %v6127_v48 = vcombine.low %v532_v33, %v536_v34 }
  0x61   :  { %v537_v38 = vld [vmem:[#allocation4 + $0x228] sm:$0xff]  ;;  %v544_v42 = vld [vmem:[#allocation4 + $0x260] sm:$0xff] }
  0x62   :  { %3584 = vmatpush1.bf16.msra.mxu0 %v6071_v52  ;;  %v541_v45 = vld [vmem:[#allocation4 + $0x248] sm:$0xff]  ;;  %v6130_v47 = vcombine.high %v533_v37, %v537_v38  ;;  %v548_v49 = vld [vmem:[#allocation4 + $0x280] sm:$0xff]  ;;  %v6136_v51 = vcombine.high %v540_v41, %v544_v42  ;;  %v6129_v52 = vcombine.low %v533_v37, %v537_v38 }
  0x63   :  { %3585 = vmatprep.subr.bf16.mxu0 %v6080_v55  ;;  %3756 = vmatpush1.bf16.msra.mxu1 %v6073_v56  ;;  %v545_v46 = vld [vmem:[#allocation4 + $0x268] sm:$0xff]  ;;  %v552_v50 = vld [vmem:[#allocation4 + $0x2a0] sm:$0xff]  ;;  %v6135_v56 = vcombine.low %v540_v41, %v544_v42 }
  0x64   :  { %3757 = vmatprep.subr.bf16.mxu1 %v6082_v59  ;;  %v549_v53 = vld [vmem:[#allocation4 + $0x288] sm:$0xff]  ;;  %v6138_v55 = vcombine.high %v541_v45, %v545_v46  ;;  %v556_v57 = vld [vmem:[#allocation4 + $0x2c0] sm:$0xff]  ;;  %v6144_v59 = vcombine.high %v548_v49, %v552_v50 }
  0x65   :  { %v553_v54 = vld [vmem:[#allocation4 + $0x2a8] sm:$0xff]  ;;  %v560_v58 = vld [vmem:[#allocation4 + $0x2e0] sm:$0xff] }
  0x66   :  { %3586 = vmatpush1.bf16.msra.mxu0 %v6079_v60  ;;  %v6137_v60 = vcombine.low %v541_v45, %v545_v46  ;;  %v557_v61 = vld [vmem:[#allocation4 + $0x2c8] sm:$0xff]  ;;  %v6146_v63 = vcombine.high %v549_v53, %v553_v54  ;;  %v564_v2 = vld [vmem:[#allocation4 + $0x300] sm:$0xff]  ;;  %v6152_v4 = vcombine.high %v556_v57, %v560_v58  ;;  %v6145_v5 = vcombine.low %v549_v53, %v553_v54 }
  0x67   :  { %3587 = vmatprep.subr.bf16.mxu0 %v6088_v1  ;;  %3758 = vmatpush1.bf16.msra.mxu1 %v6081_v3  ;;  %v561_v62 = vld [vmem:[#allocation4 + $0x2e8] sm:$0xff]  ;;  %v6143_v1 = vcombine.low %v548_v49, %v552_v50  ;;  %v568_v3 = vld [vmem:[#allocation4 + $0x320] sm:$0xff]  ;;  %v6151_v9 = vcombine.low %v556_v57, %v560_v58 }
  0x68   :  { %3759 = vmatprep.subr.bf16.mxu1 %v6090_v6  ;;  %v565_v6 = vld [vmem:[#allocation4 + $0x308] sm:$0xff]  ;;  %v6154_v8 = vcombine.high %v557_v61, %v561_v62  ;;  %v6160_v12 = vcombine.high %v564_v2, %v568_v3  ;;  %v6153_v13 = vcombine.low %v557_v61, %v561_v62  ;;  %v6159_v17 = vcombine.low %v564_v2, %v568_v3  ;;  %v584_v24 = vld [vmem:[#allocation4 + $0x3a0] sm:$0xff] }
  0x69   :  { %v581_v25 = vld [vmem:[#allocation4 + $0x388] sm:$0xff]  ;;  %v592_v33 = vld [vmem:[#allocation4 + $0x3e0] sm:$0xff] }
  0x6a   :  { %3588 = vmatpush1.bf16.msra.mxu0 %v6087_v7  ;;  %v569_v7 = vld [vmem:[#allocation4 + $0x328] sm:$0xff]  ;;  %v7312_v41 = vld [vmem:[#allocation4 + $0x420] sm:$0xff] }
  0x6b   :  { %3589 = vmatprep.subr.bf16.mxu0 %v6096_v10  ;;  %3760 = vmatpush1.bf16.msra.mxu1 %v6089_v11  ;;  %v572_v10 = vld [vmem:[#allocation4 + $0x340] sm:$0xff]  ;;  %v6162_v16 = vcombine.high %v565_v6, %v569_v7  ;;  %v589_v34 = vld [vmem:[#allocation4 + $0x3c8] sm:$0xff] }
  0x6c   :  { %3761 = vmatprep.subr.bf16.mxu1 %v6098_v14  ;;  %v576_v11 = vld [vmem:[#allocation4 + $0x360] sm:$0xff]  ;;  %v573_v14 = vld [vmem:[#allocation4 + $0x348] sm:$0xff] }
  0x6d   :  { %v6167_v21 = vcombine.low %v572_v10, %v576_v11  ;;  %v7314_v42 = vld [vmem:[#allocation4 + $0x408] sm:$0xff]  ;;  %v7344_v58 = vld [vmem:[#allocation4 + $0x440] sm:$0xff] }
  0x6e   :  { %3590 = vmatpush1.bf16.msra.mxu0 %v6095_v15  ;;  %v577_v15 = vld [vmem:[#allocation4 + $0x368] sm:$0xff] }
  0x6f   :  { %3591 = vmatprep.subr.bf16.mxu0 %v6104_v18  ;;  %3762 = vmatpush1.bf16.msra.mxu1 %v6097_v19  ;;  %v6168_v18 = vcombine.high %v572_v10, %v576_v11  ;;  %v6161_v19 = vcombine.low %v565_v6, %v569_v7  ;;  %v6170_v20 = vcombine.high %v573_v14, %v577_v15  ;;  %v87_v50 = vld [vmem:[#allocation7] ss:$8 sm:$0xf] }
  0x70   :  { %3763 = vmatprep.subr.bf16.mxu1 %v6106_v22  ;;  %v6169_v22 = vcombine.low %v573_v14, %v577_v15  ;;  %v7350_v61 = vld [vmem:[#allocation4 + $0x448] sm:$0xff] }
  0x71   :  { %v7352_v62 = vld [vmem:[#allocation4 + $0x468] sm:$0xff] }
  0x72   :  { %3592 = vmatpush1.bf16.msra.mxu0 %v6103_v23  ;;  %v580_v23 = vld [vmem:[#allocation4 + $0x380] sm:$0xff] }
  0x73   :  { %3593 = vmatprep.subr.bf16.mxu0 %v6112_v27  ;;  %3764 = vmatpush1.bf16.msra.mxu1 %v6105_v28  ;;  %v6176_v27 = vcombine.high %v580_v23, %v584_v24  ;;  %v585_v28 = vld [vmem:[#allocation4 + $0x3a8] sm:$0xff]  ;;  %v6175_v29 = vcombine.low %v580_v23, %v584_v24 }
  0x74   :  { %3765 = vmatprep.subr.bf16.mxu1 %v6114_v31  ;;  %v6177_v30 = vcombine.low %v581_v25, %v585_v28  ;;  %v6178_v31 = vcombine.high %v581_v25, %v585_v28 }
  0x76   :  { %3594 = vmatpush1.bf16.msra.mxu0 %v6111_v32  ;;  %v588_v32 = vld [vmem:[#allocation4 + $0x3c0] sm:$0xff] }
  0x77   :  { %3595 = vmatprep.subr.bf16.mxu0 %v6120_v35  ;;  %3766 = vmatpush1.bf16.msra.mxu1 %v6113_v36  ;;  %v6184_v35 = vcombine.high %v588_v32, %v592_v33  ;;  %v593_v36 = vld [vmem:[#allocation4 + $0x3e8] sm:$0xff]  ;;  %v6183_v37 = vcombine.low %v588_v32, %v592_v33 }
  0x78   :  { %3767 = vmatprep.subr.bf16.mxu1 %v6122_v39  ;;  %v6185_v38 = vcombine.low %v589_v34, %v593_v36  ;;  %v6186_v39 = vcombine.high %v589_v34, %v593_v36 }
  0x7a   :  { %3596 = vmatpush1.bf16.msra.mxu0 %v6119_v40  ;;  %v7310_v40 = vld [vmem:[#allocation4 + $0x400] sm:$0xff] }
  0x7b   :  { %3597 = vmatprep.subr.bf16.mxu0 %v6128_v43  ;;  %3768 = vmatpush1.bf16.msra.mxu1 %v6121_v44  ;;  %v6192_v43 = vcombine.high %v7310_v40, %v7312_v41  ;;  %v7318_v44 = vld [vmem:[#allocation4 + $0x428] sm:$0xff]  ;;  %v6191_v45 = vcombine.low %v7310_v40, %v7312_v41  ;;  %v620_v40 = vld [vmem:[#allocation4 + $0x4c0] sm:$0xff] }
  0x7c   :  { %3769 = vmatprep.subr.bf16.mxu1 %v6130_v47  ;;  %v6193_v46 = vcombine.low %v7314_v42, %v7318_v44  ;;  %v6194_v47 = vcombine.high %v7314_v42, %v7318_v44  ;;  %v624_v44 = vld [vmem:[#allocation4 + $0x4e0] sm:$0xff] }
  0x7e   :  { %3598 = vmatpush1.bf16.msra.mxu0 %v6127_v48  ;;  %v116_v48 = vlaneseq }
  0x7f   :  { %3599 = vmatprep.subr.bf16.mxu0 %v6136_v51  ;;  %3770 = vmatpush1.bf16.msra.mxu1 %v6129_v52  ;;  %v88_v51 = vld [vmem:[#allocation7] ss:$8 sm:$0xf0] }
  0x80   :  { %3771 = vmatprep.subr.bf16.mxu1 %v6138_v55  ;;  %v7326_v49 = vshrl.u32 %v116_v48, 7  ;;  %v7328_v52 = vor.u32 %v88_v51, %v87_v50 }
  0x82   :  { %3600 = vmatpush1.bf16.msra.mxu0 %v6135_v56  ;;  %v7331_v53 = vsub.s32 0, %v7326_v49  ;;  %v7334_v54 = vsub.s32 1, %v7326_v49  ;;  %v7337_v55 = vsub.s32 2, %v7326_v49  ;;  %v7340_v56 = vsub.s32 3, %v7326_v49 }
  0x83   :  { %3601 = vmatprep.subr.bf16.mxu0 %v6144_v59  ;;  %3772 = vmatpush1.bf16.msra.mxu1 %v6137_v60  ;;  %v7348_v60 = vld [vmem:[#allocation4 + $0x460] sm:$0xff] }
  0x84   :  { %3773 = vmatprep.subr.bf16.mxu1 %v6146_v63  ;;  %v119_v57 = vrot.slane %v7328_v52, %v7331_v53  ;;  %v123_v59 = vrot.slane %v7328_v52, %v7334_v54  ;;  %v8092_v63 = vsub.s32 4, %v7326_v49  ;;  %v127_v2 = vrot.slane %v7328_v52, %v7337_v55 }
  0x85   :  { %v6199_v7 = vcombine.low %v7344_v58, %v7348_v60 }
  0x86   :  { %3602 = vmatpush1.bf16.msra.mxu0 %v6143_v1  ;;  %v8090_v1 = vsub.s32 5, %v7326_v49  ;;  %v135_v14 = vrot.slane %v7328_v52, %v8092_v63 }
  0x87   :  { %3603 = vmatprep.subr.bf16.mxu0 %v6152_v4  ;;  %3774 = vmatpush1.bf16.msra.mxu1 %v6145_v5  ;;  %v131_v4 = vrot.slane %v7328_v52, %v7340_v56 }
  0x88   :  { %3775 = vmatprep.subr.bf16.mxu1 %v6154_v8  ;;  %v6200_v8 = vcombine.high %v7344_v58, %v7348_v60  ;;  %v7374_v15 = vrot.slane %v7328_v52, %v8090_v1  ;;  %v633_v58 = vld [vmem:[#allocation4 + $0x528] sm:$0xff] }
  0x8a   :  { %3604 = vmatpush1.bf16.msra.mxu0 %v6151_v9  ;;  %v6201_v9 = vcombine.low %v7350_v61, %v7352_v62 }
  0x8b   :  { %3605 = vmatprep.subr.bf16.mxu0 %v6160_v12  ;;  %3776 = vmatpush1.bf16.msra.mxu1 %v6153_v13  ;;  %v6202_v12 = vcombine.high %v7350_v61, %v7352_v62  ;;  %v6215_v61 = vcombine.low %v620_v40, %v624_v44 }
  0x8c   :  { %3777 = vmatprep.subr.bf16.mxu1 %v6162_v16 }
  0x8e   :  { %3606 = vmatpush1.bf16.msra.mxu0 %v6159_v17 }
  0x8f   :  { %3607 = vmatprep.subr.bf16.mxu0 %v6168_v18  ;;  %3778 = vmatpush1.bf16.msra.mxu1 %v6161_v19 }
  0x90   :  { %3779 = vmatprep.subr.bf16.mxu1 %v6170_v20 }
  0x92   :  { %3608 = vmatpush1.bf16.msra.mxu0 %v6167_v21 }
  0x93   :  { %3780 = vmatpush1.bf16.msra.mxu1 %v6169_v22  ;;  %3609 = vmatprep.subr.bf16.mxu0 %v6176_v27 }
  0x94   :  { %3781 = vmatprep.subr.bf16.mxu1 %v6178_v31 }
  0x96   :  { %3610 = vmatpush1.bf16.msra.mxu0 %v6175_v29 }
  0x97   :  { %3782 = vmatpush1.bf16.msra.mxu1 %v6177_v30  ;;  %3611 = vmatprep.subr.bf16.mxu0 %v6184_v35 }
  0x98   :  { %3783 = vmatprep.subr.bf16.mxu1 %v6186_v39 }
  0x9a   :  { %3612 = vmatpush1.bf16.msra.mxu0 %v6183_v37  ;;  %v7378_v37 = vld [vmem:[#allocation4 + $0x480] sm:$0xff] }
  0x9b   :  { %3784 = vmatpush1.bf16.msra.mxu1 %v6185_v38  ;;  %3624 = vmatprep.subr.bf16.mxu0 %v6192_v43  ;;  %v7380_v38 = vld [vmem:[#allocation4 + $0x4a0] sm:$0xff] }
  0x9c   :  { %3796 = vmatprep.subr.bf16.mxu1 %v6194_v47 }
 0x128   :  { %v274_v3 = vpop.f32.mrb[0].mxu0  ;;  %v317_v13 = vpop.f32.mrb[0].mxu1 }
 0x129   :  { %v275_v5 = vadd.f32 %v274_v3, %v119_v57  ;;  %v276_v6 = vpop.f32.mrb[1].mxu0  ;;  %v318_v19 = vadd.f32 %v317_v13, %v127_v2  ;;  %v319_v20 = vpop.f32.mrb[1].mxu1 }
 0x12a   :  { %v277_v10 = vadd.f32 %v276_v6, %v123_v59  ;;  %v278_v11 = vpop.f32.mrb[2].mxu0  ;;  %v320_v23 = vadd.f32 %v319_v20, %v131_v4  ;;  %v321_v24 = vpop.f32.mrb[2].mxu1  ;;  %v613_v6 = vld [vmem:[#allocation4 + $0x488] sm:$0xff] }
 0x12b   :  { %vm412_vm1 = vcmp.gt.f32.partialorder %v275_v5, 0.0  ;;  %v428_v16 = vmul.f32 0.2, %v275_v5  ;;  %v279_v17 = vadd.f32 %v278_v11, %v119_v57  ;;  %v280_v18 = vpop.f32.mrb[3].mxu0  ;;  %vm414_vm4 = vcmp.gt.f32.partialorder %v318_v19, 0.0  ;;  %v323_v28 = vpop.f32.mrb[3].mxu1 }
 0x12c   :  { %vm413_vm2 = vcmp.gt.f32.partialorder %v277_v10, 0.0  ;;  %v429_v21 = vmul.f32 0.2, %v277_v10  ;;  %v281_v22 = vadd.f32 %v280_v18, %v123_v59  ;;  %v430_v31 = vmul.f32 0.2, %v318_v19 }
 0x12d   :  { %v444_v25 = vsel %vm412_vm1, %v275_v5, %v428_v16  ;;  %vm420_vm3 = vcmp.gt.f32.partialorder %v279_v17, 0.0  ;;  %v436_v27 = vmul.f32 0.2, %v279_v17  ;;  %vm415_vm6 = vcmp.gt.f32.partialorder %v320_v23, 0.0 }
 0x12e   :  { %v445_v29 = vsel %vm413_vm2, %v277_v10, %v429_v21  ;;  %vm421_vm5 = vcmp.gt.f32.partialorder %v281_v22, 0.0  ;;  %v437_v30 = vmul.f32 0.2, %v281_v22  ;;  %v431_v33 = vmul.f32 0.2, %v320_v23  ;;  %v617_v10 = vld [vmem:[#allocation4 + $0x4a8] sm:$0xff] }
 0x12f   :  { %v452_v32 = vsel %vm420_vm3, %v279_v17, %v436_v27  ;;  %v322_v34 = vadd.f32 %v321_v24, %v127_v2  ;;  %v446_v39 = vsel %vm414_vm4, %v318_v19, %v430_v31  ;;  %v324_v43 = vadd.f32 %v323_v28, %v131_v4  ;;  %v632_v31 = vld [vmem:[#allocation4 + $0x520] sm:$0xff] }
 0x130   :  { %v7376_v35 = vpack.c.bf16 %v452_v32, %v444_v25  ;;  %v453_v36 = vsel %vm421_vm5, %v281_v22, %v437_v30  ;;  %v360_v47 = vpop.f32.mrb[4].mxu0  ;;  %v447_v50 = vsel %vm415_vm6, %v320_v23, %v431_v33  ;;  %v6208_v4 = vcombine.high %v7378_v37, %v7380_v38  ;;  %v625_v22 = vld [vmem:[#allocation4 + $0x4e8] sm:$0xff]  ;;  %v636_v33 = vld [vmem:[#allocation4 + $0x540] sm:$0xff] }
 0x131   :  { %v7382_v48 = vpack.c.bf16 %v453_v36, %v445_v29  ;;  %vm422_vm7 = vcmp.gt.f32.partialorder %v322_v34, 0.0  ;;  %v438_v51 = vmul.f32 0.2, %v322_v34  ;;  %v362_v57 = vpop.f32.mrb[5].mxu0  ;;  %vm423_vm8 = vcmp.gt.f32.partialorder %v324_v43, 0.0  ;;  %v628_v29 = vld [vmem:[#allocation4 + $0x500] sm:$0xff] }
 0x132   :  { %v439_v59 = vmul.f32 0.2, %v324_v43  ;;  %v361_v3 = vadd.f32 %v360_v47, %v135_v14  ;;  %v363_v2 = vadd.f32 %v362_v57, %v7374_v15  ;;  %v364_v5 = vpop.f32.mrb[6].mxu0  ;;  %v6210_v21 = vcombine.high %v613_v6, %v617_v10  ;;  %v629_v32 = vld [vmem:[#allocation4 + $0x508] sm:$0xff] }
 0x133   :  { %3613 = vmatprep.mubr.bf16.mxu0 %v7382_v48  ;;  %3785 = vmatprep.mubr.bf16.mxu1 %v7382_v48  ;;  %v454_v11 = vsel %vm422_vm7, %v322_v34, %v438_v51  ;;  %v365_v13 = vadd.f32 %v364_v5, %v135_v14  ;;  %v366_v16 = vpop.f32.mrb[7].mxu0  ;;  %v6216_v27 = vcombine.high %v620_v40, %v624_v44  ;;  %v640_v34 = vld [vmem:[#allocation4 + $0x560] sm:$0xff]  ;;  %v637_v36 = vld [vmem:[#allocation4 + $0x548] sm:$0xff]  ;;  %vm7188_vm2 = vmmov 0  }
 0x134   :  { %3614 = vmatmul.mubr.bf16.vlgmr.msra.gmra.mrb[8].mxu0 %v7376_v35  ;;  %3786 = vmatmul.mubr.bf16.vlgmr.msra.gmra.mrb[8].mxu1 %v7376_v35  ;;  %v7391_v17 = vpack.c.bf16 %v454_v11, %v446_v39  ;;  %v455_v18 = vsel %vm423_vm8, %v324_v43, %v439_v59  ;;  %vm416_vm9 = vcmp.gt.f32.partialorder %v361_v3, 0.0  ;;  %v432_v19 = vmul.f32 0.2, %v361_v3  ;;  %v648_v51 = vld [vmem:[#allocation4 + $0x5a0] sm:$0xff]  ;;  %v645_v57 = vld [vmem:[#allocation4 + $0x588] sm:$0xff] }
 0x135   :  { %3625 = vmatpush1.bf16.msra.mxu0 %v6191_v45  ;;  %3797 = vmatpush1.bf16.msra.mxu1 %v6193_v46  ;;  %v7400_v14 = vpack.c.bf16 %v455_v18, %v447_v50  ;;  %vm417_vm10 = vcmp.gt.f32.partialorder %v363_v2, 0.0  ;;  %v433_v20 = vmul.f32 0.2, %v363_v2  ;;  %vm424_vm11 = vcmp.gt.f32.partialorder %v365_v13, 0.0  ;;  %v621_v46 = vld [vmem:[#allocation4 + $0x4c8] sm:$0xff]  ;;  %v644_v50 = vld [vmem:[#allocation4 + $0x580] sm:$0xff] }
 0x136   :  { %3626 = vmatprep.subr.bf16.mxu0 %v6200_v8  ;;  %3798 = vmatprep.subr.bf16.mxu1 %v6202_v12  ;;  %v448_v41 = vsel %vm416_vm9, %v361_v3, %v432_v19  ;;  %v440_v45 = vmul.f32 0.2, %v365_v13  ;;  %v367_v42 = vadd.f32 %v366_v16, %v7374_v15  ;;  %v6207_v12 = vcombine.low %v7378_v37, %v7380_v38  ;;  %v641_v37 = vld [vmem:[#allocation4 + $0x568] sm:$0xff]  ;;  %v652_v5 = vld [vmem:[#allocation4 + $0x5c0] sm:$0xff] }
 0x137   :  { %3656 = vmatprep.mubr.bf16.mxu0 %v7400_v14  ;;  %3828 = vmatprep.mubr.bf16.mxu1 %v7400_v14  ;;  %v449_v23 = vsel %vm417_vm10, %v363_v2, %v433_v20  ;;  %v6209_v15 = vcombine.low %v613_v6, %v617_v10  ;;  %v6218_v28 = vcombine.high %v621_v46, %v625_v22  ;;  %v649_v59 = vld [vmem:[#allocation4 + $0x5a8] sm:$0xff]  ;;  %v8091_v6 = vsub.s32 6, %v7326_v49  ;;  %v403_v10 = vpop.f32.mrb[4].mxu1 }
 0x138   :  { %v456_v24 = vsel %vm424_vm11, %v365_v13, %v440_v45  ;;  %vm425_vm12 = vcmp.gt.f32.partialorder %v367_v42, 0.0  ;;  %v441_v8 = vmul.f32 0.2, %v367_v42  ;;  %v6217_v62 = vcombine.low %v621_v46, %v625_v22  ;;  %v405_v18 = vpop.f32.mrb[5].mxu1  ;;  %v653_v19 = vld [vmem:[#allocation4 + $0x5c8] sm:$0xff] }
 0x139   :  { %3627 = vmatpush1.bf16.msra.mxu0 %v6199_v7  ;;  %3799 = vmatpush1.bf16.msra.mxu1 %v6201_v9  ;;  %v7419_v25 = vpack.c.bf16 %v456_v24, %v448_v41  ;;  %v6224_v7 = vcombine.high %v628_v29, %v632_v31  ;;  %v6226_v9 = vcombine.high %v629_v32, %v633_v58  ;;  %v8089_v11 = vsub.s32 7, %v7326_v49  ;;  %v657_v20 = vld [vmem:[#allocation4 + $0x5e8] sm:$0xff]  ;;  %v407_v41 = vpop.f32.mrb[6].mxu1 }
 0x13a   :  { %3628 = vmatprep.subr.bf16.mxu0 %v6208_v4  ;;  %3800 = vmatprep.subr.bf16.mxu1 %v6210_v21  ;;  %v457_v30 = vsel %vm425_vm12, %v367_v42, %v441_v8  ;;  %v6223_v38 = vcombine.low %v628_v29, %v632_v31  ;;  %v6225_v39 = vcombine.low %v629_v32, %v633_v58  ;;  %v656_v4 = vld [vmem:[#allocation4 + $0x5e0] sm:$0xff]  ;;  %v409_v22 = vpop.f32.mrb[7].mxu1  ;;  %v661_v29 = vld [vmem:[#allocation4 + $0x608] sm:$0xff]  ;;  %vm5112_vm3 = vcmask 1040384  }
 0x13b   :  { %v7421_v60 = vpack.c.bf16 %v457_v30, %v449_v23  ;;  %v6232_v43 = vcombine.high %v636_v33, %v640_v34  ;;  %v6234_v47 = vcombine.high %v637_v36, %v641_v37  ;;  %v6231_v3 = vcombine.low %v636_v33, %v640_v34  ;;  %v660_v23 = vld [vmem:[#allocation4 + $0x600] sm:$0xff]  ;;  %v665_v30 = vld [vmem:[#allocation4 + $0x628] sm:$0xff] }
 0x13c   :  { %v6233_v2 = vcombine.low %v637_v36, %v641_v37  ;;  %v6240_v13 = vcombine.high %v644_v50, %v648_v51  ;;  %v6242_v16 = vcombine.high %v645_v57, %v649_v59  ;;  %v143_v21 = vrot.slane %v7328_v52, %v8091_v6  ;;  %v668_v34 = vld [vmem:[#allocation4 + $0x640] sm:$0xff] }
 0x13d   :  { %3629 = vmatpush1.bf16.msra.mxu0 %v6207_v12  ;;  %3801 = vmatpush1.bf16.msra.mxu1 %v6209_v15  ;;  %v147_v40 = vrot.slane %v7328_v52, %v8089_v11  ;;  %v6239_v45 = vcombine.low %v644_v50, %v648_v51  ;;  %v6241_v42 = vcombine.low %v645_v57, %v649_v59  ;;  %vm5113_vm4 = vcmask 1041408  }
 0x13e   :  { %3630 = vmatprep.subr.bf16.mxu0 %v6216_v27  ;;  %3802 = vmatprep.subr.bf16.mxu1 %v6218_v28  ;;  %v6247_v44 = vcombine.low %v652_v5, %v656_v4  ;;  %v6248_v46 = vcombine.high %v652_v5, %v656_v4  ;;  %v404_v24 = vadd.f32 %v403_v10, %v143_v21  ;;  %v664_v28 = vld [vmem:[#allocation4 + $0x620] sm:$0xff]  ;;  %v677_v4 = vld [vmem:[#allocation4 + $0x688] sm:$0xff]  ;;  %vm5108_vm5 = vcmask 23552  }
 0x13f   :  { %v406_v8 = vadd.f32 %v405_v18, %v147_v40  ;;  %v408_v12 = vadd.f32 %v407_v41, %v143_v21  ;;  %v6249_v15 = vcombine.low %v653_v19, %v657_v20  ;;  %v6250_v27 = vcombine.high %v653_v19, %v657_v20  ;;  %v680_v5 = vld [vmem:[#allocation4 + $0x6a0] sm:$0xff]  ;;  %v681_v10 = vld [vmem:[#allocation4 + $0x6a8] sm:$0xff] }
 0x140   :  { %v410_v52 = vadd.f32 %v409_v22, %v147_v40  ;;  %vm418_vm13 = vcmp.gt.f32.partialorder %v404_v24, 0.0  ;;  %v434_v31 = vmul.f32 0.2, %v404_v24  ;;  %v6258_v33 = vcombine.high %v661_v29, %v665_v30  ;;  %v684_v20 = vld [vmem:[#allocation4 + $0x6c0] sm:$0xff]  ;;  %v685_v40 = vld [vmem:[#allocation4 + $0x6c8] sm:$0xff] }
 0x141   :  { %3631 = vmatpush1.bf16.msra.mxu0 %v6215_v61  ;;  %3803 = vmatpush1.bf16.msra.mxu1 %v6217_v62  ;;  %vm419_vm14 = vcmp.gt.f32.partialorder %v406_v8, 0.0  ;;  %v435_v32 = vmul.f32 0.2, %v406_v8  ;;  %vm426_vm15 = vcmp.gt.f32.partialorder %v408_v12, 0.0  ;;  %v442_v58 = vmul.f32 0.2, %v408_v12 }
 0x142   :  { %3632 = vmatprep.subr.bf16.mxu0 %v6224_v7  ;;  %3804 = vmatprep.subr.bf16.mxu1 %v6226_v9  ;;  %vm427_vm1 = vcmp.gt.f32.partialorder %v410_v52, 0.0  ;;  %v443_v61 = vmul.f32 0.2, %v410_v52  ;;  %v6256_v62 = vcombine.high %v660_v23, %v664_v28  ;;  %v450_v7 = vsel %vm418_vm13, %v404_v24, %v434_v31  ;;  %v688_v21 = vld [vmem:[#allocation4 + $0x6e0] sm:$0xff]  ;;  %v689_v41 = vld [vmem:[#allocation4 + $0x6e8] sm:$0xff] }
 0x143   :  { %v451_v9 = vsel %vm419_vm14, %v406_v8, %v435_v32  ;;  %v458_v36 = vsel %vm426_vm15, %v408_v12, %v442_v58  ;;  %v6255_v51 = vcombine.low %v660_v23, %v664_v28  ;;  %v6257_v57 = vcombine.low %v661_v29, %v665_v30  ;;  %v692_v22 = vld [vmem:[#allocation4 + $0x700] sm:$0xff]  ;;  %v693_v24 = vld [vmem:[#allocation4 + $0x708] sm:$0xff] }
 0x144   :  { %v459_v37 = vsel %vm427_vm1, %v410_v52, %v443_v61  ;;  %v6274_v19 = vcombine.high %v677_v4, %v681_v10  ;;  %v696_v23 = vld [vmem:[#allocation4 + $0x720] sm:$0xff]  ;;  %v697_v8 = vld [vmem:[#allocation4 + $0x728] sm:$0xff]  ;;  %v6279_v12 = vcombine.low %v684_v20, %v688_v21  ;;  %vm6033_vm13 = vcmask 97280  }
 0x145   :  { %3633 = vmatpush1.bf16.msra.mxu0 %v6223_v38  ;;  %3805 = vmatpush1.bf16.msra.mxu1 %v6225_v39  ;;  %v672_v38 = vld [vmem:[#allocation4 + $0x660] sm:$0xff]  ;;  %v669_v39 = vld [vmem:[#allocation4 + $0x648] sm:$0xff]  ;;  %v7433_v50 = vpack.c.bf16 %v459_v37, %v451_v9  ;;  %v6290_v28 = vcombine.high %v693_v24, %v697_v8  ;;  %v6287_v32 = vcombine.low %v692_v22, %v696_v23 }
 0x146   :  { %3634 = vmatprep.subr.bf16.mxu0 %v6232_v43  ;;  %3806 = vmatprep.subr.bf16.mxu1 %v6234_v47  ;;  %v673_v43 = vld [vmem:[#allocation4 + $0x668] sm:$0xff]  ;;  %v7431_v47 = vpack.c.bf16 %v458_v36, %v450_v7  ;;  %v6264_v59 = vcombine.high %v668_v34, %v672_v38  ;;  %v700_v29 = vld [vmem:[#allocation4 + $0x740] sm:$0xff]  ;;  %v6289_v58 = vcombine.low %v693_v24, %v697_v8 }
 0x147   :  { %v704_v30 = vld [vmem:[#allocation4 + $0x760] sm:$0xff]  ;;  %v701_v52 = vld [vmem:[#allocation4 + $0x748] sm:$0xff] }
 0x148   :  { %v705_v31 = vld [vmem:[#allocation4 + $0x768] sm:$0xff]  ;;  %v6296_v61 = vcombine.high %v700_v29, %v704_v30  ;;  %v708_v7 = vld [vmem:[#allocation4 + $0x780] sm:$0xff]  ;;  %v6295_v36 = vcombine.low %v700_v29, %v704_v30 }
 0x149   :  { %3635 = vmatpush1.bf16.msra.mxu0 %v6231_v3  ;;  %3807 = vmatpush1.bf16.msra.mxu1 %v6233_v2  ;;  %v6266_v3 = vcombine.high %v669_v39, %v673_v43  ;;  %v676_v2 = vld [vmem:[#allocation4 + $0x680] sm:$0xff]  ;;  %v6297_v37 = vcombine.low %v701_v52, %v705_v31 }
 0x14a   :  { %3636 = vmatprep.subr.bf16.mxu0 %v6240_v13  ;;  %3808 = vmatprep.subr.bf16.mxu1 %v6242_v16  ;;  %v6263_v13 = vcombine.low %v668_v34, %v672_v38  ;;  %v6265_v16 = vcombine.low %v669_v39, %v673_v43  ;;  %v6272_v18 = vcombine.high %v676_v2, %v680_v5  ;;  %v712_v9 = vld [vmem:[#allocation4 + $0x7a0] sm:$0xff]  ;;  %v713_v34 = vld [vmem:[#allocation4 + $0x7a8] sm:$0xff] }
 0x14b   :  { %v6304_v38 = vcombine.high %v708_v7, %v712_v9  ;;  %v716_v43 = vld [vmem:[#allocation4 + $0x7c0] sm:$0xff] }
 0x14c   :  { %v740_v8 = vld [vmem:[#allocation4 + $0x880] sm:$0xff] }
 0x14d   :  { %3637 = vmatpush1.bf16.msra.mxu0 %v6239_v45  ;;  %3809 = vmatpush1.bf16.msra.mxu1 %v6241_v42  ;;  %v6271_v45 = vcombine.low %v676_v2, %v680_v5  ;;  %v6273_v42 = vcombine.low %v677_v4, %v681_v10  ;;  %v724_v10 = vld [vmem:[#allocation4 + $0x800] sm:$0xff] }
 0x14e   :  { %3638 = vmatprep.subr.bf16.mxu0 %v6248_v46  ;;  %3810 = vmatprep.subr.bf16.mxu1 %v6250_v27  ;;  %v6282_v46 = vcombine.high %v685_v40, %v689_v41  ;;  %v6288_v27 = vcombine.high %v692_v22, %v696_v23 }
 0x151   :  { %3639 = vmatpush1.bf16.msra.mxu0 %v6247_v44  ;;  %3811 = vmatpush1.bf16.msra.mxu1 %v6249_v15  ;;  %v6280_v44 = vcombine.high %v684_v20, %v688_v21  ;;  %v6281_v15 = vcombine.low %v685_v40, %v689_v41  ;;  %v732_v41 = vld [vmem:[#allocation4 + $0x840] sm:$0xff] }
 0x152   :  { %3640 = vmatprep.subr.bf16.mxu0 %v6256_v62  ;;  %3812 = vmatprep.subr.bf16.mxu1 %v6258_v33  ;;  %v6298_v62 = vcombine.high %v701_v52, %v705_v31  ;;  %v709_v33 = vld [vmem:[#allocation4 + $0x788] sm:$0xff]  ;;  %v748_v31 = vld [vmem:[#allocation4 + $0x8c0] sm:$0xff] }
 0x153   :  { %v6306_v39 = vcombine.high %v709_v33, %v713_v34  ;;  %v6305_v2 = vcombine.low %v709_v33, %v713_v34  ;;  %v756_v34 = vld [vmem:[#allocation4 + $0x900] sm:$0xff] }
 0x155   :  { %3641 = vmatpush1.bf16.msra.mxu0 %v6255_v51  ;;  %3813 = vmatpush1.bf16.msra.mxu1 %v6257_v57  ;;  %v720_v51 = vld [vmem:[#allocation4 + $0x7e0] sm:$0xff]  ;;  %v717_v57 = vld [vmem:[#allocation4 + $0x7c8] sm:$0xff] }
 0x156   :  { %3642 = vmatprep.subr.bf16.mxu0 %v6264_v59  ;;  %3814 = vmatprep.subr.bf16.mxu1 %v6266_v3  ;;  %v721_v59 = vld [vmem:[#allocation4 + $0x7e8] sm:$0xff]  ;;  %v6303_v3 = vcombine.low %v708_v7, %v712_v9  ;;  %v6312_v5 = vcombine.high %v716_v43, %v720_v51 }
 0x157   :  { %v6314_v4 = vcombine.high %v717_v57, %v721_v59  ;;  %v6313_v20 = vcombine.low %v717_v57, %v721_v59  ;;  %v764_v59 = vld [vmem:[#allocation4 + $0x940] sm:$0xff] }
 0x159   :  { %3643 = vmatpush1.bf16.msra.mxu0 %v6263_v13  ;;  %3815 = vmatpush1.bf16.msra.mxu1 %v6265_v16  ;;  %v728_v13 = vld [vmem:[#allocation4 + $0x820] sm:$0xff]  ;;  %v725_v16 = vld [vmem:[#allocation4 + $0x808] sm:$0xff] }
 0x15a   :  { %3644 = vmatprep.subr.bf16.mxu0 %v6272_v18  ;;  %3816 = vmatprep.subr.bf16.mxu1 %v6274_v19  ;;  %v729_v18 = vld [vmem:[#allocation4 + $0x828] sm:$0xff]  ;;  %v6311_v19 = vcombine.low %v716_v43, %v720_v51  ;;  %v6320_v21 = vcombine.high %v724_v10, %v728_v13 }
 0x15b   :  { %v6322_v40 = vcombine.high %v725_v16, %v729_v18  ;;  %v6321_v22 = vcombine.low %v725_v16, %v729_v18  ;;  %v772_v18 = vld [vmem:[#allocation4 + $0x980] sm:$0xff] }
 0x15d   :  { %3645 = vmatpush1.bf16.msra.mxu0 %v6271_v45  ;;  %3817 = vmatpush1.bf16.msra.mxu1 %v6273_v42  ;;  %v736_v45 = vld [vmem:[#allocation4 + $0x860] sm:$0xff]  ;;  %v733_v42 = vld [vmem:[#allocation4 + $0x848] sm:$0xff] }
 0x15e   :  { %3646 = vmatprep.subr.bf16.mxu0 %v6280_v44  ;;  %3818 = vmatprep.subr.bf16.mxu1 %v6282_v46  ;;  %v737_v44 = vld [vmem:[#allocation4 + $0x868] sm:$0xff]  ;;  %v6319_v46 = vcombine.low %v724_v10, %v728_v13  ;;  %v6328_v23 = vcombine.high %v732_v41, %v736_v45 }
 0x15f   :  { %v6330_v24 = vcombine.high %v733_v42, %v737_v44  ;;  %v6329_v29 = vcombine.low %v733_v42, %v737_v44  ;;  %v780_v44 = vld [vmem:[#allocation4 + $0x9c0] sm:$0xff] }
 0x161   :  { %3647 = vmatpush1.bf16.msra.mxu0 %v6279_v12  ;;  %3819 = vmatpush1.bf16.msra.mxu1 %v6281_v15  ;;  %v744_v12 = vld [vmem:[#allocation4 + $0x8a0] sm:$0xff]  ;;  %v741_v15 = vld [vmem:[#allocation4 + $0x888] sm:$0xff] }
 0x162   :  { %3648 = vmatprep.subr.bf16.mxu0 %v6288_v27  ;;  %3820 = vmatprep.subr.bf16.mxu1 %v6290_v28  ;;  %v745_v27 = vld [vmem:[#allocation4 + $0x8a8] sm:$0xff]  ;;  %v6327_v28 = vcombine.low %v732_v41, %v736_v45  ;;  %v6336_v30 = vcombine.high %v740_v8, %v744_v12 }
 0x163   :  { %v6338_v52 = vcombine.high %v741_v15, %v745_v27  ;;  %v6337_v7 = vcombine.low %v741_v15, %v745_v27  ;;  %v788_v27 = vld [vmem:[#allocation4 + $0xa00] sm:$0xff] }
 0x165   :  { %3649 = vmatpush1.bf16.msra.mxu0 %v6287_v32  ;;  %3821 = vmatpush1.bf16.msra.mxu1 %v6289_v58  ;;  %v752_v32 = vld [vmem:[#allocation4 + $0x8e0] sm:$0xff]  ;;  %v749_v58 = vld [vmem:[#allocation4 + $0x8c8] sm:$0xff] }
 0x166   :  { %3650 = vmatprep.subr.bf16.mxu0 %v6296_v61  ;;  %3822 = vmatprep.subr.bf16.mxu1 %v6298_v62  ;;  %v753_v61 = vld [vmem:[#allocation4 + $0x8e8] sm:$0xff]  ;;  %v6335_v62 = vcombine.low %v740_v8, %v744_v12  ;;  %v6344_v9 = vcombine.high %v748_v31, %v752_v32 }
 0x167   :  { %v6346_v33 = vcombine.high %v749_v58, %v753_v61  ;;  %v6345_v43 = vcombine.low %v749_v58, %v753_v61  ;;  %v796_v61 = vld [vmem:[#allocation4 + $0xa40] sm:$0xff] }
 0x169   :  { %3651 = vmatpush1.bf16.msra.mxu0 %v6295_v36  ;;  %3823 = vmatpush1.bf16.msra.mxu1 %v6297_v37  ;;  %v760_v36 = vld [vmem:[#allocation4 + $0x920] sm:$0xff]  ;;  %v757_v37 = vld [vmem:[#allocation4 + $0x908] sm:$0xff] }
 0x16a   :  { %3652 = vmatprep.subr.bf16.mxu0 %v6304_v38  ;;  %3824 = vmatprep.subr.bf16.mxu1 %v6306_v39  ;;  %v761_v38 = vld [vmem:[#allocation4 + $0x928] sm:$0xff]  ;;  %v6343_v39 = vcombine.low %v748_v31, %v752_v32  ;;  %v6352_v51 = vcombine.high %v756_v34, %v760_v36 }
 0x16b   :  { %v6354_v57 = vcombine.high %v757_v37, %v761_v38  ;;  %v6353_v10 = vcombine.low %v757_v37, %v761_v38  ;;  %v804_v38 = vld [vmem:[#allocation4 + $0xa80] sm:$0xff] }
 0x16d   :  { %3653 = vmatpush1.bf16.msra.mxu0 %v6303_v3  ;;  %3825 = vmatpush1.bf16.msra.mxu1 %v6305_v2  ;;  %v768_v3 = vld [vmem:[#allocation4 + $0x960] sm:$0xff]  ;;  %v765_v2 = vld [vmem:[#allocation4 + $0x948] sm:$0xff] }
 0x16e   :  { %3654 = vmatprep.subr.bf16.mxu0 %v6312_v5  ;;  %3826 = vmatprep.subr.bf16.mxu1 %v6314_v4  ;;  %v769_v5 = vld [vmem:[#allocation4 + $0x968] sm:$0xff]  ;;  %v6351_v4 = vcombine.low %v756_v34, %v760_v36  ;;  %v6360_v13 = vcombine.high %v764_v59, %v768_v3 }
 0x16f   :  { %v6362_v16 = vcombine.high %v765_v2, %v769_v5  ;;  %v6361_v41 = vcombine.low %v765_v2, %v769_v5  ;;  %v812_v5 = vld [vmem:[#allocation4 + $0xac0] sm:$0xff] }
 0x171   :  { %3655 = vmatpush1.bf16.msra.mxu0 %v6311_v19  ;;  %3827 = vmatpush1.bf16.msra.mxu1 %v6313_v20  ;;  %v776_v19 = vld [vmem:[#allocation4 + $0x9a0] sm:$0xff]  ;;  %v773_v20 = vld [vmem:[#allocation4 + $0x988] sm:$0xff] }
 0x172   :  { %3667 = vmatprep.subr.bf16.mxu0 %v6320_v21  ;;  %3839 = vmatprep.subr.bf16.mxu1 %v6322_v40  ;;  %v777_v21 = vld [vmem:[#allocation4 + $0x9a8] sm:$0xff]  ;;  %v6359_v40 = vcombine.low %v764_v59, %v768_v3  ;;  %v6368_v45 = vcombine.high %v772_v18, %v776_v19 }
 0x173   :  { %v6370_v42 = vcombine.high %v773_v20, %v777_v21  ;;  %v6369_v8 = vcombine.low %v773_v20, %v777_v21  ;;  %v820_v21 = vld [vmem:[#allocation4 + $0xb00] sm:$0xff] }
 0x174   :  { %3657 = vmatmul.mubr.bf16.vlgmr.msra.gmra.mrb[8].mxu0 %v7391_v17  ;;  %3829 = vmatmul.mubr.bf16.vlgmr.msra.gmra.mrb[8].mxu1 %v7391_v17 }
 0x175   :  { %3668 = vmatpush1.bf16.msra.mxu0 %v6319_v46  ;;  %3840 = vmatpush1.bf16.msra.mxu1 %v6321_v22  ;;  %v784_v46 = vld [vmem:[#allocation4 + $0x9e0] sm:$0xff]  ;;  %v781_v22 = vld [vmem:[#allocation4 + $0x9c8] sm:$0xff] }
 0x176   :  { %3669 = vmatprep.subr.bf16.mxu0 %v6328_v23  ;;  %3841 = vmatprep.subr.bf16.mxu1 %v6330_v24  ;;  %v785_v23 = vld [vmem:[#allocation4 + $0x9e8] sm:$0xff]  ;;  %v6367_v24 = vcombine.low %v772_v18, %v776_v19  ;;  %v6376_v12 = vcombine.high %v780_v44, %v784_v46 }
 0x177   :  { %3699 = vmatprep.mubr.bf16.mxu0 %v7421_v60  ;;  %3871 = vmatprep.mubr.bf16.mxu1 %v7421_v60  ;;  %v6378_v15 = vcombine.high %v781_v22, %v785_v23  ;;  %v6377_v31 = vcombine.low %v781_v22, %v785_v23  ;;  %v828_v23 = vld [vmem:[#allocation4 + $0xb40] sm:$0xff] }
 0x179   :  { %3670 = vmatpush1.bf16.msra.mxu0 %v6327_v28  ;;  %3842 = vmatpush1.bf16.msra.mxu1 %v6329_v29  ;;  %v792_v28 = vld [vmem:[#allocation4 + $0xa20] sm:$0xff]  ;;  %v789_v29 = vld [vmem:[#allocation4 + $0xa08] sm:$0xff] }
 0x17a   :  { %3671 = vmatprep.subr.bf16.mxu0 %v6336_v30  ;;  %3843 = vmatprep.subr.bf16.mxu1 %v6338_v52  ;;  %v793_v30 = vld [vmem:[#allocation4 + $0xa28] sm:$0xff]  ;;  %v6375_v52 = vcombine.low %v780_v44, %v784_v46  ;;  %v6384_v32 = vcombine.high %v788_v27, %v792_v28 }
 0x17b   :  { %v6386_v58 = vcombine.high %v789_v29, %v793_v30  ;;  %v6385_v34 = vcombine.low %v789_v29, %v793_v30  ;;  %v836_v30 = vld [vmem:[#allocation4 + $0xb80] sm:$0xff] }
 0x17d   :  { %3672 = vmatpush1.bf16.msra.mxu0 %v6335_v62  ;;  %3844 = vmatpush1.bf16.msra.mxu1 %v6337_v7  ;;  %v800_v62 = vld [vmem:[#allocation4 + $0xa60] sm:$0xff]  ;;  %v797_v7 = vld [vmem:[#allocation4 + $0xa48] sm:$0xff] }
 0x17e   :  { %3673 = vmatprep.subr.bf16.mxu0 %v6344_v9  ;;  %3845 = vmatprep.subr.bf16.mxu1 %v6346_v33  ;;  %v801_v9 = vld [vmem:[#allocation4 + $0xa68] sm:$0xff]  ;;  %v6383_v33 = vcombine.low %v788_v27, %v792_v28  ;;  %v6392_v36 = vcombine.high %v796_v61, %v800_v62 }
 0x17f   :  { %v6394_v37 = vcombine.high %v797_v7, %v801_v9  ;;  %v6393_v59 = vcombine.low %v797_v7, %v801_v9  ;;  %v844_v9 = vld [vmem:[#allocation4 + $0xbc0] sm:$0xff] }
 0x181   :  { %3674 = vmatpush1.bf16.msra.mxu0 %v6343_v39  ;;  %3846 = vmatpush1.bf16.msra.mxu1 %v6345_v43  ;;  %v808_v39 = vld [vmem:[#allocation4 + $0xaa0] sm:$0xff]  ;;  %v805_v43 = vld [vmem:[#allocation4 + $0xa88] sm:$0xff] }
 0x182   :  { %3675 = vmatprep.subr.bf16.mxu0 %v6352_v51  ;;  %3847 = vmatprep.subr.bf16.mxu1 %v6354_v57  ;;  %v809_v51 = vld [vmem:[#allocation4 + $0xaa8] sm:$0xff]  ;;  %v6391_v57 = vcombine.low %v796_v61, %v800_v62  ;;  %v6400_v3 = vcombine.high %v804_v38, %v808_v39 }
 0x183   :  { %v6402_v2 = vcombine.high %v805_v43, %v809_v51  ;;  %v6401_v18 = vcombine.low %v805_v43, %v809_v51  ;;  %v852_v51 = vld [vmem:[#allocation4 + $0xc00] sm:$0xff] }
 0x185   :  { %3676 = vmatpush1.bf16.msra.mxu0 %v6351_v4  ;;  %3848 = vmatpush1.bf16.msra.mxu1 %v6353_v10  ;;  %v816_v4 = vld [vmem:[#allocation4 + $0xae0] sm:$0xff]  ;;  %v813_v10 = vld [vmem:[#allocation4 + $0xac8] sm:$0xff] }
 0x186   :  { %3677 = vmatprep.subr.bf16.mxu0 %v6360_v13  ;;  %3849 = vmatprep.subr.bf16.mxu1 %v6362_v16  ;;  %v817_v13 = vld [vmem:[#allocation4 + $0xae8] sm:$0xff]  ;;  %v6399_v16 = vcombine.low %v804_v38, %v808_v39  ;;  %v6408_v19 = vcombine.high %v812_v5, %v816_v4 }
 0x187   :  { %v6410_v20 = vcombine.high %v813_v10, %v817_v13  ;;  %v6409_v44 = vcombine.low %v813_v10, %v817_v13  ;;  %v860_v13 = vld [vmem:[#allocation4 + $0xc40] sm:$0xff] }
 0x189   :  { %3678 = vmatpush1.bf16.msra.mxu0 %v6359_v40  ;;  %3850 = vmatpush1.bf16.msra.mxu1 %v6361_v41  ;;  %v824_v40 = vld [vmem:[#allocation4 + $0xb20] sm:$0xff]  ;;  %v821_v41 = vld [vmem:[#allocation4 + $0xb08] sm:$0xff] }
 0x18a   :  { %3679 = vmatprep.subr.bf16.mxu0 %v6368_v45  ;;  %3851 = vmatprep.subr.bf16.mxu1 %v6370_v42  ;;  %v825_v45 = vld [vmem:[#allocation4 + $0xb28] sm:$0xff]  ;;  %v6407_v42 = vcombine.low %v812_v5, %v816_v4  ;;  %v6416_v46 = vcombine.high %v820_v21, %v824_v40 }
 0x18b   :  { %v6418_v22 = vcombine.high %v821_v41, %v825_v45  ;;  %v6417_v27 = vcombine.low %v821_v41, %v825_v45  ;;  %v868_v45 = vld [vmem:[#allocation4 + $0xc80] sm:$0xff] }
 0x18d   :  { %3680 = vmatpush1.bf16.msra.mxu0 %v6367_v24  ;;  %3852 = vmatpush1.bf16.msra.mxu1 %v6369_v8  ;;  %v832_v24 = vld [vmem:[#allocation4 + $0xb60] sm:$0xff]  ;;  %v829_v8 = vld [vmem:[#allocation4 + $0xb48] sm:$0xff] }
 0x18e   :  { %3681 = vmatprep.subr.bf16.mxu0 %v6376_v12  ;;  %3853 = vmatprep.subr.bf16.mxu1 %v6378_v15  ;;  %v833_v12 = vld [vmem:[#allocation4 + $0xb68] sm:$0xff]  ;;  %v6415_v15 = vcombine.low %v820_v21, %v824_v40  ;;  %v6424_v28 = vcombine.high %v828_v23, %v832_v24 }
 0x18f   :  { %v6426_v29 = vcombine.high %v829_v8, %v833_v12  ;;  %v6425_v61 = vcombine.low %v829_v8, %v833_v12  ;;  %v876_v12 = vld [vmem:[#allocation4 + $0xcc0] sm:$0xff] }
 0x191   :  { %3682 = vmatpush1.bf16.msra.mxu0 %v6375_v52  ;;  %3854 = vmatpush1.bf16.msra.mxu1 %v6377_v31  ;;  %v840_v52 = vld [vmem:[#allocation4 + $0xba0] sm:$0xff]  ;;  %v837_v31 = vld [vmem:[#allocation4 + $0xb88] sm:$0xff] }
 0x192   :  { %3683 = vmatprep.subr.bf16.mxu0 %v6384_v32  ;;  %3855 = vmatprep.subr.bf16.mxu1 %v6386_v58  ;;  %v841_v32 = vld [vmem:[#allocation4 + $0xba8] sm:$0xff]  ;;  %v6423_v58 = vcombine.low %v828_v23, %v832_v24  ;;  %v6432_v62 = vcombine.high %v836_v30, %v840_v52 }
 0x193   :  { %v6434_v7 = vcombine.high %v837_v31, %v841_v32  ;;  %v6433_v38 = vcombine.low %v837_v31, %v841_v32  ;;  %v884_v32 = vld [vmem:[#allocation4 + $0xd00] sm:$0xff] }
 0x195   :  { %3684 = vmatpush1.bf16.msra.mxu0 %v6383_v33  ;;  %3856 = vmatpush1.bf16.msra.mxu1 %v6385_v34  ;;  %v848_v33 = vld [vmem:[#allocation4 + $0xbe0] sm:$0xff]  ;;  %v845_v34 = vld [vmem:[#allocation4 + $0xbc8] sm:$0xff] }
 0x196   :  { %3685 = vmatprep.subr.bf16.mxu0 %v6392_v36  ;;  %3857 = vmatprep.subr.bf16.mxu1 %v6394_v37  ;;  %v849_v36 = vld [vmem:[#allocation4 + $0xbe8] sm:$0xff]  ;;  %v6431_v37 = vcombine.low %v836_v30, %v840_v52  ;;  %v6440_v39 = vcombine.high %v844_v9, %v848_v33 }
 0x197   :  { %v6442_v43 = vcombine.high %v845_v34, %v849_v36  ;;  %v6441_v5 = vcombine.low %v845_v34, %v849_v36  ;;  %v892_v36 = vld [vmem:[#allocation4 + $0xd40] sm:$0xff] }
 0x199   :  { %3686 = vmatpush1.bf16.msra.mxu0 %v6391_v57  ;;  %3858 = vmatpush1.bf16.msra.mxu1 %v6393_v59  ;;  %v856_v57 = vld [vmem:[#allocation4 + $0xc20] sm:$0xff]  ;;  %v853_v59 = vld [vmem:[#allocation4 + $0xc08] sm:$0xff] }
 0x19a   :  { %3687 = vmatprep.subr.bf16.mxu0 %v6400_v3  ;;  %3859 = vmatprep.subr.bf16.mxu1 %v6402_v2  ;;  %v857_v3 = vld [vmem:[#allocation4 + $0xc28] sm:$0xff]  ;;  %v6439_v2 = vcombine.low %v844_v9, %v848_v33  ;;  %v6448_v4 = vcombine.high %v852_v51, %v856_v57 }
 0x19b   :  { %v6450_v10 = vcombine.high %v853_v59, %v857_v3  ;;  %v6449_v21 = vcombine.low %v853_v59, %v857_v3  ;;  %v900_v3 = vld [vmem:[#allocation4 + $0xd80] sm:$0xff] }
 0x19d   :  { %3688 = vmatpush1.bf16.msra.mxu0 %v6399_v16  ;;  %3860 = vmatpush1.bf16.msra.mxu1 %v6401_v18  ;;  %v864_v16 = vld [vmem:[#allocation4 + $0xc60] sm:$0xff]  ;;  %v861_v18 = vld [vmem:[#allocation4 + $0xc48] sm:$0xff] }
 0x19e   :  { %3689 = vmatprep.subr.bf16.mxu0 %v6408_v19  ;;  %3861 = vmatprep.subr.bf16.mxu1 %v6410_v20  ;;  %v865_v19 = vld [vmem:[#allocation4 + $0xc68] sm:$0xff]  ;;  %v6447_v20 = vcombine.low %v852_v51, %v856_v57  ;;  %v6456_v40 = vcombine.high %v860_v13, %v864_v16 }
 0x19f   :  { %v6458_v41 = vcombine.high %v861_v18, %v865_v19  ;;  %v6457_v23 = vcombine.low %v861_v18, %v865_v19  ;;  %v908_v19 = vld [vmem:[#allocation4 + $0xdc0] sm:$0xff] }
 0x1a1   :  { %3690 = vmatpush1.bf16.msra.mxu0 %v6407_v42  ;;  %3862 = vmatpush1.bf16.msra.mxu1 %v6409_v44  ;;  %v872_v42 = vld [vmem:[#allocation4 + $0xca0] sm:$0xff]  ;;  %v869_v44 = vld [vmem:[#allocation4 + $0xc88] sm:$0xff] }
 0x1a2   :  { %3691 = vmatprep.subr.bf16.mxu0 %v6416_v46  ;;  %3863 = vmatprep.subr.bf16.mxu1 %v6418_v22  ;;  %v873_v46 = vld [vmem:[#allocation4 + $0xca8] sm:$0xff]  ;;  %v6455_v22 = vcombine.low %v860_v13, %v864_v16  ;;  %v6464_v24 = vcombine.high %v868_v45, %v872_v42 }
 0x1a3   :  { %v6466_v8 = vcombine.high %v869_v44, %v873_v46  ;;  %v6465_v30 = vcombine.low %v869_v44, %v873_v46  ;;  %v916_v46 = vld [vmem:[#allocation4 + $0xe00] sm:$0xff] }
 0x1a5   :  { %3692 = vmatpush1.bf16.msra.mxu0 %v6415_v15  ;;  %3864 = vmatpush1.bf16.msra.mxu1 %v6417_v27  ;;  %v880_v15 = vld [vmem:[#allocation4 + $0xce0] sm:$0xff]  ;;  %v877_v27 = vld [vmem:[#allocation4 + $0xcc8] sm:$0xff] }
 0x1a6   :  { %3693 = vmatprep.subr.bf16.mxu0 %v6424_v28  ;;  %3865 = vmatprep.subr.bf16.mxu1 %v6426_v29  ;;  %v881_v28 = vld [vmem:[#allocation4 + $0xce8] sm:$0xff]  ;;  %v6463_v29 = vcombine.low %v868_v45, %v872_v42  ;;  %v6472_v52 = vcombine.high %v876_v12, %v880_v15 }
 0x1a7   :  { %v6474_v31 = vcombine.high %v877_v27, %v881_v28  ;;  %v6473_v9 = vcombine.low %v877_v27, %v881_v28  ;;  %v924_v28 = vld [vmem:[#allocation4 + $0xe40] sm:$0xff] }
 0x1a9   :  { %3694 = vmatpush1.bf16.msra.mxu0 %v6423_v58  ;;  %3866 = vmatpush1.bf16.msra.mxu1 %v6425_v61  ;;  %v888_v58 = vld [vmem:[#allocation4 + $0xd20] sm:$0xff]  ;;  %v885_v61 = vld [vmem:[#allocation4 + $0xd08] sm:$0xff] }
 0x1aa   :  { %3695 = vmatprep.subr.bf16.mxu0 %v6432_v62  ;;  %3867 = vmatprep.subr.bf16.mxu1 %v6434_v7  ;;  %v889_v62 = vld [vmem:[#allocation4 + $0xd28] sm:$0xff]  ;;  %v6471_v7 = vcombine.low %v876_v12, %v880_v15  ;;  %v6480_v33 = vcombine.high %v884_v32, %v888_v58 }
 0x1ab   :  { %v6482_v34 = vcombine.high %v885_v61, %v889_v62  ;;  %v6481_v51 = vcombine.low %v885_v61, %v889_v62  ;;  %v932_v62 = vld [vmem:[#allocation4 + $0xe80] sm:$0xff] }
 0x1ad   :  { %3696 = vmatpush1.bf16.msra.mxu0 %v6431_v37  ;;  %3868 = vmatpush1.bf16.msra.mxu1 %v6433_v38  ;;  %v896_v37 = vld [vmem:[#allocation4 + $0xd60] sm:$0xff]  ;;  %v893_v38 = vld [vmem:[#allocation4 + $0xd48] sm:$0xff] }
 0x1ae   :  { %3697 = vmatprep.subr.bf16.mxu0 %v6440_v39  ;;  %3869 = vmatprep.subr.bf16.mxu1 %v6442_v43  ;;  %v897_v39 = vld [vmem:[#allocation4 + $0xd68] sm:$0xff]  ;;  %v6479_v43 = vcombine.low %v884_v32, %v888_v58  ;;  %v6488_v57 = vcombine.high %v892_v36, %v896_v37 }
 0x1af   :  { %v6490_v59 = vcombine.high %v893_v38, %v897_v39  ;;  %v6489_v13 = vcombine.low %v893_v38, %v897_v39  ;;  %v940_v39 = vld [vmem:[#allocation4 + $0xec0] sm:$0xff] }
 0x1b1   :  { %3698 = vmatpush1.bf16.msra.mxu0 %v6439_v2  ;;  %3870 = vmatpush1.bf16.msra.mxu1 %v6441_v5  ;;  %v904_v2 = vld [vmem:[#allocation4 + $0xda0] sm:$0xff]  ;;  %v901_v5 = vld [vmem:[#allocation4 + $0xd88] sm:$0xff] }
 0x1b2   :  { %3710 = vmatprep.subr.bf16.mxu0 %v6448_v4  ;;  %3882 = vmatprep.subr.bf16.mxu1 %v6450_v10  ;;  %v905_v4 = vld [vmem:[#allocation4 + $0xda8] sm:$0xff]  ;;  %v6487_v10 = vcombine.low %v892_v36, %v896_v37  ;;  %v6496_v16 = vcombine.high %v900_v3, %v904_v2 }
 0x1b3   :  { %v6498_v18 = vcombine.high %v901_v5, %v905_v4  ;;  %v6497_v45 = vcombine.low %v901_v5, %v905_v4  ;;  %v948_v4 = vld [vmem:[#allocation4 + $0xf00] sm:$0xff] }
 0x1b4   :  { %3700 = vmatmul.mubr.bf16.vlgmr.msra.gmra.mrb[8].mxu0 %v7419_v25  ;;  %3872 = vmatmul.mubr.bf16.vlgmr.msra.gmra.mrb[8].mxu1 %v7419_v25 }
 0x1b5   :  { %3711 = vmatpush1.bf16.msra.mxu0 %v6447_v20  ;;  %3883 = vmatpush1.bf16.msra.mxu1 %v6449_v21  ;;  %v912_v20 = vld [vmem:[#allocation4 + $0xde0] sm:$0xff]  ;;  %v909_v21 = vld [vmem:[#allocation4 + $0xdc8] sm:$0xff] }
 0x1b6   :  { %3712 = vmatprep.subr.bf16.mxu0 %v6456_v40  ;;  %3884 = vmatprep.subr.bf16.mxu1 %v6458_v41  ;;  %v913_v40 = vld [vmem:[#allocation4 + $0xde8] sm:$0xff]  ;;  %v6495_v41 = vcombine.low %v900_v3, %v904_v2  ;;  %v6504_v42 = vcombine.high %v908_v19, %v912_v20 }
 0x1b7   :  { %3742 = vmatprep.mubr.bf16.mxu0 %v7433_v50  ;;  %3914 = vmatprep.mubr.bf16.mxu1 %v7433_v50  ;;  %v6506_v44 = vcombine.high %v909_v21, %v913_v40  ;;  %v6505_v12 = vcombine.low %v909_v21, %v913_v40  ;;  %v956_v40 = vld [vmem:[#allocation4 + $0xf40] sm:$0xff] }
 0x1b9   :  { %3713 = vmatpush1.bf16.msra.mxu0 %v6455_v22  ;;  %3885 = vmatpush1.bf16.msra.mxu1 %v6457_v23  ;;  %v920_v22 = vld [vmem:[#allocation4 + $0xe20] sm:$0xff]  ;;  %v917_v23 = vld [vmem:[#allocation4 + $0xe08] sm:$0xff] }
 0x1ba   :  { %3714 = vmatprep.subr.bf16.mxu0 %v6464_v24  ;;  %3886 = vmatprep.subr.bf16.mxu1 %v6466_v8  ;;  %v921_v24 = vld [vmem:[#allocation4 + $0xe28] sm:$0xff]  ;;  %v6503_v8 = vcombine.low %v908_v19, %v912_v20  ;;  %v6512_v15 = vcombine.high %v916_v46, %v920_v22 }
 0x1bb   :  { %v6514_v27 = vcombine.high %v917_v23, %v921_v24  ;;  %v6513_v32 = vcombine.low %v917_v23, %v921_v24  ;;  %v964_v24 = vld [vmem:[#allocation4 + $0xf80] sm:$0xff] }
 0x1bd   :  { %3715 = vmatpush1.bf16.msra.mxu0 %v6463_v29  ;;  %3887 = vmatpush1.bf16.msra.mxu1 %v6465_v30  ;;  %v928_v29 = vld [vmem:[#allocation4 + $0xe60] sm:$0xff]  ;;  %v925_v30 = vld [vmem:[#allocation4 + $0xe48] sm:$0xff] }
 0x1be   :  { %3716 = vmatprep.subr.bf16.mxu0 %v6472_v52  ;;  %3888 = vmatprep.subr.bf16.mxu1 %v6474_v31  ;;  %v929_v52 = vld [vmem:[#allocation4 + $0xe68] sm:$0xff]  ;;  %v6511_v31 = vcombine.low %v916_v46, %v920_v22  ;;  %v6520_v58 = vcombine.high %v924_v28, %v928_v29 }
 0x1bf   :  { %v6522_v61 = vcombine.high %v925_v30, %v929_v52  ;;  %v6521_v36 = vcombine.low %v925_v30, %v929_v52  ;;  %v972_v52 = vld [vmem:[#allocation4 + $0xfc0] sm:$0xff] }
 0x1c1   :  { %3717 = vmatpush1.bf16.msra.mxu0 %v6471_v7  ;;  %3889 = vmatpush1.bf16.msra.mxu1 %v6473_v9  ;;  %v936_v7 = vld [vmem:[#allocation4 + $0xea0] sm:$0xff]  ;;  %v933_v9 = vld [vmem:[#allocation4 + $0xe88] sm:$0xff] }
 0x1c2   :  { %3718 = vmatprep.subr.bf16.mxu0 %v6480_v33  ;;  %3890 = vmatprep.subr.bf16.mxu1 %v6482_v34  ;;  %v937_v33 = vld [vmem:[#allocation4 + $0xea8] sm:$0xff]  ;;  %v6519_v34 = vcombine.low %v924_v28, %v928_v29  ;;  %v6528_v37 = vcombine.high %v932_v62, %v936_v7 }
 0x1c3   :  { %v6530_v38 = vcombine.high %v933_v9, %v937_v33  ;;  %v6529_v3 = vcombine.low %v933_v9, %v937_v33  ;;  %v470_v33 = vld [vmem:[#allocation4 + $0x10] sm:$0xff] }
 0x1c5   :  { %3719 = vmatpush1.bf16.msra.mxu0 %v6479_v43  ;;  %3891 = vmatpush1.bf16.msra.mxu1 %v6481_v51  ;;  %v944_v43 = vld [vmem:[#allocation4 + $0xee0] sm:$0xff]  ;;  %v941_v51 = vld [vmem:[#allocation4 + $0xec8] sm:$0xff] }
 0x1c6   :  { %3720 = vmatprep.subr.bf16.mxu0 %v6488_v57  ;;  %3892 = vmatprep.subr.bf16.mxu1 %v6490_v59  ;;  %v945_v57 = vld [vmem:[#allocation4 + $0xee8] sm:$0xff]  ;;  %v6527_v59 = vcombine.low %v932_v62, %v936_v7  ;;  %v6536_v2 = vcombine.high %v940_v39, %v944_v43 }
 0x1c7   :  { %v6538_v5 = vcombine.high %v941_v51, %v945_v57  ;;  %v6537_v19 = vcombine.low %v941_v51, %v945_v57  ;;  %v478_v57 = vld [vmem:[#allocation4 + $0x50] sm:$0xff] }
 0x1c9   :  { %3721 = vmatpush1.bf16.msra.mxu0 %v6487_v10  ;;  %3893 = vmatpush1.bf16.msra.mxu1 %v6489_v13  ;;  %v952_v10 = vld [vmem:[#allocation4 + $0xf20] sm:$0xff]  ;;  %v949_v13 = vld [vmem:[#allocation4 + $0xf08] sm:$0xff] }
 0x1ca   :  { %3722 = vmatprep.subr.bf16.mxu0 %v6496_v16  ;;  %3894 = vmatprep.subr.bf16.mxu1 %v6498_v18  ;;  %v953_v16 = vld [vmem:[#allocation4 + $0xf28] sm:$0xff]  ;;  %v6535_v18 = vcombine.low %v940_v39, %v944_v43  ;;  %v6544_v20 = vcombine.high %v948_v4, %v952_v10 }
 0x1cb   :  { %v6546_v21 = vcombine.high %v949_v13, %v953_v16  ;;  %v6545_v46 = vcombine.low %v949_v13, %v953_v16  ;;  %v486_v16 = vld [vmem:[#allocation4 + $0x90] sm:$0xff] }
 0x1cd   :  { %3723 = vmatpush1.bf16.msra.mxu0 %v6495_v41  ;;  %3895 = vmatpush1.bf16.msra.mxu1 %v6497_v45  ;;  %v960_v41 = vld [vmem:[#allocation4 + $0xf60] sm:$0xff]  ;;  %v957_v45 = vld [vmem:[#allocation4 + $0xf48] sm:$0xff] }
 0x1ce   :  { %3724 = vmatprep.subr.bf16.mxu0 %v6504_v42  ;;  %3896 = vmatprep.subr.bf16.mxu1 %v6506_v44  ;;  %v961_v42 = vld [vmem:[#allocation4 + $0xf68] sm:$0xff]  ;;  %v6543_v44 = vcombine.low %v948_v4, %v952_v10  ;;  %v6552_v22 = vcombine.high %v956_v40, %v960_v41 }
 0x1cf   :  { %v6554_v23 = vcombine.high %v957_v45, %v961_v42  ;;  %v6553_v28 = vcombine.low %v957_v45, %v961_v42  ;;  %v494_v42 = vld [vmem:[#allocation4 + $0xd0] sm:$0xff] }
 0x1d1   :  { %3725 = vmatpush1.bf16.msra.mxu0 %v6503_v8  ;;  %3897 = vmatpush1.bf16.msra.mxu1 %v6505_v12  ;;  %v968_v8 = vld [vmem:[#allocation4 + $0xfa0] sm:$0xff]  ;;  %v965_v12 = vld [vmem:[#allocation4 + $0xf88] sm:$0xff] }
 0x1d2   :  { %3726 = vmatprep.subr.bf16.mxu0 %v6512_v15  ;;  %3898 = vmatprep.subr.bf16.mxu1 %v6514_v27  ;;  %v969_v15 = vld [vmem:[#allocation4 + $0xfa8] sm:$0xff]  ;;  %v6551_v27 = vcombine.low %v956_v40, %v960_v41  ;;  %v6560_v29 = vcombine.high %v964_v24, %v968_v8 }
 0x1d3   :  { %v6562_v30 = vcombine.high %v965_v12, %v969_v15  ;;  %v6561_v62 = vcombine.low %v965_v12, %v969_v15  ;;  %v502_v15 = vld [vmem:[#allocation4 + $0x110] sm:$0xff] }
 0x1d5   :  { %3727 = vmatpush1.bf16.msra.mxu0 %v6511_v31  ;;  %3899 = vmatpush1.bf16.msra.mxu1 %v6513_v32  ;;  %v976_v31 = vld [vmem:[#allocation4 + $0xfe0] sm:$0xff]  ;;  %v973_v32 = vld [vmem:[#allocation4 + $0xfc8] sm:$0xff] }
 0x1d6   :  { %3728 = vmatprep.subr.bf16.mxu0 %v6520_v58  ;;  %3900 = vmatprep.subr.bf16.mxu1 %v6522_v61  ;;  %v977_v58 = vld [vmem:[#allocation4 + $0xfe8] sm:$0xff]  ;;  %v6559_v61 = vcombine.low %v964_v24, %v968_v8  ;;  %v6568_v7 = vcombine.high %v972_v52, %v976_v31 }
 0x1d7   :  { %v6570_v9 = vcombine.high %v973_v32, %v977_v58  ;;  %v6569_v39 = vcombine.low %v973_v32, %v977_v58  ;;  %v510_v32 = vld [vmem:[#allocation4 + $0x150] sm:$0xff] }
 0x1d8   :  { %v514_v58 = vld [vmem:[#allocation4 + $0x170] sm:$0xff] }
 0x1d9   :  { %3729 = vmatpush1.bf16.msra.mxu0 %v6519_v34  ;;  %3901 = vmatpush1.bf16.msra.mxu1 %v6521_v36  ;;  %v474_v34 = vld [vmem:[#allocation4 + $0x30] sm:$0xff]  ;;  %v471_v36 = vld [vmem:[#allocation4 + $0x18] sm:$0xff] }
 0x1da   :  { %3730 = vmatprep.subr.bf16.mxu0 %v6528_v37  ;;  %3902 = vmatprep.subr.bf16.mxu1 %v6530_v38  ;;  %v475_v37 = vld [vmem:[#allocation4 + $0x38] sm:$0xff]  ;;  %v6567_v38 = vcombine.low %v972_v52, %v976_v31  ;;  %v6068_v43 = vcombine.high %v470_v33, %v474_v34 }
 0x1db   :  { %v6070_v51 = vcombine.high %v471_v36, %v475_v37  ;;  %v6069_v4 = vcombine.low %v471_v36, %v475_v37  ;;  %v518_v36 = vld [vmem:[#allocation4 + $0x190] sm:$0xff] }
 0x1dc   :  { %v522_v37 = vld [vmem:[#allocation4 + $0x1b0] sm:$0xff] }
 0x1dd   :  { %3731 = vmatpush1.bf16.msra.mxu0 %v6527_v59  ;;  %3903 = vmatpush1.bf16.msra.mxu1 %v6529_v3  ;;  %v482_v59 = vld [vmem:[#allocation4 + $0x70] sm:$0xff]  ;;  %v479_v3 = vld [vmem:[#allocation4 + $0x58] sm:$0xff] }
 0x1de   :  { %3732 = vmatprep.subr.bf16.mxu0 %v6536_v2  ;;  %3904 = vmatprep.subr.bf16.mxu1 %v6538_v5  ;;  %v483_v2 = vld [vmem:[#allocation4 + $0x78] sm:$0xff]  ;;  %v6067_v5 = vcombine.low %v470_v33, %v474_v34  ;;  %v6076_v10 = vcombine.high %v478_v57, %v482_v59  ;;  %v6108_v33 = vcombine.high %v510_v32, %v514_v58 }
 0x1df   :  { %v6078_v13 = vcombine.high %v479_v3, %v483_v2  ;;  %v6077_v40 = vcombine.low %v479_v3, %v483_v2  ;;  %v526_v3 = vld [vmem:[#allocation4 + $0x1d0] sm:$0xff] }
 0x1e0   :  { %v530_v2 = vld [vmem:[#allocation4 + $0x1f0] sm:$0xff] }
 0x1e1   :  { %3733 = vmatpush1.bf16.msra.mxu0 %v6535_v18  ;;  %3905 = vmatpush1.bf16.msra.mxu1 %v6537_v19  ;;  %v490_v18 = vld [vmem:[#allocation4 + $0xb0] sm:$0xff]  ;;  %v487_v19 = vld [vmem:[#allocation4 + $0x98] sm:$0xff] }
 0x1e2   :  { %3734 = vmatprep.subr.bf16.mxu0 %v6544_v20  ;;  %3906 = vmatprep.subr.bf16.mxu1 %v6546_v21  ;;  %v491_v20 = vld [vmem:[#allocation4 + $0xb8] sm:$0xff]  ;;  %v6075_v21 = vcombine.low %v478_v57, %v482_v59  ;;  %v6084_v41 = vcombine.high %v486_v16, %v490_v18  ;;  %v6116_v57 = vcombine.high %v518_v36, %v522_v37 }
 0x1e3   :  { %v6086_v45 = vcombine.high %v487_v19, %v491_v20  ;;  %v6085_v24 = vcombine.low %v487_v19, %v491_v20  ;;  %v534_v19 = vld [vmem:[#allocation4 + $0x210] sm:$0xff] }
 0x1e4   :  { %v538_v20 = vld [vmem:[#allocation4 + $0x230] sm:$0xff] }
 0x1e5   :  { %3735 = vmatpush1.bf16.msra.mxu0 %v6543_v44  ;;  %3907 = vmatpush1.bf16.msra.mxu1 %v6545_v46  ;;  %v498_v44 = vld [vmem:[#allocation4 + $0xf0] sm:$0xff]  ;;  %v495_v46 = vld [vmem:[#allocation4 + $0xd8] sm:$0xff] }
 0x1e6   :  { %3736 = vmatprep.subr.bf16.mxu0 %v6552_v22  ;;  %3908 = vmatprep.subr.bf16.mxu1 %v6554_v23  ;;  %v499_v22 = vld [vmem:[#allocation4 + $0xf8] sm:$0xff]  ;;  %v6083_v23 = vcombine.low %v486_v16, %v490_v18  ;;  %v6092_v8 = vcombine.high %v494_v42, %v498_v44  ;;  %v6124_v16 = vcombine.high %v526_v3, %v530_v2 }
 0x1e7   :  { %v6094_v12 = vcombine.high %v495_v46, %v499_v22 }
 0x1e9   :  { %3737 = vmatpush1.bf16.msra.mxu0 %v6551_v27  ;;  %3909 = vmatpush1.bf16.msra.mxu1 %v6553_v28  ;;  %v506_v27 = vld [vmem:[#allocation4 + $0x130] sm:$0xff]  ;;  %v507_v28 = vld [vmem:[#allocation4 + $0x138] sm:$0xff] }
 0x1ea   :  { %3738 = vmatprep.subr.bf16.mxu0 %v6560_v29  ;;  %3910 = vmatprep.subr.bf16.mxu1 %v6562_v30  ;;  %v6091_v29 = vcombine.low %v494_v42, %v498_v44  ;;  %v6093_v30 = vcombine.low %v495_v46, %v499_v22  ;;  %v6100_v52 = vcombine.high %v502_v15, %v506_v27  ;;  %v542_v46 = vld [vmem:[#allocation4 + $0x250] sm:$0xff] }
 0x1eb   :  { %v6132_v42 = vcombine.high %v534_v19, %v538_v20  ;;  %v546_v22 = vld [vmem:[#allocation4 + $0x270] sm:$0xff] }
 0x1ed   :  { %3739 = vmatpush1.bf16.msra.mxu0 %v6559_v61  ;;  %3911 = vmatpush1.bf16.msra.mxu1 %v6561_v62  ;;  %v511_v61 = vld [vmem:[#allocation4 + $0x158] sm:$0xff] }
 0x1ee   :  { %3740 = vmatprep.subr.bf16.mxu0 %v6568_v7  ;;  %3912 = vmatprep.subr.bf16.mxu1 %v6570_v9  ;;  %v515_v62 = vld [vmem:[#allocation4 + $0x178] sm:$0xff]  ;;  %v6099_v7 = vcombine.low %v502_v15, %v506_v27  ;;  %v6140_v15 = vcombine.high %v542_v46, %v546_v22 }
 0x1ef   :  { %v6110_v34 = vcombine.high %v511_v61, %v515_v62 }
 0x1f1   :  { %3741 = vmatpush1.bf16.msra.mxu0 %v6567_v38  ;;  %3913 = vmatpush1.bf16.msra.mxu1 %v6569_v39  ;;  %v519_v38 = vld [vmem:[#allocation4 + $0x198] sm:$0xff] }
 0x1f2   :  { %3925 = vmatprep.subr.bf16.mxu0 %v6068_v43  ;;  %4097 = vmatprep.subr.bf16.mxu1 %v6070_v51  ;;  %v523_v39 = vld [vmem:[#allocation4 + $0x1b8] sm:$0xff]  ;;  %v6107_v43 = vcombine.low %v510_v32, %v514_v58  ;;  %v6109_v51 = vcombine.low %v511_v61, %v515_v62  ;;  %v558_v61 = vld [vmem:[#allocation4 + $0x2d0] sm:$0xff] }
 0x1f3   :  { %v6118_v59 = vcombine.high %v519_v38, %v523_v39  ;;  %v562_v62 = vld [vmem:[#allocation4 + $0x2f0] sm:$0xff] }
 0x1f4   :  { %3743 = vmatmul.mubr.bf16.vlgmr.msra.gmra.mrb[8].mxu0 %v7431_v47  ;;  %3915 = vmatmul.mubr.bf16.vlgmr.msra.gmra.mrb[8].mxu1 %v7431_v47 }
 0x1f5   :  { %3926 = vmatpush1.bf16.msra.mxu0 %v6067_v5  ;;  %3957 = vmatprep.mubr.bf16.mxu0 %v7382_v48  ;;  %v527_v5 = vld [vmem:[#allocation4 + $0x1d8] sm:$0xff] }
 0x1f6   :  { %4098 = vmatpush1.bf16.msra.mxu1 %v6069_v4  ;;  %4129 = vmatprep.mubr.bf16.mxu1 %v7382_v48  ;;  %v503_v48 = vld [vmem:[#allocation4 + $0x118] sm:$0xff] }
 0x1f7   :  { %3927 = vmatprep.subr.bf16.mxu0 %v6076_v10  ;;  %4099 = vmatprep.subr.bf16.mxu1 %v6078_v13  ;;  %v6102_v31 = vcombine.high %v503_v48, %v507_v28  ;;  %v6101_v9 = vcombine.low %v503_v48, %v507_v28  ;;  %v531_v4 = vld [vmem:[#allocation4 + $0x1f8] sm:$0xff]  ;;  %v6115_v10 = vcombine.low %v518_v36, %v522_v37  ;;  %v550_v48 = vld [vmem:[#allocation4 + $0x290] sm:$0xff] }
 0x1f8   :  { %v6117_v13 = vcombine.low %v519_v38, %v523_v39  ;;  %v6126_v18 = vcombine.high %v527_v5, %v531_v4  ;;  %v554_v28 = vld [vmem:[#allocation4 + $0x2b0] sm:$0xff]  ;;  %v6156_v36 = vcombine.high %v558_v61, %v562_v62 }
 0x1f9   :  { %3928 = vmatpush1.bf16.msra.mxu0 %v6075_v21  ;;  %v535_v21 = vld [vmem:[#allocation4 + $0x218] sm:$0xff]  ;;  %v6148_v32 = vcombine.high %v550_v48, %v554_v28  ;;  %v566_v38 = vld [vmem:[#allocation4 + $0x310] sm:$0xff] }
 0x1fa   :  { %4100 = vmatpush1.bf16.msra.mxu1 %v6077_v40  ;;  %3929 = vmatprep.subr.bf16.mxu0 %v6084_v41  ;;  %v539_v40 = vld [vmem:[#allocation4 + $0x238] sm:$0xff]  ;;  %v6123_v41 = vcombine.low %v526_v3, %v530_v2  ;;  %v570_v39 = vld [vmem:[#allocation4 + $0x330] sm:$0xff] }
 0x1fb   :  { %4101 = vmatprep.subr.bf16.mxu1 %v6086_v45  ;;  %v6125_v45 = vcombine.low %v527_v5, %v531_v4  ;;  %v6134_v44 = vcombine.high %v535_v21, %v539_v40  ;;  %v6164_v3 = vcombine.high %v566_v38, %v570_v39  ;;  %v574_v5 = vld [vmem:[#allocation4 + $0x350] sm:$0xff] }
 0x1fc   :  { %v578_v4 = vld [vmem:[#allocation4 + $0x370] sm:$0xff] }
 0x1fd   :  { %3930 = vmatpush1.bf16.msra.mxu0 %v6083_v23  ;;  %v543_v23 = vld [vmem:[#allocation4 + $0x258] sm:$0xff] }
 0x1fe   :  { %4102 = vmatpush1.bf16.msra.mxu1 %v6085_v24  ;;  %3931 = vmatprep.subr.bf16.mxu0 %v6092_v8  ;;  %v547_v24 = vld [vmem:[#allocation4 + $0x278] sm:$0xff]  ;;  %v6131_v8 = vcombine.low %v534_v19, %v538_v20  ;;  %v6172_v19 = vcombine.high %v574_v5, %v578_v4 }
 0x1ff   :  { %4103 = vmatprep.subr.bf16.mxu1 %v6094_v12  ;;  %v6133_v12 = vcombine.low %v535_v21, %v539_v40  ;;  %v6142_v27 = vcombine.high %v543_v23, %v547_v24  ;;  %v582_v21 = vld [vmem:[#allocation4 + $0x390] sm:$0xff] }
 0x200   :  { %v586_v40 = vld [vmem:[#allocation4 + $0x3b0] sm:$0xff] }
 0x201   :  { %3932 = vmatpush1.bf16.msra.mxu0 %v6091_v29  ;;  %v551_v29 = vld [vmem:[#allocation4 + $0x298] sm:$0xff] }
 0x202   :  { %4104 = vmatpush1.bf16.msra.mxu1 %v6093_v30  ;;  %3933 = vmatprep.subr.bf16.mxu0 %v6100_v52  ;;  %v555_v30 = vld [vmem:[#allocation4 + $0x2b8] sm:$0xff]  ;;  %v6139_v52 = vcombine.low %v542_v46, %v546_v22  ;;  %v6180_v46 = vcombine.high %v582_v21, %v586_v40 }
 0x203   :  { %4105 = vmatprep.subr.bf16.mxu1 %v6102_v31  ;;  %v6141_v31 = vcombine.low %v543_v23, %v547_v24  ;;  %v6150_v58 = vcombine.high %v551_v29, %v555_v30  ;;  %v590_v23 = vld [vmem:[#allocation4 + $0x3d0] sm:$0xff] }
 0x204   :  { %v594_v24 = vld [vmem:[#allocation4 + $0x3f0] sm:$0xff] }
 0x205   :  { %3934 = vmatpush1.bf16.msra.mxu0 %v6099_v7  ;;  %v559_v7 = vld [vmem:[#allocation4 + $0x2d8] sm:$0xff] }
 0x206   :  { %4106 = vmatpush1.bf16.msra.mxu1 %v6101_v9  ;;  %3935 = vmatprep.subr.bf16.mxu0 %v6108_v33  ;;  %v563_v9 = vld [vmem:[#allocation4 + $0x2f8] sm:$0xff]  ;;  %v6147_v33 = vcombine.low %v550_v48, %v554_v28  ;;  %v6188_v48 = vcombine.high %v590_v23, %v594_v24 }
 0x207   :  { %4107 = vmatprep.subr.bf16.mxu1 %v6110_v34  ;;  %v6149_v34 = vcombine.low %v551_v29, %v555_v30  ;;  %v6158_v37 = vcombine.high %v559_v7, %v563_v9  ;;  %v598_v29 = vld [vmem:[#allocation4 + $0x410] sm:$0xff] }
 0x208   :  { %v602_v30 = vld [vmem:[#allocation4 + $0x430] sm:$0xff] }
 0x209   :  { %3936 = vmatpush1.bf16.msra.mxu0 %v6107_v43  ;;  %v567_v43 = vld [vmem:[#allocation4 + $0x318] sm:$0xff] }
 0x20a   :  { %4108 = vmatpush1.bf16.msra.mxu1 %v6109_v51  ;;  %3937 = vmatprep.subr.bf16.mxu0 %v6116_v57  ;;  %v571_v51 = vld [vmem:[#allocation4 + $0x338] sm:$0xff]  ;;  %v6155_v57 = vcombine.low %v558_v61, %v562_v62  ;;  %v6196_v61 = vcombine.high %v598_v29, %v602_v30 }
 0x20b   :  { %4109 = vmatprep.subr.bf16.mxu1 %v6118_v59  ;;  %v6157_v59 = vcombine.low %v559_v7, %v563_v9  ;;  %v6166_v2 = vcombine.high %v567_v43, %v571_v51  ;;  %v606_v7 = vld [vmem:[#allocation4 + $0x450] sm:$0xff] }
 0x20c   :  { %v610_v9 = vld [vmem:[#allocation4 + $0x470] sm:$0xff] }
 0x20d   :  { %3938 = vmatpush1.bf16.msra.mxu0 %v6115_v10  ;;  %v575_v10 = vld [vmem:[#allocation4 + $0x358] sm:$0xff] }
 0x20e   :  { %4110 = vmatpush1.bf16.msra.mxu1 %v6117_v13  ;;  %3939 = vmatprep.subr.bf16.mxu0 %v6124_v16  ;;  %v579_v13 = vld [vmem:[#allocation4 + $0x378] sm:$0xff]  ;;  %v6163_v16 = vcombine.low %v566_v38, %v570_v39  ;;  %v6204_v38 = vcombine.high %v606_v7, %v610_v9  ;;  %v614_v39 = vld [vmem:[#allocation4 + $0x490] sm:$0xff] }
 0x20f   :  { %4111 = vmatprep.subr.bf16.mxu1 %v6126_v18  ;;  %v6165_v18 = vcombine.low %v567_v43, %v571_v51  ;;  %v6174_v20 = vcombine.high %v575_v10, %v579_v13  ;;  %v618_v43 = vld [vmem:[#allocation4 + $0x4b0] sm:$0xff] }
 0x211   :  { %3940 = vmatpush1.bf16.msra.mxu0 %v6123_v41  ;;  %v583_v41 = vld [vmem:[#allocation4 + $0x398] sm:$0xff] }
 0x212   :  { %4112 = vmatpush1.bf16.msra.mxu1 %v6125_v45  ;;  %3941 = vmatprep.subr.bf16.mxu0 %v6132_v42  ;;  %v587_v45 = vld [vmem:[#allocation4 + $0x3b8] sm:$0xff]  ;;  %v6171_v42 = vcombine.low %v574_v5, %v578_v4  ;;  %v6212_v5 = vcombine.high %v614_v39, %v618_v43 }
 0x213   :  { %4113 = vmatprep.subr.bf16.mxu1 %v6134_v44  ;;  %v6173_v44 = vcombine.low %v575_v10, %v579_v13  ;;  %v6182_v22 = vcombine.high %v583_v41, %v587_v45  ;;  %v622_v10 = vld [vmem:[#allocation4 + $0x4d0] sm:$0xff] }
 0x214   :  { %v626_v13 = vld [vmem:[#allocation4 + $0x4f0] sm:$0xff] }
 0x215   :  { %3942 = vmatpush1.bf16.msra.mxu0 %v6131_v8  ;;  %v591_v8 = vld [vmem:[#allocation4 + $0x3d8] sm:$0xff] }
 0x216   :  { %4114 = vmatpush1.bf16.msra.mxu1 %v6133_v12  ;;  %3943 = vmatprep.subr.bf16.mxu0 %v6140_v15  ;;  %v595_v12 = vld [vmem:[#allocation4 + $0x3f8] sm:$0xff]  ;;  %v6179_v15 = vcombine.low %v582_v21, %v586_v40  ;;  %v630_v40 = vld [vmem:[#allocation4 + $0x510] sm:$0xff] }
 0x217   :  { %4115 = vmatprep.subr.bf16.mxu1 %v6142_v27  ;;  %v6181_v27 = vcombine.low %v583_v41, %v587_v45  ;;  %v6190_v28 = vcombine.high %v591_v8, %v595_v12  ;;  %v634_v41 = vld [vmem:[#allocation4 + $0x530] sm:$0xff]  ;;  %v631_v45 = vld [vmem:[#allocation4 + $0x518] sm:$0xff] }
 0x219   :  { %3944 = vmatpush1.bf16.msra.mxu0 %v6139_v52  ;;  %v599_v52 = vld [vmem:[#allocation4 + $0x418] sm:$0xff] }
 0x21a   :  { %4116 = vmatpush1.bf16.msra.mxu1 %v6141_v31  ;;  %3945 = vmatprep.subr.bf16.mxu0 %v6148_v32  ;;  %v603_v31 = vld [vmem:[#allocation4 + $0x438] sm:$0xff]  ;;  %v6187_v32 = vcombine.low %v590_v23, %v594_v24  ;;  %v638_v23 = vld [vmem:[#allocation4 + $0x550] sm:$0xff] }
 0x21b   :  { %4117 = vmatprep.subr.bf16.mxu1 %v6150_v58  ;;  %v6189_v58 = vcombine.low %v591_v8, %v595_v12  ;;  %v6198_v62 = vcombine.high %v599_v52, %v603_v31  ;;  %v642_v24 = vld [vmem:[#allocation4 + $0x570] sm:$0xff]  ;;  %v639_v8 = vld [vmem:[#allocation4 + $0x558] sm:$0xff] }
 0x21c   :  { %v643_v12 = vld [vmem:[#allocation4 + $0x578] sm:$0xff] }
 0x21d   :  { %3946 = vmatpush1.bf16.msra.mxu0 %v6147_v33  ;;  %v6195_v33 = vcombine.low %v598_v29, %v602_v30  ;;  %v646_v29 = vld [vmem:[#allocation4 + $0x590] sm:$0xff] }
 0x21e   :  { %4118 = vmatpush1.bf16.msra.mxu1 %v6149_v34  ;;  %3947 = vmatprep.subr.bf16.mxu0 %v6156_v36  ;;  %v607_v34 = vld [vmem:[#allocation4 + $0x458] sm:$0xff]  ;;  %v650_v30 = vld [vmem:[#allocation4 + $0x5b0] sm:$0xff] }
 0x21f   :  { %4119 = vmatprep.subr.bf16.mxu1 %v6158_v37  ;;  %v611_v36 = vld [vmem:[#allocation4 + $0x478] sm:$0xff]  ;;  %v6197_v37 = vcombine.low %v599_v52, %v603_v31 }
 0x220   :  { %v6206_v51 = vcombine.high %v607_v34, %v611_v36  ;;  %v647_v52 = vld [vmem:[#allocation4 + $0x598] sm:$0xff] }
 0x221   :  { %3948 = vmatpush1.bf16.msra.mxu0 %v6155_v57  ;;  %v615_v57 = vld [vmem:[#allocation4 + $0x498] sm:$0xff] }
 0x222   :  { %4120 = vmatpush1.bf16.msra.mxu1 %v6157_v59  ;;  %3949 = vmatprep.subr.bf16.mxu0 %v6164_v3  ;;  %v619_v59 = vld [vmem:[#allocation4 + $0x4b8] sm:$0xff]  ;;  %v6203_v3 = vcombine.low %v606_v7, %v610_v9  ;;  %v654_v7 = vld [vmem:[#allocation4 + $0x5d0] sm:$0xff] }
 0x223   :  { %4121 = vmatprep.subr.bf16.mxu1 %v6166_v2  ;;  %v6205_v2 = vcombine.low %v607_v34, %v611_v36  ;;  %v6214_v4 = vcombine.high %v615_v57, %v619_v59  ;;  %v651_v31 = vld [vmem:[#allocation4 + $0x5b8] sm:$0xff]  ;;  %v658_v9 = vld [vmem:[#allocation4 + $0x5f0] sm:$0xff]  ;;  %v6243_v36 = vcombine.low %v646_v29, %v650_v30 }
 0x224   :  { %v659_v34 = vld [vmem:[#allocation4 + $0x5f8] sm:$0xff] }
 0x225   :  { %3950 = vmatpush1.bf16.msra.mxu0 %v6163_v16  ;;  %v623_v16 = vld [vmem:[#allocation4 + $0x4d8] sm:$0xff] }
 0x226   :  { %4122 = vmatpush1.bf16.msra.mxu1 %v6165_v18  ;;  %3951 = vmatprep.subr.bf16.mxu0 %v6172_v19  ;;  %v627_v18 = vld [vmem:[#allocation4 + $0x4f8] sm:$0xff]  ;;  %v6211_v19 = vcombine.low %v614_v39, %v618_v43  ;;  %v662_v43 = vld [vmem:[#allocation4 + $0x610] sm:$0xff] }
 0x227   :  { %4123 = vmatprep.subr.bf16.mxu1 %v6174_v20  ;;  %v6220_v20 = vcombine.high %v622_v10, %v626_v13  ;;  %v6222_v21 = vcombine.high %v623_v16, %v627_v18 }
 0x229   :  { %3952 = vmatpush1.bf16.msra.mxu0 %v6171_v42  ;;  %v635_v42 = vld [vmem:[#allocation4 + $0x538] sm:$0xff] }
 0x22a   :  { %4124 = vmatpush1.bf16.msra.mxu1 %v6173_v44  ;;  %3953 = vmatprep.subr.bf16.mxu0 %v6180_v46  ;;  %v6221_v44 = vcombine.low %v623_v16, %v627_v18  ;;  %v6228_v46 = vcombine.high %v630_v40, %v634_v41  ;;  %v671_v16 = vld [vmem:[#allocation4 + $0x658] sm:$0xff] }
 0x22b   :  { %4125 = vmatprep.subr.bf16.mxu1 %v6182_v22  ;;  %v6230_v22 = vcombine.high %v631_v45, %v635_v42  ;;  %v675_v18 = vld [vmem:[#allocation4 + $0x678] sm:$0xff] }
 0x22d   :  { %3954 = vmatpush1.bf16.msra.mxu0 %v6179_v15  ;;  %v6227_v15 = vcombine.low %v630_v40, %v634_v41  ;;  %v678_v40 = vld [vmem:[#allocation4 + $0x690] sm:$0xff] }
 0x22e   :  { %4126 = vmatpush1.bf16.msra.mxu1 %v6181_v27  ;;  %3955 = vmatprep.subr.bf16.mxu0 %v6188_v48  ;;  %v6229_v27 = vcombine.low %v631_v45, %v635_v42  ;;  %v6236_v48 = vcombine.high %v638_v23, %v642_v24  ;;  %v682_v41 = vld [vmem:[#allocation4 + $0x6b0] sm:$0xff]  ;;  %v679_v45 = vld [vmem:[#allocation4 + $0x698] sm:$0xff] }
 0x22f   :  { %4127 = vmatprep.subr.bf16.mxu1 %v6190_v28  ;;  %v6238_v28 = vcombine.high %v639_v8, %v643_v12  ;;  %v683_v42 = vld [vmem:[#allocation4 + $0x6b8] sm:$0xff] }
 0x231   :  { %3956 = vmatpush1.bf16.msra.mxu0 %v6187_v32  ;;  %v6235_v32 = vcombine.low %v638_v23, %v642_v24  ;;  %v686_v23 = vld [vmem:[#allocation4 + $0x6d0] sm:$0xff] }
 0x232   :  { %4128 = vmatpush1.bf16.msra.mxu1 %v6189_v58  ;;  %3968 = vmatprep.subr.bf16.mxu0 %v6196_v61  ;;  %v6237_v58 = vcombine.low %v639_v8, %v643_v12  ;;  %v6244_v61 = vcombine.high %v646_v29, %v650_v30  ;;  %v690_v24 = vld [vmem:[#allocation4 + $0x6f0] sm:$0xff]  ;;  %v687_v8 = vld [vmem:[#allocation4 + $0x6d8] sm:$0xff] }
 0x233   :  { %4140 = vmatprep.subr.bf16.mxu1 %v6198_v62  ;;  %v6246_v62 = vcombine.high %v647_v52, %v651_v31  ;;  %v691_v12 = vld [vmem:[#allocation4 + $0x6f8] sm:$0xff]  ;;  %v694_v29 = vld [vmem:[#allocation4 + $0x710] sm:$0xff] }
 0x234   :  { %3958 = vmatmul.mubr.bf16.vlgmr.msra.gmra.mrb[12].mxu0 %v7376_v35  ;;  %v698_v30 = vld [vmem:[#allocation4 + $0x730] sm:$0xff] }
 0x235   :  { %4130 = vmatmul.mubr.bf16.vlgmr.msra.gmra.mrb[12].mxu1 %v7376_v35  ;;  %3969 = vmatpush1.bf16.msra.mxu0 %v6195_v33  ;;  %v6213_v35 = vcombine.low %v615_v57, %v619_v59  ;;  %v655_v33 = vld [vmem:[#allocation4 + $0x5d8] sm:$0xff] }
 0x236   :  { %4000 = vmatprep.mubr.bf16.mxu0 %v7400_v14  ;;  %4141 = vmatpush1.bf16.msra.mxu1 %v6197_v37  ;;  %v6245_v37 = vcombine.low %v647_v52, %v651_v31  ;;  %v6254_v39 = vcombine.high %v655_v33, %v659_v34  ;;  %v663_v57 = vld [vmem:[#allocation4 + $0x618] sm:$0xff] }
 0x237   :  { %4172 = vmatprep.mubr.bf16.mxu1 %v7400_v14  ;;  %3970 = vmatprep.subr.bf16.mxu0 %v6204_v38  ;;  %v6219_v14 = vcombine.low %v622_v10, %v626_v13  ;;  %v6252_v38 = vcombine.high %v654_v7, %v658_v9  ;;  %v667_v59 = vld [vmem:[#allocation4 + $0x638] sm:$0xff]  ;;  %v670_v10 = vld [vmem:[#allocation4 + $0x650] sm:$0xff] }
 0x238   :  { %4142 = vmatprep.subr.bf16.mxu1 %v6206_v51  ;;  %v666_v51 = vld [vmem:[#allocation4 + $0x630] sm:$0xff]  ;;  %v695_v52 = vld [vmem:[#allocation4 + $0x718] sm:$0xff] }
 0x239   :  { %3971 = vmatpush1.bf16.msra.mxu0 %v6203_v3  ;;  %v6251_v3 = vcombine.low %v654_v7, %v658_v9  ;;  %v674_v13 = vld [vmem:[#allocation4 + $0x670] sm:$0xff]  ;;  %v699_v31 = vld [vmem:[#allocation4 + $0x738] sm:$0xff] }
 0x23a   :  { %4143 = vmatpush1.bf16.msra.mxu1 %v6205_v2  ;;  %3972 = vmatprep.subr.bf16.mxu0 %v6212_v5  ;;  %v6253_v2 = vcombine.low %v655_v33, %v659_v34  ;;  %v6260_v5 = vcombine.high %v662_v43, %v666_v51  ;;  %v702_v7 = vld [vmem:[#allocation4 + $0x750] sm:$0xff]  ;;  %v703_v33 = vld [vmem:[#allocation4 + $0x758] sm:$0xff] }
 0x23b   :  { %4144 = vmatprep.subr.bf16.mxu1 %v6214_v4  ;;  %v6262_v4 = vcombine.high %v663_v57, %v667_v59  ;;  %v706_v9 = vld [vmem:[#allocation4 + $0x770] sm:$0xff]  ;;  %v707_v34 = vld [vmem:[#allocation4 + $0x778] sm:$0xff] }
 0x23d   :  { %3973 = vmatpush1.bf16.msra.mxu0 %v6211_v19  ;;  %v6259_v19 = vcombine.low %v662_v43, %v666_v51  ;;  %v710_v43 = vld [vmem:[#allocation4 + $0x790] sm:$0xff] }
 0x23e   :  { %4145 = vmatpush1.bf16.msra.mxu1 %v6213_v35  ;;  %3974 = vmatprep.subr.bf16.mxu0 %v6220_v20  ;;  %v6261_v35 = vcombine.low %v663_v57, %v667_v59  ;;  %v6268_v20 = vcombine.high %v670_v10, %v674_v13  ;;  %v714_v51 = vld [vmem:[#allocation4 + $0x7b0] sm:$0xff]  ;;  %v711_v57 = vld [vmem:[#allocation4 + $0x798] sm:$0xff] }
 0x23f   :  { %4146 = vmatprep.subr.bf16.mxu1 %v6222_v21  ;;  %v6270_v21 = vcombine.high %v671_v16, %v675_v18  ;;  %v715_v59 = vld [vmem:[#allocation4 + $0x7b8] sm:$0xff] }
 0x241   :  { %3975 = vmatpush1.bf16.msra.mxu0 %v6219_v14  ;;  %v6267_v14 = vcombine.low %v670_v10, %v674_v13  ;;  %v718_v10 = vld [vmem:[#allocation4 + $0x7d0] sm:$0xff] }
 0x242   :  { %4147 = vmatpush1.bf16.msra.mxu1 %v6221_v44  ;;  %3976 = vmatprep.subr.bf16.mxu0 %v6228_v46  ;;  %v6269_v44 = vcombine.low %v671_v16, %v675_v18  ;;  %v6276_v46 = vcombine.high %v678_v40, %v682_v41  ;;  %v722_v13 = vld [vmem:[#allocation4 + $0x7f0] sm:$0xff]  ;;  %v719_v16 = vld [vmem:[#allocation4 + $0x7d8] sm:$0xff] }
 0x243   :  { %4148 = vmatprep.subr.bf16.mxu1 %v6230_v22  ;;  %v6278_v22 = vcombine.high %v679_v45, %v683_v42  ;;  %v723_v18 = vld [vmem:[#allocation4 + $0x7f8] sm:$0xff] }
 0x245   :  { %3977 = vmatpush1.bf16.msra.mxu0 %v6227_v15  ;;  %v6275_v15 = vcombine.low %v678_v40, %v682_v41  ;;  %v726_v40 = vld [vmem:[#allocation4 + $0x810] sm:$0xff] }
 0x246   :  { %4149 = vmatpush1.bf16.msra.mxu1 %v6229_v27  ;;  %3978 = vmatprep.subr.bf16.mxu0 %v6236_v48  ;;  %v6277_v27 = vcombine.low %v679_v45, %v683_v42  ;;  %v6284_v48 = vcombine.high %v686_v23, %v690_v24  ;;  %v730_v41 = vld [vmem:[#allocation4 + $0x830] sm:$0xff]  ;;  %v727_v45 = vld [vmem:[#allocation4 + $0x818] sm:$0xff] }
 0x247   :  { %4150 = vmatprep.subr.bf16.mxu1 %v6238_v28  ;;  %v6286_v28 = vcombine.high %v687_v8, %v691_v12  ;;  %v731_v42 = vld [vmem:[#allocation4 + $0x838] sm:$0xff] }
 0x249   :  { %3979 = vmatpush1.bf16.msra.mxu0 %v6235_v32  ;;  %v6283_v32 = vcombine.low %v686_v23, %v690_v24  ;;  %v734_v23 = vld [vmem:[#allocation4 + $0x850] sm:$0xff] }
 0x24a   :  { %4151 = vmatpush1.bf16.msra.mxu1 %v6237_v58  ;;  %3980 = vmatprep.subr.bf16.mxu0 %v6244_v61  ;;  %v6285_v58 = vcombine.low %v687_v8, %v691_v12  ;;  %v6292_v61 = vcombine.high %v694_v29, %v698_v30  ;;  %v738_v24 = vld [vmem:[#allocation4 + $0x870] sm:$0xff]  ;;  %v6323_v8 = vcombine.low %v726_v40, %v730_v41  ;;  %v735_v12 = vld [vmem:[#allocation4 + $0x858] sm:$0xff] }
 0x24b   :  { %4152 = vmatprep.subr.bf16.mxu1 %v6246_v62  ;;  %v6294_v62 = vcombine.high %v695_v52, %v699_v31 }
 0x24d   :  { %3981 = vmatpush1.bf16.msra.mxu0 %v6243_v36  ;;  %v6291_v36 = vcombine.low %v694_v29, %v698_v30  ;;  %v746_v29 = vld [vmem:[#allocation4 + $0x8b0] sm:$0xff] }
 0x24e   :  { %4153 = vmatpush1.bf16.msra.mxu1 %v6245_v37  ;;  %3982 = vmatprep.subr.bf16.mxu0 %v6252_v38  ;;  %v6293_v37 = vcombine.low %v695_v52, %v699_v31  ;;  %v6300_v38 = vcombine.high %v702_v7, %v706_v9  ;;  %v743_v52 = vld [vmem:[#allocation4 + $0x898] sm:$0xff] }
 0x24f   :  { %4154 = vmatprep.subr.bf16.mxu1 %v6254_v39  ;;  %v6302_v39 = vcombine.high %v703_v33, %v707_v34  ;;  %v747_v31 = vld [vmem:[#allocation4 + $0x8b8] sm:$0xff] }
 0x251   :  { %3983 = vmatpush1.bf16.msra.mxu0 %v6251_v3  ;;  %v6299_v3 = vcombine.low %v702_v7, %v706_v9  ;;  %v750_v7 = vld [vmem:[#allocation4 + $0x8d0] sm:$0xff] }
 0x252   :  { %4155 = vmatpush1.bf16.msra.mxu1 %v6253_v2  ;;  %3984 = vmatprep.subr.bf16.mxu0 %v6260_v5  ;;  %v6301_v2 = vcombine.low %v703_v33, %v707_v34  ;;  %v6308_v5 = vcombine.high %v710_v43, %v714_v51  ;;  %v754_v9 = vld [vmem:[#allocation4 + $0x8f0] sm:$0xff]  ;;  %v751_v33 = vld [vmem:[#allocation4 + $0x8d8] sm:$0xff] }
 0x253   :  { %4156 = vmatprep.subr.bf16.mxu1 %v6262_v4  ;;  %v6310_v4 = vcombine.high %v711_v57, %v715_v59  ;;  %v755_v34 = vld [vmem:[#allocation4 + $0x8f8] sm:$0xff] }
 0x255   :  { %3985 = vmatpush1.bf16.msra.mxu0 %v6259_v19  ;;  %v6307_v19 = vcombine.low %v710_v43, %v714_v51  ;;  %v762_v43 = vld [vmem:[#allocation4 + $0x930] sm:$0xff]  ;;  %v759_v51 = vld [vmem:[#allocation4 + $0x918] sm:$0xff] }
 0x256   :  { %4157 = vmatpush1.bf16.msra.mxu1 %v6261_v35  ;;  %3986 = vmatprep.subr.bf16.mxu0 %v6268_v20  ;;  %v6309_v35 = vcombine.low %v711_v57, %v715_v59  ;;  %v6316_v20 = vcombine.high %v718_v10, %v722_v13  ;;  %v763_v57 = vld [vmem:[#allocation4 + $0x938] sm:$0xff]  ;;  %v6349_v59 = vcombine.low %v751_v33, %v755_v34 }
 0x257   :  { %4158 = vmatprep.subr.bf16.mxu1 %v6270_v21  ;;  %v6318_v21 = vcombine.high %v719_v16, %v723_v18 }
 0x259   :  { %3987 = vmatpush1.bf16.msra.mxu0 %v6267_v14  ;;  %v6315_v14 = vcombine.low %v718_v10, %v722_v13  ;;  %v767_v10 = vld [vmem:[#allocation4 + $0x958] sm:$0xff] }
 0x25a   :  { %4159 = vmatpush1.bf16.msra.mxu1 %v6269_v44  ;;  %3988 = vmatprep.subr.bf16.mxu0 %v6276_v46  ;;  %v6317_v44 = vcombine.low %v719_v16, %v723_v18  ;;  %v6324_v46 = vcombine.high %v726_v40, %v730_v41  ;;  %v771_v13 = vld [vmem:[#allocation4 + $0x978] sm:$0xff]  ;;  %v6357_v18 = vcombine.low %v759_v51, %v763_v57 }
 0x25b   :  { %4160 = vmatprep.subr.bf16.mxu1 %v6278_v22  ;;  %v6326_v22 = vcombine.high %v727_v45, %v731_v42  ;;  %v775_v40 = vld [vmem:[#allocation4 + $0x998] sm:$0xff] }
 0x25c   :  { %v779_v41 = vld [vmem:[#allocation4 + $0x9b8] sm:$0xff] }
 0x25d   :  { %3989 = vmatpush1.bf16.msra.mxu0 %v6275_v15  ;;  %v739_v15 = vld [vmem:[#allocation4 + $0x878] sm:$0xff] }
 0x25e   :  { %4161 = vmatpush1.bf16.msra.mxu1 %v6277_v27  ;;  %3990 = vmatprep.subr.bf16.mxu0 %v6284_v48  ;;  %v6325_v27 = vcombine.low %v727_v45, %v731_v42  ;;  %v6332_v48 = vcombine.high %v734_v23, %v738_v24  ;;  %v6334_v30 = vcombine.high %v735_v12, %v739_v15 }
 0x25f   :  { %4162 = vmatprep.subr.bf16.mxu1 %v6286_v28  ;;  %v742_v28 = vld [vmem:[#allocation4 + $0x890] sm:$0xff]  ;;  %v6365_v42 = vcombine.low %v767_v10, %v771_v13 }
 0x261   :  { %3991 = vmatpush1.bf16.msra.mxu0 %v6283_v32  ;;  %v6331_v32 = vcombine.low %v734_v23, %v738_v24  ;;  %v783_v23 = vld [vmem:[#allocation4 + $0x9d8] sm:$0xff] }
 0x262   :  { %4163 = vmatpush1.bf16.msra.mxu1 %v6285_v58  ;;  %3992 = vmatprep.subr.bf16.mxu0 %v6292_v61  ;;  %v6333_v58 = vcombine.low %v735_v12, %v739_v15  ;;  %v6340_v61 = vcombine.high %v742_v28, %v746_v29  ;;  %v787_v24 = vld [vmem:[#allocation4 + $0x9f8] sm:$0xff]  ;;  %v6373_v12 = vcombine.low %v775_v40, %v779_v41 }
 0x263   :  { %4164 = vmatprep.subr.bf16.mxu1 %v6294_v62  ;;  %v6342_v62 = vcombine.high %v743_v52, %v747_v31 }
 0x265   :  { %3993 = vmatpush1.bf16.msra.mxu0 %v6291_v36  ;;  %v6339_v36 = vcombine.low %v742_v28, %v746_v29  ;;  %v794_v28 = vld [vmem:[#allocation4 + $0xa30] sm:$0xff]  ;;  %v791_v29 = vld [vmem:[#allocation4 + $0xa18] sm:$0xff] }
 0x266   :  { %4165 = vmatpush1.bf16.msra.mxu1 %v6293_v37  ;;  %3994 = vmatprep.subr.bf16.mxu0 %v6300_v38  ;;  %v6348_v37 = vcombine.high %v750_v7, %v754_v9  ;;  %v6350_v38 = vcombine.high %v751_v33, %v755_v34 }
 0x267   :  { %4166 = vmatprep.subr.bf16.mxu1 %v6302_v39  ;;  %v758_v39 = vld [vmem:[#allocation4 + $0x910] sm:$0xff] }
 0x268   :  { %v6355_v16 = vcombine.low %v758_v39, %v762_v43 }
 0x269   :  { %3995 = vmatpush1.bf16.msra.mxu0 %v6299_v3  ;;  %v6356_v3 = vcombine.high %v758_v39, %v762_v43  ;;  %v807_v39 = vld [vmem:[#allocation4 + $0xa98] sm:$0xff] }
 0x26a   :  { %4167 = vmatpush1.bf16.msra.mxu1 %v6301_v2  ;;  %3996 = vmatprep.subr.bf16.mxu0 %v6308_v5  ;;  %v6358_v2 = vcombine.high %v759_v51, %v763_v57  ;;  %v766_v5 = vld [vmem:[#allocation4 + $0x950] sm:$0xff]  ;;  %v811_v43 = vld [vmem:[#allocation4 + $0xab8] sm:$0xff] }
 0x26b   :  { %4168 = vmatprep.subr.bf16.mxu1 %v6310_v4  ;;  %v770_v4 = vld [vmem:[#allocation4 + $0x970] sm:$0xff] }
 0x26c   :  { %v6363_v45 = vcombine.low %v766_v5, %v770_v4 }
 0x26d   :  { %3997 = vmatpush1.bf16.msra.mxu0 %v6307_v19  ;;  %v6364_v19 = vcombine.high %v766_v5, %v770_v4  ;;  %v815_v5 = vld [vmem:[#allocation4 + $0xad8] sm:$0xff] }
 0x26e   :  { %4169 = vmatpush1.bf16.msra.mxu1 %v6309_v35  ;;  %3998 = vmatprep.subr.bf16.mxu0 %v6316_v20  ;;  %v6366_v35 = vcombine.high %v767_v10, %v771_v13  ;;  %v774_v20 = vld [vmem:[#allocation4 + $0x990] sm:$0xff]  ;;  %v819_v4 = vld [vmem:[#allocation4 + $0xaf8] sm:$0xff]  ;;  %v6405_v13 = vcombine.low %v807_v39, %v811_v43 }
 0x26f   :  { %4170 = vmatprep.subr.bf16.mxu1 %v6318_v21  ;;  %v778_v21 = vld [vmem:[#allocation4 + $0x9b0] sm:$0xff] }
 0x271   :  { %3999 = vmatpush1.bf16.msra.mxu0 %v6315_v14  ;;  %v6372_v14 = vcombine.high %v774_v20, %v778_v21 }
 0x272   :  { %4171 = vmatpush1.bf16.msra.mxu1 %v6317_v44  ;;  %4011 = vmatprep.subr.bf16.mxu0 %v6324_v46  ;;  %v6374_v44 = vcombine.high %v775_v40, %v779_v41  ;;  %v782_v46 = vld [vmem:[#allocation4 + $0x9d0] sm:$0xff]  ;;  %v6413_v41 = vcombine.low %v815_v5, %v819_v4 }
 0x273   :  { %4183 = vmatprep.subr.bf16.mxu1 %v6326_v22  ;;  %v786_v22 = vld [vmem:[#allocation4 + $0x9f0] sm:$0xff] }
 0x274   :  { %4001 = vmatmul.mubr.bf16.vlgmr.msra.gmra.mrb[12].mxu0 %v7391_v17  ;;  %v6380_v15 = vcombine.high %v782_v46, %v786_v22 }
 0x275   :  { %4173 = vmatmul.mubr.bf16.vlgmr.msra.gmra.mrb[12].mxu1 %v7391_v17  ;;  %4012 = vmatpush1.bf16.msra.mxu0 %v6323_v8  ;;  %v6341_v17 = vcombine.low %v743_v52, %v747_v31  ;;  %v6371_v8 = vcombine.low %v774_v20, %v778_v21  ;;  %v6379_v52 = vcombine.low %v782_v46, %v786_v22  ;;  %v823_v20 = vld [vmem:[#allocation4 + $0xb18] sm:$0xff] }
 0x276   :  { %4043 = vmatprep.mubr.bf16.mxu0 %v7421_v60  ;;  %4184 = vmatpush1.bf16.msra.mxu1 %v6325_v27  ;;  %v6382_v27 = vcombine.high %v783_v23, %v787_v24  ;;  %v6381_v31 = vcombine.low %v783_v23, %v787_v24  ;;  %v827_v21 = vld [vmem:[#allocation4 + $0xb38] sm:$0xff] }
 0x277   :  { %4215 = vmatprep.mubr.bf16.mxu1 %v7421_v60  ;;  %4013 = vmatprep.subr.bf16.mxu0 %v6332_v48  ;;  %v6347_v60 = vcombine.low %v750_v7, %v754_v9  ;;  %v790_v48 = vld [vmem:[#allocation4 + $0xa10] sm:$0xff]  ;;  %v799_v7 = vld [vmem:[#allocation4 + $0xa58] sm:$0xff]  ;;  %v6421_v24 = vcombine.low %v823_v20, %v827_v21 }
 0x278   :  { %4185 = vmatprep.subr.bf16.mxu1 %v6334_v30  ;;  %v795_v30 = vld [vmem:[#allocation4 + $0xa38] sm:$0xff]  ;;  %v6387_v33 = vcombine.low %v790_v48, %v794_v28 }
 0x279   :  { %4014 = vmatpush1.bf16.msra.mxu0 %v6331_v32  ;;  %v6388_v32 = vcombine.high %v790_v48, %v794_v28  ;;  %v803_v9 = vld [vmem:[#allocation4 + $0xa78] sm:$0xff]  ;;  %v6389_v34 = vcombine.low %v791_v29, %v795_v30 }
 0x27a   :  { %4186 = vmatpush1.bf16.msra.mxu1 %v6333_v58  ;;  %4015 = vmatprep.subr.bf16.mxu0 %v6340_v61  ;;  %v6390_v58 = vcombine.high %v791_v29, %v795_v30  ;;  %v798_v61 = vld [vmem:[#allocation4 + $0xa50] sm:$0xff]  ;;  %v6397_v57 = vcombine.low %v799_v7, %v803_v9  ;;  %v831_v46 = vld [vmem:[#allocation4 + $0xb58] sm:$0xff] }
 0x27b   :  { %4187 = vmatprep.subr.bf16.mxu1 %v6342_v62  ;;  %v802_v62 = vld [vmem:[#allocation4 + $0xa70] sm:$0xff]  ;;  %v835_v22 = vld [vmem:[#allocation4 + $0xb78] sm:$0xff] }
 0x27c   :  { %v6395_v51 = vcombine.low %v798_v61, %v802_v62  ;;  %v839_v48 = vld [vmem:[#allocation4 + $0xb98] sm:$0xff]  ;;  %v6429_v30 = vcombine.low %v831_v46, %v835_v22 }
 0x27d   :  { %4016 = vmatpush1.bf16.msra.mxu0 %v6339_v36  ;;  %v6396_v36 = vcombine.high %v798_v61, %v802_v62  ;;  %v843_v28 = vld [vmem:[#allocation4 + $0xbb8] sm:$0xff] }
 0x27e   :  { %4188 = vmatpush1.bf16.msra.mxu1 %v6341_v17  ;;  %4017 = vmatprep.subr.bf16.mxu0 %v6348_v37  ;;  %v6398_v17 = vcombine.high %v799_v7, %v803_v9  ;;  %v806_v37 = vld [vmem:[#allocation4 + $0xa90] sm:$0xff]  ;;  %v847_v61 = vld [vmem:[#allocation4 + $0xbd8] sm:$0xff]  ;;  %v6437_v9 = vcombine.low %v839_v48, %v843_v28 }
 0x27f   :  { %4189 = vmatprep.subr.bf16.mxu1 %v6350_v38  ;;  %v810_v38 = vld [vmem:[#allocation4 + $0xab0] sm:$0xff]  ;;  %v851_v62 = vld [vmem:[#allocation4 + $0xbf8] sm:$0xff] }
 0x280   :  { %v6403_v10 = vcombine.low %v806_v37, %v810_v38 }
 0x281   :  { %4018 = vmatpush1.bf16.msra.mxu0 %v6347_v60  ;;  %v6404_v60 = vcombine.high %v806_v37, %v810_v38  ;;  %v855_v37 = vld [vmem:[#allocation4 + $0xc18] sm:$0xff] }
 0x282   :  { %4190 = vmatpush1.bf16.msra.mxu1 %v6349_v59  ;;  %4019 = vmatprep.subr.bf16.mxu0 %v6356_v3  ;;  %v6406_v59 = vcombine.high %v807_v39, %v811_v43  ;;  %v814_v3 = vld [vmem:[#allocation4 + $0xad0] sm:$0xff]  ;;  %v859_v38 = vld [vmem:[#allocation4 + $0xc38] sm:$0xff]  ;;  %v6445_v43 = vcombine.low %v847_v61, %v851_v62 }
 0x283   :  { %4191 = vmatprep.subr.bf16.mxu1 %v6358_v2  ;;  %v818_v2 = vld [vmem:[#allocation4 + $0xaf0] sm:$0xff] }
 0x284   :  { %v6411_v40 = vcombine.low %v814_v3, %v818_v2 }
 0x285   :  { %4020 = vmatpush1.bf16.msra.mxu0 %v6355_v16  ;;  %v6412_v16 = vcombine.high %v814_v3, %v818_v2  ;;  %v863_v2 = vld [vmem:[#allocation4 + $0xc58] sm:$0xff] }
 0x286   :  { %4192 = vmatpush1.bf16.msra.mxu1 %v6357_v18  ;;  %4021 = vmatprep.subr.bf16.mxu0 %v6364_v19  ;;  %v6414_v18 = vcombine.high %v815_v5, %v819_v4  ;;  %v822_v19 = vld [vmem:[#allocation4 + $0xb10] sm:$0xff]  ;;  %v867_v5 = vld [vmem:[#allocation4 + $0xc78] sm:$0xff]  ;;  %v6453_v4 = vcombine.low %v855_v37, %v859_v38 }
 0x287   :  { %4193 = vmatprep.subr.bf16.mxu1 %v6366_v35  ;;  %v826_v35 = vld [vmem:[#allocation4 + $0xb30] sm:$0xff] }
 0x288   :  { %v6419_v23 = vcombine.low %v822_v19, %v826_v35 }
 0x289   :  { %4022 = vmatpush1.bf16.msra.mxu0 %v6363_v45  ;;  %v6420_v45 = vcombine.high %v822_v19, %v826_v35  ;;  %v871_v19 = vld [vmem:[#allocation4 + $0xc98] sm:$0xff] }
 0x28a   :  { %4194 = vmatpush1.bf16.msra.mxu1 %v6365_v42  ;;  %4023 = vmatprep.subr.bf16.mxu0 %v6372_v14  ;;  %v6422_v42 = vcombine.high %v823_v20, %v827_v21  ;;  %v830_v14 = vld [vmem:[#allocation4 + $0xb50] sm:$0xff]  ;;  %v875_v35 = vld [vmem:[#allocation4 + $0xcb8] sm:$0xff]  ;;  %v6461_v21 = vcombine.low %v863_v2, %v867_v5 }
 0x28b   :  { %4195 = vmatprep.subr.bf16.mxu1 %v6374_v44  ;;  %v834_v44 = vld [vmem:[#allocation4 + $0xb70] sm:$0xff] }
 0x28c   :  { %v6427_v29 = vcombine.low %v830_v14, %v834_v44 }
 0x28d   :  { %4024 = vmatpush1.bf16.msra.mxu0 %v6371_v8  ;;  %v6428_v8 = vcombine.high %v830_v14, %v834_v44  ;;  %v879_v14 = vld [vmem:[#allocation4 + $0xcd8] sm:$0xff] }
 0x28e   :  { %4196 = vmatpush1.bf16.msra.mxu1 %v6373_v12  ;;  %4025 = vmatprep.subr.bf16.mxu0 %v6380_v15  ;;  %v6430_v12 = vcombine.high %v831_v46, %v835_v22  ;;  %v838_v15 = vld [vmem:[#allocation4 + $0xb90] sm:$0xff]  ;;  %v883_v44 = vld [vmem:[#allocation4 + $0xcf8] sm:$0xff] }
 0x28f   :  { %4197 = vmatprep.subr.bf16.mxu1 %v6382_v27  ;;  %v842_v27 = vld [vmem:[#allocation4 + $0xbb0] sm:$0xff] }
 0x290   :  { %v6435_v7 = vcombine.low %v838_v15, %v842_v27 }
 0x291   :  { %4026 = vmatpush1.bf16.msra.mxu0 %v6379_v52  ;;  %v6436_v52 = vcombine.high %v838_v15, %v842_v27  ;;  %v891_v15 = vld [vmem:[#allocation4 + $0xd38] sm:$0xff] }
 0x292   :  { %4198 = vmatpush1.bf16.msra.mxu1 %v6381_v31  ;;  %4027 = vmatprep.subr.bf16.mxu0 %v6388_v32  ;;  %v6438_v31 = vcombine.high %v839_v48, %v843_v28  ;;  %v846_v32 = vld [vmem:[#allocation4 + $0xbd0] sm:$0xff]  ;;  %v6477_v28 = vcombine.low %v879_v14, %v883_v44 }
 0x293   :  { %4199 = vmatprep.subr.bf16.mxu1 %v6390_v58  ;;  %v850_v58 = vld [vmem:[#allocation4 + $0xbf0] sm:$0xff] }
 0x294   :  { %v6443_v39 = vcombine.low %v846_v32, %v850_v58  ;;  %v92_v27 = vld [vmem:[#allocation7 + $0x1] ss:$8 sm:$0xf0] }
 0x295   :  { %4028 = vmatpush1.bf16.msra.mxu0 %v6387_v33  ;;  %v6444_v33 = vcombine.high %v846_v32, %v850_v58  ;;  %v898_v32 = vld [vmem:[#allocation4 + $0xd70] sm:$0xff]  ;;  %v7461_v58 = vld [vmem:[#allocation4 + $0xd58] sm:$0xff] }
 0x296   :  { %4200 = vmatpush1.bf16.msra.mxu1 %v6389_v34  ;;  %4029 = vmatprep.subr.bf16.mxu0 %v6396_v36  ;;  %v6446_v34 = vcombine.high %v847_v61, %v851_v62  ;;  %v854_v36 = vld [vmem:[#allocation4 + $0xc10] sm:$0xff]  ;;  %v7463_v61 = vld [vmem:[#allocation4 + $0xd78] sm:$0xff] }
 0x297   :  { %4201 = vmatprep.subr.bf16.mxu1 %v6398_v17  ;;  %v858_v17 = vld [vmem:[#allocation4 + $0xc30] sm:$0xff] }
 0x298   :  { %v6451_v3 = vcombine.low %v854_v36, %v858_v17 }
 0x299   :  { %4030 = vmatpush1.bf16.msra.mxu0 %v6395_v51  ;;  %v6452_v51 = vcombine.high %v854_v36, %v858_v17  ;;  %v7471_v17 = vld [vmem:[#allocation4 + $0xdb8] sm:$0xff] }
 0x29a   :  { %4202 = vmatpush1.bf16.msra.mxu1 %v6397_v57  ;;  %4031 = vmatprep.subr.bf16.mxu0 %v6404_v60  ;;  %v6454_v57 = vcombine.high %v855_v37, %v859_v38  ;;  %v862_v60 = vld [vmem:[#allocation4 + $0xc50] sm:$0xff] }
 0x29b   :  { %4203 = vmatprep.subr.bf16.mxu1 %v6406_v59  ;;  %v866_v59 = vld [vmem:[#allocation4 + $0xc70] sm:$0xff] }
 0x29c   :  { %v6459_v20 = vcombine.low %v862_v60, %v866_v59  ;;  %v7473_v37 = vld [vmem:[#allocation4 + $0xdd0] sm:$0xff] }
 0x29d   :  { %4032 = vmatpush1.bf16.msra.mxu0 %v6403_v10  ;;  %v6460_v10 = vcombine.high %v862_v60, %v866_v59  ;;  %v7475_v38 = vld [vmem:[#allocation4 + $0xdf0] sm:$0xff]  ;;  %v7485_v60 = vld [vmem:[#allocation4 + $0xdf8] sm:$0xff] }
 0x29e   :  { %4204 = vmatpush1.bf16.msra.mxu1 %v6405_v13  ;;  %4033 = vmatprep.subr.bf16.mxu0 %v6412_v16  ;;  %v870_v13 = vld [vmem:[#allocation4 + $0xc90] sm:$0xff] }
 0x29f   :  { %4205 = vmatprep.subr.bf16.mxu1 %v6414_v18  ;;  %v874_v16 = vld [vmem:[#allocation4 + $0xcb0] sm:$0xff]  ;;  %v6462_v18 = vcombine.high %v863_v2, %v867_v5 }
 0x2a0   :  { %v6467_v46 = vcombine.low %v870_v13, %v874_v16  ;;  %v7487_v59 = vld [vmem:[#allocation4 + $0xe10] sm:$0xff] }
 0x2a1   :  { %4034 = vmatpush1.bf16.msra.mxu0 %v6411_v40  ;;  %v6468_v40 = vcombine.high %v870_v13, %v874_v16  ;;  %v7497_v13 = vld [vmem:[#allocation4 + $0xe18] sm:$0xff] }
 0x2a2   :  { %4206 = vmatpush1.bf16.msra.mxu1 %v6413_v41  ;;  %4035 = vmatprep.subr.bf16.mxu0 %v6420_v45  ;;  %v6470_v41 = vcombine.high %v871_v19, %v875_v35  ;;  %v878_v45 = vld [vmem:[#allocation4 + $0xcd0] sm:$0xff]  ;;  %v7499_v16 = vld [vmem:[#allocation4 + $0xe38] sm:$0xff] }
 0x2a3   :  { %4207 = vmatprep.subr.bf16.mxu1 %v6422_v42  ;;  %v882_v42 = vld [vmem:[#allocation4 + $0xcf0] sm:$0xff] }
 0x2a4   :  { %v6476_v22 = vcombine.high %v878_v45, %v882_v42  ;;  %v6475_v48 = vcombine.low %v878_v45, %v882_v42  ;;  %v6508_v45 = vcombine.high %v7473_v37, %v7475_v38 }
 0x2a5   :  { %4036 = vmatpush1.bf16.msra.mxu0 %v6419_v23  ;;  %v886_v23 = vld [vmem:[#allocation4 + $0xd10] sm:$0xff] }
 0x2a6   :  { %4208 = vmatpush1.bf16.msra.mxu1 %v6421_v24  ;;  %4037 = vmatprep.subr.bf16.mxu0 %v6428_v8  ;;  %v6478_v24 = vcombine.high %v879_v14, %v883_v44  ;;  %v890_v8 = vld [vmem:[#allocation4 + $0xd30] sm:$0xff]  ;;  %v7519_v14 = vld [vmem:[#allocation4 + $0xe58] sm:$0xff] }
 0x2a7   :  { %4209 = vmatprep.subr.bf16.mxu1 %v6430_v12  ;;  %v887_v12 = vld [vmem:[#allocation4 + $0xd18] sm:$0xff]  ;;  %v6483_v62 = vcombine.low %v886_v23, %v890_v8 }
 0x2a8   :  { %v7521_v44 = vld [vmem:[#allocation4 + $0xe78] sm:$0xff] }
 0x2a9   :  { %4038 = vmatpush1.bf16.msra.mxu0 %v6427_v29  ;;  %v6484_v29 = vcombine.high %v886_v23, %v890_v8  ;;  %v6517_v8 = vcombine.low %v7497_v13, %v7499_v16 }
 0x2aa   :  { %4210 = vmatpush1.bf16.msra.mxu1 %v6429_v30  ;;  %4039 = vmatprep.subr.bf16.mxu0 %v6436_v52  ;;  %v6486_v30 = vcombine.high %v887_v12, %v891_v15 }
 0x2ab   :  { %4211 = vmatprep.subr.bf16.mxu1 %v6438_v31  ;;  %v894_v31 = vld [vmem:[#allocation4 + $0xd50] sm:$0xff] }
 0x2ac   :  { %v6492_v36 = vcombine.high %v894_v31, %v898_v32  ;;  %v6491_v5 = vcombine.low %v894_v31, %v898_v32 }
 0x2ad   :  { %4040 = vmatpush1.bf16.msra.mxu0 %v6435_v7  ;;  %v7465_v7 = vld [vmem:[#allocation4 + $0xd90] sm:$0xff] }
 0x2ae   :  { %4212 = vmatpush1.bf16.msra.mxu1 %v6437_v9  ;;  %4041 = vmatprep.subr.bf16.mxu0 %v6444_v33  ;;  %v7467_v9 = vld [vmem:[#allocation4 + $0xdb0] sm:$0xff]  ;;  %v7469_v33 = vld [vmem:[#allocation4 + $0xd98] sm:$0xff] }
 0x2af   :  { %4213 = vmatprep.subr.bf16.mxu1 %v6446_v34  ;;  %v6485_v34 = vcombine.low %v887_v12, %v891_v15 }
 0x2b1   :  { %4042 = vmatpush1.bf16.msra.mxu0 %v6443_v39 }
 0x2b2   :  { %4214 = vmatpush1.bf16.msra.mxu1 %v6445_v43  ;;  %4054 = vmatprep.subr.bf16.mxu0 %v6452_v51  ;;  %v6494_v51 = vcombine.high %v7461_v58, %v7463_v61 }
 0x2b3   :  { %4226 = vmatprep.subr.bf16.mxu1 %v6454_v57  ;;  %v7483_v57 = vld [vmem:[#allocation4 + $0xdd8] sm:$0xff] }
 0x2b4   :  { %4044 = vmatmul.mubr.bf16.vlgmr.msra.gmra.mrb[12].mxu0 %v7419_v25  ;;  %v6509_v42 = vcombine.low %v7483_v57, %v7485_v60 }
 0x2b5   :  { %4216 = vmatmul.mubr.bf16.vlgmr.msra.gmra.mrb[12].mxu1 %v7419_v25  ;;  %4055 = vmatpush1.bf16.msra.mxu0 %v6451_v3  ;;  %v6469_v25 = vcombine.low %v871_v19, %v875_v35  ;;  %v6500_v19 = vcombine.high %v7465_v7, %v7467_v9  ;;  %v6501_v35 = vcombine.low %v7469_v33, %v7471_v17 }
 0x2b6   :  { %4086 = vmatprep.mubr.bf16.mxu0 %v7433_v50  ;;  %4227 = vmatpush1.bf16.msra.mxu1 %v6453_v4  ;;  %v6493_v4 = vcombine.low %v7461_v58, %v7463_v61  ;;  %v6526_v61 = vcombine.high %v7519_v14, %v7521_v44 }
 0x2b7   :  { %4258 = vmatprep.mubr.bf16.mxu1 %v7433_v50  ;;  %4056 = vmatprep.subr.bf16.mxu0 %v6460_v10  ;;  %v91_v50 = vld [vmem:[#allocation7 + $0x1] ss:$8 sm:$0xf] }
 0x2b8   :  { %4228 = vmatprep.subr.bf16.mxu1 %v6462_v18  ;;  %v7459_v52 = vor.u32 %v92_v27, %v91_v50  ;;  %v7495_v10 = vld [vmem:[#allocation4 + $0xe30] sm:$0xff]  ;;  %v6499_v18 = vcombine.low %v7465_v7, %v7467_v9 }
 0x2b9   :  { %4057 = vmatpush1.bf16.msra.mxu0 %v6459_v20  ;;  %v6502_v20 = vcombine.high %v7469_v33, %v7471_v17  ;;  %v6515_v23 = vcombine.low %v7487_v59, %v7495_v10 }
 0x2ba   :  { %4229 = vmatpush1.bf16.msra.mxu1 %v6461_v21  ;;  %4058 = vmatprep.subr.bf16.mxu0 %v6468_v40  ;;  %v984_v39 = vrot.slane %v7459_v52, %v7331_v53  ;;  %v992_v43 = vrot.slane %v7459_v52, %v7337_v55  ;;  %v988_v3 = vrot.slane %v7459_v52, %v7334_v54  ;;  %v7509_v21 = vld [vmem:[#allocation4 + $0xe50] sm:$0xff] }
 0x2bb   :  { %4230 = vmatprep.subr.bf16.mxu1 %v6470_v41  ;;  %v996_v2 = vrot.slane %v7459_v52, %v7340_v56  ;;  %v7511_v40 = vld [vmem:[#allocation4 + $0xe70] sm:$0xff]  ;;  %v6507_v41 = vcombine.low %v7473_v37, %v7475_v38 }
 0x2bc   :  { %v6524_v58 = vcombine.high %v7509_v21, %v7511_v40 }
 0x2bd   :  { %4059 = vmatpush1.bf16.msra.mxu0 %v6467_v46 }
 0x2be   :  { %4231 = vmatpush1.bf16.msra.mxu1 %v6469_v25  ;;  %4060 = vmatprep.subr.bf16.mxu0 %v6476_v22  ;;  %v6510_v22 = vcombine.high %v7483_v57, %v7485_v60  ;;  %v6525_v57 = vcombine.low %v7519_v14, %v7521_v44 }
 0x2bf   :  { %4232 = vmatprep.subr.bf16.mxu1 %v6478_v24  ;;  %v6516_v24 = vcombine.high %v7487_v59, %v7495_v10  ;;  %v942_v59 = vld [vmem:[#allocation4 + $0xed0] sm:$0xff] }
 0x2c0   :  { %v946_v10 = vld [vmem:[#allocation4 + $0xef0] sm:$0xff] }
 0x2c1   :  { %4061 = vmatpush1.bf16.msra.mxu0 %v6475_v48  ;;  %v6518_v48 = vcombine.high %v7497_v13, %v7499_v16  ;;  %v943_v13 = vld [vmem:[#allocation4 + $0xed8] sm:$0xff] }
 0x2c2   :  { %4233 = vmatpush1.bf16.msra.mxu1 %v6477_v28  ;;  %4062 = vmatprep.subr.bf16.mxu0 %v6484_v29  ;;  %v6523_v28 = vcombine.low %v7509_v21, %v7511_v40  ;;  %v947_v16 = vld [vmem:[#allocation4 + $0xef8] sm:$0xff]  ;;  %v6539_v21 = vcombine.low %v942_v59, %v946_v10 }
 0x2c3   :  { %4234 = vmatprep.subr.bf16.mxu1 %v6486_v30  ;;  %v6541_v40 = vcombine.low %v943_v13, %v947_v16 }
 0x2c5   :  { %4063 = vmatpush1.bf16.msra.mxu0 %v6483_v62 }
 0x2c6   :  { %4235 = vmatpush1.bf16.msra.mxu1 %v6485_v34  ;;  %4064 = vmatprep.subr.bf16.mxu0 %v6492_v36 }
 0x2c7   :  { %v3744_v46 = vpop.f32.mrb[8].mxu0  ;;  %v3916_v25 = vpop.f32.mrb[8].mxu1  ;;  %4236 = vmatprep.subr.bf16.mxu1 %v6494_v51 }
 0x2c8   :  { %v6846_v12 = vadd.f32 %v3744_v46, %v984_v39  ;;  %v6850_v15 = vadd.f32 %v3916_v25, %v992_v43  ;;  %v3746_v50 = vpop.f32.mrb[9].mxu0  ;;  %v3918_v27 = vpop.f32.mrb[9].mxu1 }
 0x2c9   :  { %v6847_v29 = vadd.f32 %v3746_v50, %v988_v3  ;;  %v6851_v30 = vadd.f32 %v3918_v27, %v996_v2  ;;  %v3748_v31 = vpop.f32.mrb[10].mxu0  ;;  %v3920_v32 = vpop.f32.mrb[10].mxu1  ;;  %4065 = vmatpush1.bf16.msra.mxu0 %v6491_v5 }
 0x2ca   :  { %v4269_v62 = vrot.slane %v6846_v12, 4  ;;  %v4281_v7 = vrot.slane %v6850_v15, 4  ;;  %v6848_v9 = vadd.f32 %v3748_v31, %v984_v39  ;;  %v6852_v33 = vadd.f32 %v3920_v32, %v992_v43  ;;  %4237 = vmatpush1.bf16.msra.mxu1 %v6493_v4  ;;  %v3750_v34 = vpop.f32.mrb[11].mxu0  ;;  %v3922_v36 = vpop.f32.mrb[11].mxu1  ;;  %4066 = vmatprep.subr.bf16.mxu0 %v6500_v19 }
 0x2cb   :  { %v4275_v17 = vrot.slane %v6847_v29, 4  ;;  %v4287_v51 = vrot.slane %v6851_v30, 4  ;;  %v6849_v46 = vadd.f32 %v3750_v34, %v988_v3  ;;  %v6853_v25 = vadd.f32 %v3922_v36, %v996_v2  ;;  %4238 = vmatprep.subr.bf16.mxu1 %v6502_v20 }
 0x2cc   :  { %v4270_v5 = vmax.f32 %v6846_v12, %v4269_v62  ;;  %v4282_v50 = vmax.f32 %v6850_v15, %v4281_v7  ;;  %v4317_v27 = vrot.slane %v6848_v9, 4  ;;  %v4329_v0 = vrot.slane %v6852_v33, 4 }
 0x2cd   :  { %v4276_v11 = vmax.f32 %v6847_v29, %v4275_v17  ;;  %v4288_v1 = vmax.f32 %v6851_v30, %v4287_v51  ;;  %v4323_v6 = vrot.slane %v6849_v46, 4  ;;  %v4335_v63 = vrot.slane %v6853_v25, 4  ;;  %4067 = vmatpush1.bf16.msra.mxu0 %v6499_v18  ;;  %v938_v18 = vld [vmem:[#allocation4 + $0xeb0] sm:$0xff] }
 0x2ce   :  { %v4271_v39 = vrot.slane %v4270_v5, 2  ;;  %v4283_v43 = vrot.slane %v4282_v50, 2  ;;  %v4318_v4 = vmax.f32 %v6848_v9, %v4317_v27  ;;  %v4330_v31 = vmax.f32 %v6852_v33, %v4329_v0  ;;  %4239 = vmatpush1.bf16.msra.mxu1 %v6501_v35  ;;  %4068 = vmatprep.subr.bf16.mxu0 %v6508_v45  ;;  %v934_v0 = vld [vmem:[#allocation4 + $0xe90] sm:$0xff] }
 0x2cf   :  { %v4277_v19 = vrot.slane %v4276_v11, 2  ;;  %v4289_v32 = vrot.slane %v4288_v1, 2  ;;  %v4324_v3 = vmax.f32 %v6849_v46, %v4323_v6  ;;  %v4336_v2 = vmax.f32 %v6853_v25, %v4335_v63  ;;  %4240 = vmatprep.subr.bf16.mxu1 %v6510_v22  ;;  %v935_v63 = vld [vmem:[#allocation4 + $0xe98] sm:$0xff] }
 0x2d0   :  { %v4272_v20 = vmax.f32 %v4270_v5, %v4271_v39  ;;  %v4284_v12 = vmax.f32 %v4282_v50, %v4283_v43  ;;  %v4319_v15 = vrot.slane %v4318_v4, 2  ;;  %v4331_v62 = vrot.slane %v4330_v31, 2 }
 0x2d1   :  { %v4278_v29 = vmax.f32 %v4276_v11, %v4277_v19  ;;  %v4290_v30 = vmax.f32 %v4288_v1, %v4289_v32  ;;  %v4325_v7 = vrot.slane %v4324_v3, 2  ;;  %v4337_v34 = vrot.slane %v4336_v2, 2  ;;  %4069 = vmatpush1.bf16.msra.mxu0 %v6507_v41  ;;  %v939_v1 = vld [vmem:[#allocation4 + $0xeb8] sm:$0xff] }
 0x2d2   :  { %v4273_v35 = vrot.slane %v4272_v20, 1  ;;  %v4285_v45 = vrot.slane %v4284_v12, 1  ;;  %v4320_v9 = vmax.f32 %v4318_v4, %v4319_v15  ;;  %v4332_v6 = vmax.f32 %v4330_v31, %v4331_v62  ;;  %4241 = vmatpush1.bf16.msra.mxu1 %v6509_v42  ;;  %4070 = vmatprep.subr.bf16.mxu0 %v6516_v24  ;;  %v950_v4 = vld [vmem:[#allocation4 + $0xf10] sm:$0xff]  ;;  %v951_v19 = vld [vmem:[#allocation4 + $0xf18] sm:$0xff] }
 0x2d3   :  { %v4279_v11 = vrot.slane %v4278_v29, 1  ;;  %v4291_v22 = vrot.slane %v4290_v30, 1  ;;  %v4326_v37 = vmax.f32 %v4324_v3, %v4325_v7  ;;  %v4338_v38 = vmax.f32 %v4336_v2, %v4337_v34  ;;  %4242 = vmatprep.subr.bf16.mxu1 %v6518_v48  ;;  %v954_v31 = vld [vmem:[#allocation4 + $0xf30] sm:$0xff]  ;;  %v955_v32 = vld [vmem:[#allocation4 + $0xf38] sm:$0xff] }
 0x2d4   :  { %v4321_v41 = vrot.slane %v4320_v9, 1  ;;  %v4333_v33 = vrot.slane %v4332_v6, 1  ;;  %v6532_v60 = vcombine.high %v934_v0, %v938_v18  ;;  %v7553_v42 = vmax.f32 %v4272_v20, %v4273_v35  ;;  %v958_v2 = vld [vmem:[#allocation4 + $0xf50] sm:$0xff]  ;;  %v963_v15 = vld [vmem:[#allocation4 + $0xf78] sm:$0xff] }
 0x2d5   :  { %v4327_v36 = vrot.slane %v4326_v37, 1  ;;  %v4339_v24 = vrot.slane %v4338_v38, 1  ;;  %4071 = vmatpush1.bf16.msra.mxu0 %v6515_v23  ;;  %v6534_v17 = vcombine.high %v935_v63, %v939_v1  ;;  %v7558_v51 = vmax.f32 %v4284_v12, %v4285_v45  ;;  %v962_v20 = vld [vmem:[#allocation4 + $0xf70] sm:$0xff]  ;;  %v959_v12 = vld [vmem:[#allocation4 + $0xf58] sm:$0xff] }
 0x2d6   :  { %v7560_v46 = vmax.f32 %v4320_v9, %v4321_v41  ;;  %v7562_v48 = vmax.f32 %v4332_v6, %v4333_v33  ;;  %4243 = vmatpush1.bf16.msra.mxu1 %v6517_v8  ;;  %4072 = vmatprep.subr.bf16.mxu0 %v6524_v58  ;;  %v7573_v23 = vmax.f32 %v4278_v29, %v4279_v11  ;;  %v966_v34 = vld [vmem:[#allocation4 + $0xf90] sm:$0xff]  ;;  %v971_v35 = vld [vmem:[#allocation4 + $0xfb8] sm:$0xff] }
 0x2d7   :  { %4244 = vmatprep.subr.bf16.mxu1 %v6526_v61  ;;  %v7575_v25 = vmax.f32 %v4326_v37, %v4327_v36  ;;  %v7577_v5 = vmax.f32 %v4290_v30, %v4291_v22  ;;  %v7579_v50 = vmax.f32 %v4338_v38, %v4339_v24  ;;  %v6531_v14 = vcombine.low %v934_v0, %v938_v18  ;;  %v970_v0 = vld [vmem:[#allocation4 + $0xfb0] sm:$0xff]  ;;  %v967_v18 = vld [vmem:[#allocation4 + $0xf98] sm:$0xff]  ;;  %v6930_v24 = vld [vmem:[%s8082_s4 + $0x40] sm:$0xff]  }
 0x2d8   :  { %v4365_v8 = vpack.c.bf16 %v7560_v46, %v7553_v42  ;;  %v4367_v58 = vpack.c.bf16 %v7562_v48, %v7558_v51  ;;  %v6533_v27 = vcombine.low %v935_v63, %v939_v1  ;;  %v6540_v39 = vcombine.high %v942_v59, %v946_v10  ;;  %v974_v1 = vld [vmem:[#allocation4 + $0xfd0] sm:$0xff]  ;;  %v975_v22 = vld [vmem:[#allocation4 + $0xfd8] sm:$0xff]  ;;  %v6932_v10 = vld [vmem:[%s8082_s4] sm:$0xff]  }
 0x2d9   :  { %4073 = vmatpush1.bf16.msra.mxu0 %v6523_v28  ;;  %v4366_v44 = vpack.c.bf16 %v7575_v25, %v7573_v23  ;;  %v4368_v61 = vpack.c.bf16 %v7579_v50, %v7577_v5  ;;  %v6542_v43 = vcombine.high %v943_v13, %v947_v16  ;;  %v6548_v28 = vcombine.high %v950_v4, %v954_v31  ;;  %v978_v11 = vld [vmem:[#allocation4 + $0xff0] sm:$0xff]  ;;  %v979_v37 = vld [vmem:[#allocation4 + $0xff8] sm:$0xff]  ;;  %v6933_v13 = vld [vmem:[%s8082_s4 + $0x48] sm:$0xff]  }
 0x2da   :  { %4245 = vmatpush1.bf16.msra.mxu1 %v6525_v57  ;;  %4074 = vmatprep.subr.bf16.mxu0 %v6532_v60  ;;  %v6550_v3 = vcombine.high %v951_v19, %v955_v32  ;;  %v6547_v62 = vcombine.low %v950_v4, %v954_v31  ;;  %v6549_v29 = vcombine.low %v951_v19, %v955_v32  ;;  %v7187_v59 = vmov 0.0   ;;  %v6934_v16 = vld [vmem:[%s8082_s4 + $0x208] sm:$0xff]   ;;  %v6939_v23 = vld [vmem:[%s8082_s4 + $0x80] sm:$0xff]   ;;  %v6938_v25 = vld [vmem:[%s8082_s4 + $0x10] sm:$0xff]  }
 0x2db   :  { %4246 = vmatprep.subr.bf16.mxu1 %v6534_v17  ;;  %v6556_v30 = vcombine.high %v958_v2, %v962_v20  ;;  %v6558_v7 = vcombine.high %v959_v12, %v963_v15  ;;  %v6555_v45 = vcombine.low %v958_v2, %v962_v20  ;;  %v6557_v9 = vcombine.low %v959_v12, %v963_v15  ;;  %v6931_v17 = vld [vmem:[%s8082_s4 + $0x200] sm:$0xff]   ;;  %v6942_v4 = vld [vmem:[%s8082_s4 + $0x18] sm:$0xff]   ;;  %v6945_v31 = vld [vmem:[%s8082_s4 + $0xd0] sm:$0xff]  }
 0x2dc   :  { %v6564_v6 = vcombine.high %v966_v34, %v970_v0  ;;  %v6566_v63 = vcombine.high %v967_v18, %v971_v35  ;;  %v6563_v38 = vcombine.low %v966_v34, %v970_v0  ;;  %v6565_v41 = vcombine.low %v967_v18, %v971_v35  ;;  %v6947_v5 = vld [vmem:[%s8082_s4 + $0x90] sm:$0xff]   ;;  %v6946_v50 = vld [vmem:[%s8082_s4 + $0x20] sm:$0xff]   ;;  %v6948_v19 = vld [vmem:[%s8082_s4 + $0x68] sm:$0xff]  }
 0x2dd   :  { %4075 = vmatpush1.bf16.msra.mxu0 %v6531_v14  ;;  %v6572_v33 = vcombine.high %v974_v1, %v978_v11  ;;  %v6574_v57 = vcombine.high %v975_v22, %v979_v37  ;;  %v6571_v60 = vcombine.low %v974_v1, %v978_v11  ;;  %v6573_v36 = vcombine.low %v975_v22, %v979_v37  ;;  %v6935_v14 = vld [vmem:[%s8082_s4 + $0x8] sm:$0xff]   ;;  %v6951_v32 = vld [vmem:[%s8082_s4 + $0x98] sm:$0xff]   ;;  %v6954_v2 = vld [vmem:[%s8082_s4 + $0x30] sm:$0xff]  }
 0x2de   :  { %4247 = vmatpush1.bf16.msra.mxu1 %v6533_v27  ;;  %4076 = vmatprep.subr.bf16.mxu0 %v6540_v39  ;;  %v6937_v27 = vld [vmem:[%s8082_s4 + $0xc0] sm:$0xff]   ;;  %v6940_v39 = vld [vmem:[%s8082_s4 + $0x58] sm:$0xff]   ;;  %v6957_v20 = vld [vmem:[%s8082_s4 + $0xe8] sm:$0xff]  }
 0x2df   :  { %4248 = vmatprep.subr.bf16.mxu1 %v6542_v43  ;;  %v6943_v43 = vld [vmem:[%s8082_s4 + $0x88] sm:$0xff]   ;;  %v6956_v12 = vld [vmem:[%s8082_s4 + $0x78] sm:$0xff]   ;;  %v6965_v0 = vld [vmem:[%s8082_s4 + $0x100] sm:$0xff]  }
 0x2e0   :  { %v6959_v15 = vld [vmem:[%s8082_s4 + $0xa8] sm:$0xff]   ;;  %v6962_v34 = vld [vmem:[%s8082_s4 + $0xf8] sm:$0xff]   ;;  %v6972_v42 = vld [vmem:[%s8082_s4 + $0x150] sm:$0xff]  }
 0x2e1   :  { %4077 = vmatpush1.bf16.msra.mxu0 %v6539_v21  ;;  %v6950_v21 = vld [vmem:[%s8082_s4 + $0x28] sm:$0xff]   ;;  %v6963_v35 = vld [vmem:[%s8082_s4 + $0xb8] sm:$0xff]   ;;  %v6967_v46 = vld [vmem:[%s8082_s4 + $0x180] sm:$0xff]  }
 0x2e2   :  { %4249 = vmatpush1.bf16.msra.mxu1 %v6541_v40  ;;  %4078 = vmatprep.subr.bf16.mxu0 %v6548_v28  ;;  %v6953_v40 = vld [vmem:[%s8082_s4 + $0xe0] sm:$0xff]   ;;  %v6952_v28 = vld [vmem:[%s8082_s4 + $0x70] sm:$0xff]   ;;  %v6968_v18 = vld [vmem:[%s8082_s4 + $0x148] sm:$0xff]  }
 0x2e3   :  { %4250 = vmatprep.subr.bf16.mxu1 %v6550_v3  ;;  %v6955_v3 = vld [vmem:[%s8082_s4 + $0xa0] sm:$0xff]   ;;  %v6974_v1 = vld [vmem:[%s8082_s4 + $0x1d0] sm:$0xff]   ;;  %v6976_v51 = vld [vmem:[%s8082_s4 + $0x158] sm:$0xff]  }
 0x2e4   :  { %v6975_v11 = vld [vmem:[%s8082_s4 + $0x190] sm:$0xff]   ;;  %v6978_v48 = vld [vmem:[%s8082_s4 + $0x1d8] sm:$0xff]   ;;  %v6980_v37 = vld [vmem:[%s8082_s4 + $0x160] sm:$0xff]  }
 0x2e5   :  { %4079 = vmatpush1.bf16.msra.mxu0 %v6547_v62  ;;  %v6958_v62 = vld [vmem:[%s8082_s4 + $0x38] sm:$0xff]  }
 0x2e6   :  { %4251 = vmatpush1.bf16.msra.mxu1 %v6549_v29  ;;  %4080 = vmatprep.subr.bf16.mxu0 %v6556_v30  ;;  %v6960_v29 = vld [vmem:[%s8082_s4 + $0xf0] sm:$0xff]   ;;  %v6964_v30 = vld [vmem:[%s8082_s4 + $0x140] sm:$0xff]   ;;  %v6979_v22 = vld [vmem:[%s8082_s4 + $0x198] sm:$0xff]  }
 0x2e7   :  { %4252 = vmatprep.subr.bf16.mxu1 %v6558_v7  ;;  %v6961_v7 = vld [vmem:[%s8082_s4 + $0xb0] sm:$0xff]  }
 0x2e9   :  { %4081 = vmatpush1.bf16.msra.mxu0 %v6555_v45  ;;  %v6966_v45 = vld [vmem:[%s8082_s4 + $0x1c0] sm:$0xff]  }
 0x2ea   :  { %4253 = vmatpush1.bf16.msra.mxu1 %v6557_v9  ;;  %4082 = vmatprep.subr.bf16.mxu0 %v6564_v6  ;;  %v6969_v9 = vld [vmem:[%s8082_s4 + $0x108] sm:$0xff]   ;;  %v6973_v6 = vld [vmem:[%s8082_s4 + $0x110] sm:$0xff]  }
 0x2eb   :  { %4254 = vmatprep.subr.bf16.mxu1 %v6566_v63  ;;  %v6971_v63 = vld [vmem:[%s8082_s4 + $0x188] sm:$0xff]  }
 0x2ed   :  { %4083 = vmatpush1.bf16.msra.mxu0 %v6563_v38  ;;  %v6982_v38 = vld [vmem:[%s8082_s4 + $0x1e0] sm:$0xff]  }
 0x2ee   :  { %4255 = vmatpush1.bf16.msra.mxu1 %v6565_v41  ;;  %4084 = vmatprep.subr.bf16.mxu0 %v6572_v33  ;;  %v6981_v41 = vld [vmem:[%s8082_s4 + $0x120] sm:$0xff]  }
 0x2ef   :  { %4256 = vmatprep.subr.bf16.mxu1 %v6574_v57  ;;  %v6983_v33 = vld [vmem:[%s8082_s4 + $0x1a0] sm:$0xff]   ;;  %v6984_v57 = vld [vmem:[%s8082_s4 + $0x168] sm:$0xff]  }
 0x2f1   :  { %4085 = vmatpush1.bf16.msra.mxu0 %v6571_v60  ;;  %v6986_v60 = vld [vmem:[%s8082_s4 + $0x1e8] sm:$0xff]  }
 0x2f2   :  { %4257 = vmatpush1.bf16.msra.mxu1 %v6573_v36  ;;  %6832 = vmatprep.subr.bf16.mxu0 %v7187_v59  ;;  %v6985_v36 = vld [vmem:[%s8082_s4 + $0x128] sm:$0xff]  }
 0x2f3   :  { %6698 = vmatprep.subr.bf16.mxu1 %v6930_v24  ;;  %v6987_v24 = vld [vmem:[%s8082_s4 + $0x1a8] sm:$0xff]  }
 0x2f4   :  { %4087 = vmatmul.mubr.bf16.vlgmr.msra.gmra.mrb[12].mxu0 %v7431_v47 }
 0x2f5   :  { %4259 = vmatmul.mubr.bf16.vlgmr.msra.gmra.mrb[12].mxu1 %v7431_v47  ;;  %6833 = vmatpush3.bf16.msra.mxu0 %v6931_v17  ;;  %v6936_v47 = vld [vmem:[%s8082_s4 + $0x50] sm:$0xff]  }
 0x2f6   :  { %6699 = vmatpush3.bf16.msra.mxu1 %v6932_v10  ;;  %4974 = vmatprep.mubr.bf16.mxu1 %v4366_v44  ;;  %v6941_v44 = vld [vmem:[%s8082_s4 + $0xc8] sm:$0xff]   ;;  %v6988_v17 = vld [vmem:[%s8082_s4 + $0x170] sm:$0xff]  }
 0x2f7   :  { %6834 = vmatprep.subr.bf16.mxu0 %v7187_v59  ;;  %6700 = vmatprep.subr.bf16.mxu1 %v6933_v13  ;;  %v6990_v10 = vld [vmem:[%s8082_s4 + $0x1f0] sm:$0xff]  }
 0x2f8   :  { %6836 = vmatprep.mubr.msk.bf16.mxu0 %vm7188_vm2, %v7187_v59  ;;  %v6989_v13 = vld [vmem:[%s8082_s4 + $0x130] sm:$0xff]  }
 0x2f9   :  { %6835 = vmatpush3.bf16.msra.mxu0 %v6934_v16  ;;  %v6991_v16 = vld [vmem:[%s8082_s4 + $0x1b0] sm:$0xff]  }
 0x2fa   :  { %6701 = vmatpush3.bf16.msra.mxu1 %v6935_v14  ;;  %6720 = vmatprep.subr.bf16.mxu0 %v6937_v27  ;;  %v6992_v14 = vld [vmem:[%s8082_s4 + $0x178] sm:$0xff]  }
 0x2fb   :  { %6702 = vmatprep.subr.bf16.mxu1 %v6936_v47  ;;  %v6993_v27 = vld [vmem:[%s8082_s4 + $0x138] sm:$0xff]  }
 0x2fc   :  { %6837 = vmatmul.mubr.msk.bf16.vlgmr.msra.gmra.mrb[16].mxu0 %vm236_vm0, %v7298_v26  ;;  %v6944_v26 = vld [vmem:[%s8082_s4 + $0x60] sm:$0xff]   ;;  %v6994_v47 = vld [vmem:[%s8082_s4 + $0x1f8] sm:$0xff]  }
 0x2fd   :  { %6721 = vmatpush3.bf16.msra.mxu0 %v6939_v23  ;;  %5015 = vmatprep.mubr.bf16.mxu0 %v4368_v61  ;;  %v6949_v61 = vld [vmem:[%s8082_s4 + $0xd8] sm:$0xff]  }
 0x2fe   :  { %6703 = vmatpush3.bf16.msra.mxu1 %v6938_v25  ;;  %6722 = vmatprep.subr.bf16.mxu0 %v6941_v44  ;;  %v6995_v23 = vld [vmem:[%s8082_s4 + $0x1b8] sm:$0xff]   ;;  %v8093_v25 = vsub.s32 4, %v7326_v49 }
 0x2ff   :  { %6704 = vmatprep.subr.bf16.mxu1 %v6940_v39  ;;  %v8094_v39 = vsub.s32 6, %v7326_v49 }
 0x300   :  { %v1000_v44 = vrot.slane %v7459_v52, %v8093_v25 }
 0x301   :  { %6723 = vmatpush3.bf16.msra.mxu0 %v6943_v43  ;;  %v1008_v43 = vrot.slane %v7459_v52, %v8094_v39 }
 0x302   :  { %6705 = vmatpush3.bf16.msra.mxu1 %v6942_v4  ;;  %6724 = vmatprep.subr.bf16.mxu0 %v6945_v31  ;;  %v8095_v4 = vsub.s32 5, %v7326_v49 }
 0x303   :  { %6706 = vmatprep.subr.bf16.mxu1 %v6944_v26  ;;  %v8096_v26 = vsub.s32 7, %v7326_v49 }
 0x304   :  { %v1004_v31 = vrot.slane %v7459_v52, %v8095_v4 }
 0x305   :  { %6725 = vmatpush3.bf16.msra.mxu0 %v6947_v5  ;;  %v1012_v5 = vrot.slane %v7459_v52, %v8096_v26 }
 0x306   :  { %6707 = vmatpush3.bf16.msra.mxu1 %v6946_v50  ;;  %6726 = vmatprep.subr.bf16.mxu0 %v6949_v61 }
 0x307   :  { %6708 = vmatprep.subr.bf16.mxu1 %v6948_v19 }
 0x309   :  { %6727 = vmatpush3.bf16.msra.mxu0 %v6951_v32 }
 0x30a   :  { %6709 = vmatpush3.bf16.msra.mxu1 %v6950_v21  ;;  %6728 = vmatprep.subr.bf16.mxu0 %v6953_v40 }
 0x30b   :  { %6710 = vmatprep.subr.bf16.mxu1 %v6952_v28 }
 0x30d   :  { %6729 = vmatpush3.bf16.msra.mxu0 %v6955_v3 }
 0x30e   :  { %6711 = vmatpush3.bf16.msra.mxu1 %v6954_v2  ;;  %6730 = vmatprep.subr.bf16.mxu0 %v6957_v20 }
 0x30f   :  { %6712 = vmatprep.subr.bf16.mxu1 %v6956_v12 }
 0x311   :  { %6731 = vmatpush3.bf16.msra.mxu0 %v6959_v15 }
 0x312   :  { %6713 = vmatpush3.bf16.msra.mxu1 %v6958_v62  ;;  %6732 = vmatprep.subr.bf16.mxu0 %v6960_v29  ;;  %v7189_v29 = vmov 65535  }
 0x313   :  { %6742 = vmatprep.subr.bf16.mxu1 %v6964_v30  ;;  %v5114_v30 = vsel %vm5112_vm3, 4294967295, %v7189_v29 }
 0x315   :  { %4975 = vmatmul.mubr.bf16.vlgmr.msra.gmra.mrb[16].mxu1 %v4365_v8  ;;  %6733 = vmatpush3.bf16.msra.mxu0 %v6961_v7  ;;  %v6970_v8 = vld [vmem:[%s8082_s4 + $0x1c8] sm:$0xff]  }
 0x316   :  { %6734 = vmatprep.subr.bf16.mxu0 %v6962_v34  ;;  %6743 = vmatpush3.bf16.msra.mxu1 %v6965_v0 }
 0x317   :  { %6744 = vmatprep.subr.bf16.mxu1 %v6968_v18 }
 0x319   :  { %6735 = vmatpush3.bf16.msra.mxu0 %v6963_v35 }
 0x31a   :  { %6764 = vmatprep.subr.bf16.mxu0 %v6966_v45  ;;  %6745 = vmatpush3.bf16.msra.mxu1 %v6969_v9 }
 0x31b   :  { %6746 = vmatprep.subr.bf16.mxu1 %v6972_v42 }
 0x31c   :  { %5016 = vmatmul.mubr.bf16.vlgmr.msra.gmra.mrb[20].mxu0 %v4367_v58  ;;  %v6977_v58 = vld [vmem:[%s8082_s4 + $0x118] sm:$0xff]  }
 0x31d   :  { %6765 = vmatpush3.bf16.msra.mxu0 %v6967_v46 }
 0x31e   :  { %6766 = vmatprep.subr.bf16.mxu0 %v6970_v8  ;;  %6747 = vmatpush3.bf16.msra.mxu1 %v6973_v6 }
 0x31f   :  { %6748 = vmatprep.subr.bf16.mxu1 %v6976_v51 }
 0x321   :  { %6767 = vmatpush3.bf16.msra.mxu0 %v6971_v63 }
 0x322   :  { %6768 = vmatprep.subr.bf16.mxu0 %v6974_v1  ;;  %6749 = vmatpush3.bf16.msra.mxu1 %v6977_v58 }
 0x323   :  { %6750 = vmatprep.subr.bf16.mxu1 %v6980_v37 }
 0x325   :  { %6769 = vmatpush3.bf16.msra.mxu0 %v6975_v11 }
 0x326   :  { %6770 = vmatprep.subr.bf16.mxu0 %v6978_v48  ;;  %6751 = vmatpush3.bf16.msra.mxu1 %v6981_v41 }
 0x327   :  { %6752 = vmatprep.subr.bf16.mxu1 %v6984_v57 }
 0x329   :  { %6771 = vmatpush3.bf16.msra.mxu0 %v6979_v22 }
 0x32a   :  { %6772 = vmatprep.subr.bf16.mxu0 %v6982_v38  ;;  %6753 = vmatpush3.bf16.msra.mxu1 %v6985_v36 }
 0x32b   :  { %6754 = vmatprep.subr.bf16.mxu1 %v6988_v17 }
 0x32d   :  { %6773 = vmatpush3.bf16.msra.mxu0 %v6983_v33 }
 0x32e   :  { %6774 = vmatprep.subr.bf16.mxu0 %v6986_v60  ;;  %6755 = vmatpush3.bf16.msra.mxu1 %v6989_v13 }
 0x32f   :  { %6756 = vmatprep.subr.bf16.mxu1 %v6992_v14 }
 0x331   :  { %6775 = vmatpush3.bf16.msra.mxu0 %v6987_v24 }
 0x332   :  { %6776 = vmatprep.subr.bf16.mxu0 %v6990_v10  ;;  %6757 = vmatpush3.bf16.msra.mxu1 %v6993_v27 }
 0x333   :  { %6840 = vmatprep.subr.bf16.mxu1 %v7187_v59 }
 0x335   :  { %6777 = vmatpush3.bf16.msra.mxu0 %v6991_v16 }
 0x336   :  { %6778 = vmatprep.subr.bf16.mxu0 %v6994_v47 }
 0x339   :  { %6779 = vmatpush3.bf16.msra.mxu0 %v6995_v23 }
 0x3c7   :  { %v4088_v50 = vpop.f32.mrb[12].mxu0 }
 0x3c8   :  { %v6854_v61 = vadd.f32 %v4088_v50, %v1000_v44  ;;  %v4260_v19 = vpop.f32.mrb[12].mxu1  ;;  %v4090_v32 = vpop.f32.mrb[13].mxu0 }
 0x3c9   :  { %v6858_v21 = vadd.f32 %v4260_v19, %v1008_v43  ;;  %v6855_v40 = vadd.f32 %v4090_v32, %v1004_v31  ;;  %v4262_v28 = vpop.f32.mrb[13].mxu1  ;;  %v4092_v3 = vpop.f32.mrb[14].mxu0 }
 0x3ca   :  { %v4293_v2 = vrot.slane %v6854_v61, 4  ;;  %v6859_v20 = vadd.f32 %v4262_v28, %v1012_v5  ;;  %v6856_v12 = vadd.f32 %v4092_v3, %v1000_v44  ;;  %v4264_v15 = vpop.f32.mrb[14].mxu1  ;;  %v4094_v62 = vpop.f32.mrb[15].mxu0  ;;  %v5115_v28 = vsel %vm5113_vm4, %v5114_v30, 0  ;;  %v85_v30 = vld [vmem:[%s8079_s1] sm:$0xff] }
 0x3cb   :  { %v4305_v7 = vrot.slane %v6858_v21, 4  ;;  %v4299_v49 = vrot.slane %v6855_v40, 4  ;;  %v6860_v34 = vadd.f32 %v4264_v15, %v1008_v43  ;;  %v6857_v52 = vadd.f32 %v4094_v62, %v1004_v31  ;;  %v4266_v0 = vpop.f32.mrb[15].mxu1 }
 0x3cc   :  { %v4294_v18 = vmax.f32 %v6854_v61, %v4293_v2  ;;  %v4311_v35 = vrot.slane %v6859_v20, 4  ;;  %v4341_v45 = vrot.slane %v6856_v12, 4  ;;  %v6861_v9 = vadd.f32 %v4266_v0, %v1012_v5  ;;  %v86_v0 = vld [vmem:[%s8079_s1 + $0x8] sm:$0xff] }
 0x3cd   :  { %v4306_v42 = vmax.f32 %v6858_v21, %v4305_v7  ;;  %v4300_v46 = vmax.f32 %v6855_v40, %v4299_v49  ;;  %v4353_v8 = vrot.slane %v6860_v34, 4  ;;  %v4347_v6 = vrot.slane %v6857_v52, 4  ;;  %v5107_v40 = vld [vmem:[%s8082_s4 + $0x210] sm:$0x3] }
 0x3ce   :  { %v4295_v63 = vrot.slane %v4294_v18, 2  ;;  %v4312_v1 = vmax.f32 %v6859_v20, %v4311_v35  ;;  %v4342_v11 = vmax.f32 %v6856_v12, %v4341_v45  ;;  %v4359_v51 = vrot.slane %v6861_v9, 4 }
 0x3cf   :  { %v4307_v48 = vrot.slane %v4306_v42, 2  ;;  %v4301_v58 = vrot.slane %v4300_v46, 2  ;;  %v4354_v22 = vmax.f32 %v6860_v34, %v4353_v8  ;;  %v4348_v37 = vmax.f32 %v6857_v52, %v4347_v6  ;;  %v4551_v38 = vpop.f32.mrb[16].mxu0 }
 0x3d0   :  { %v4296_v41 = vmax.f32 %v4294_v18, %v4295_v63  ;;  %v4313_v33 = vrot.slane %v4312_v1, 2  ;;  %v4343_v57 = vrot.slane %v4342_v11, 2  ;;  %v4360_v60 = vmax.f32 %v6861_v9, %v4359_v51  ;;  %v6838_v36 = vpop.f32.mrb[17].mxu0 }
 0x3d1   :  { %v4308_v24 = vmax.f32 %v4306_v42, %v4307_v48  ;;  %v4302_v17 = vmax.f32 %v4300_v46, %v4301_v58  ;;  %v4355_v10 = vrot.slane %v4354_v22, 2  ;;  %v4349_v13 = vrot.slane %v4348_v37, 2  ;;  %v4554_v16 = vpop.f32.mrb[18].mxu0  ;;  %v6999_v36 = vld [vmem:[#allocation6 + $0x48] ss:$16 sps:$4 sm:$0xff]  }
 0x3d2   :  { %v4297_v14 = vrot.slane %v4296_v41, 1  ;;  %v4314_v27 = vmax.f32 %v4312_v1, %v4313_v33  ;;  %v4344_v47 = vmax.f32 %v4342_v11, %v4343_v57  ;;  %v4361_v23 = vrot.slane %v4360_v60, 2  ;;  %v6839_v25 = vpop.f32.mrb[19].mxu0  ;;  %v6998_v33 = vld [vmem:[#allocation6 + $0x44] ss:$16 sps:$4 sm:$0xff]  }
 0x3d3   :  { %v4309_v44 = vrot.slane %v4308_v24, 1  ;;  %v4303_v39 = vrot.slane %v4302_v17, 1  ;;  %v4356_v43 = vmax.f32 %v4354_v22, %v4355_v10  ;;  %v4350_v4 = vmax.f32 %v4348_v37, %v4349_v13  ;;  %v7001_v57 = vld [vmem:[#allocation6 + $0x4c] ss:$16 sps:$4 sm:$0xff]   ;;  %5239 = vmatprep.subr.bf16.mxu0 %v6998_v33  ;;  %v7005_v10 = vld [vmem:[#allocation6 + $0x68] ss:$16 sps:$4 sm:$0xff]  }
 0x3d4   :  { %v4315_v31 = vrot.slane %v4314_v27, 1  ;;  %v4345_v26 = vrot.slane %v4344_v47, 1  ;;  %v4362_v5 = vmax.f32 %v4360_v60, %v4361_v23  ;;  %v4298_v19 = vmax.f32 %v4296_v41, %v4297_v14  ;;  %v6996_v60 = vld [vmem:[#allocation6 + $0x40] ss:$16 sps:$4 sm:$0xff]   ;;  %v7010_v13 = vld [vmem:[#allocation6 + $0x4] ss:$16 sps:$4 sm:$0xff]  }
 0x3d5   :  { %v4357_v50 = vrot.slane %v4356_v43, 1  ;;  %v4351_v61 = vrot.slane %v4350_v4, 1  ;;  %v4310_v3 = vmax.f32 %v4308_v24, %v4309_v44  ;;  %v4304_v20 = vmax.f32 %v4302_v17, %v4303_v39  ;;  %v7004_v24 = vld [vmem:[#allocation6 + $0x64] ss:$16 sps:$4 sm:$0xff]   ;;  %v7002_v17 = vld [vmem:[#allocation6 + $0x60] ss:$16 sps:$4 sm:$0xff]  }
 0x3d6   :  { %v4346_v32 = vmax.f32 %v4344_v47, %v4345_v26  ;;  %v4363_v21 = vrot.slane %v4362_v5, 1  ;;  %v4316_v15 = vmax.f32 %v4314_v27, %v4315_v31  ;;  %v5117_v34 = vand.u32 %v5115_v28, %v5107_v40  ;;  %v7023_v33 = vld [vmem:[%s8084_s6 + $0x80] sm:$0xff]  }
 0x3d7   :  { %v4358_v2 = vmax.f32 %v4356_v43, %v4357_v50  ;;  %v4352_v12 = vmax.f32 %v4350_v4, %v4351_v61  ;;  %v8097_v18 = vmov 0   ;;  %v5106_v35 = vpack.c.bf16 %v86_v0, %v85_v30  ;;  %v7016_v0 = vld [vmem:[#allocation6 + $0x24] ss:$16 sps:$4 sm:$0xff]  }
 0x3d8   :  { %v4364_v62 = vmax.f32 %v4362_v5, %v4363_v21  ;;  %v4369_v29 = vpack.c.bf16 %v4346_v32, %v4298_v19  ;;  %v94_v32 = vld [vmem:[#allocation7 + $0x2] ss:$0 sm:$0xff] }
 0x3d9   :  { %v4370_v7 = vpack.c.bf16 %v4352_v12, %v4304_v20  ;;  %v4371_v49 = vpack.c.bf16 %v4358_v2, %v4310_v3 }
 0x3da   :  { %v4372_v52 = vpack.c.bf16 %v4364_v62, %v4316_v15 }
 0x3db   :  { %5056 = vmatprep.mubr.bf16.mxu1 %v4370_v7 }
 0x3dc   :  { %5097 = vmatprep.mubr.bf16.mxu0 %v4372_v52  ;;  %5057 = vmatmul.mubr.bf16.vlgmr.msra.gmra.mrb[20].mxu1 %v4369_v29 }
 0x3dd   :  { %5098 = vmatmul.mubr.bf16.vlgmr.msra.gmra.mrb[24].mxu0 %v4371_v49  ;;  %6841 = vmatpush3.bf16.msra.mxu1 %v5117_v34  ;;  %v7008_v49 = vld [vmem:[#allocation6] ss:$16 sps:$4 sm:$0xff]   ;;  %v7011_v34 = vld [vmem:[#allocation6 + $0x8] ss:$16 sps:$4 sm:$0xff]  }
 0x3de   :  { %6842 = vmatprep.mubr.msk.bf16.mxu1 %vm7188_vm2, %v7187_v59  ;;  %5271 = vmatprep.mubr.bf16.mxu0 %v8097_v18 }
 0x3df   :  { %5282 = vmatprep.subr.bf16.mxu1 %v7001_v57  ;;  %5240 = vmatpush1.bf16.msra.mxu0 %v6996_v60  ;;  %v7024_v57 = vld [vmem:[%s8084_s6 + $0x48] sm:$0xff]  }
 0x3e0   :  { %5241 = vmatprep.subr.bf16.mxu0 %v7004_v24  ;;  %v7025_v60 = vld [vmem:[%s8084_s6 + $0xc8] sm:$0xff]  }
 0x3e1   :  { %v7027_v24 = vld [vmem:[%s8084_s6 + $0x88] sm:$0xff]  }
 0x3e3   :  { %5242 = vmatpush1.bf16.msra.mxu0 %v7002_v17  ;;  %v7029_v17 = vld [vmem:[%s8084_s6 + $0xd0] sm:$0xff]  }
 0x3e4   :  { %6843 = vmatmul.mubr.msk.bf16.vlgmr.msra.gmra.mrb[24].mxu1 %vm5108_vm5, %v5106_v35  ;;  %5368 = vmatprep.subr.bf16.mxu0 %v7010_v13  ;;  %v7019_v35 = vld [vmem:[#allocation6 + $0x2c] ss:$16 sps:$4 sm:$0xff]   ;;  %v7031_v13 = vld [vmem:[%s8084_s6 + $0x90] sm:$0xff]  }
 0x3e5   :  { %5314 = vmatprep.mubr.bf16.mxu1 %v8097_v18  ;;  %5283 = vmatpush1.bf16.msra.mxu1 %v6999_v36  ;;  %v7026_v36 = vld [vmem:[%s8084_s6 + $0x8] sm:$0xff]  }
 0x3e8   :  { %v6714_v45 = vpop.f32.mrb[16].mxu1 }
 0x3e9   :  { %v6715_v9 = vpop.f32.mrb[17].mxu1 }
 0x3ea   :  { %v6716_v42 = vadd.f32 %v6715_v9, %v6714_v45  ;;  %v6717_v46 = vpop.f32.mrb[18].mxu1 }
 0x3eb   :  { %v6718_v8 = vpop.f32.mrb[19].mxu1 }
 0x3ec   :  { %v4977_v6 = vadd.f32 %v6716_v42, %v4551_v38  ;;  %v6719_v63 = vadd.f32 %v6718_v8, %v6717_v46  ;;  %v7007_v38 = vld [vmem:[#allocation6 + $0x6c] ss:$16 sps:$4 sm:$0xff]   ;;  %v7014_v8 = vld [vmem:[#allocation6 + $0x20] ss:$16 sps:$4 sm:$0xff]  }
 0x3ed   :  { %5284 = vmatprep.subr.bf16.mxu1 %v7007_v38  ;;  %v7028_v38 = vld [vmem:[%s8084_s6 + $0x50] sm:$0xff]  }
 0x3ee   :  { %v4980_v1 = vadd.f32 %v6719_v63, %v4554_v16  ;;  %5285 = vmatpush1.bf16.msra.mxu1 %v7005_v10  ;;  %v7013_v16 = vld [vmem:[#allocation6 + $0xc] ss:$16 sps:$4 sm:$0xff]   ;;  %v7030_v10 = vld [vmem:[%s8084_s6 + $0x10] sm:$0xff]  }
 0x3ef   :  { %v6736_v11 = vpop.f32.mrb[20].mxu0  ;;  %5411 = vmatprep.subr.bf16.mxu1 %v7013_v16  ;;  %v7032_v16 = vld [vmem:[%s8084_s6 + $0x58] sm:$0xff]  }
 0x3f0   :  { %v6737_v51 = vpop.f32.mrb[21].mxu0 }
 0x3f1   :  { %v6738_v48 = vadd.f32 %v6737_v51, %v6736_v11  ;;  %v6739_v58 = vpop.f32.mrb[22].mxu0 }
 0x3f2   :  { %v6740_v59 = vpop.f32.mrb[23].mxu0 }
 0x3f3   :  { %v5018_v22 = vadd.f32 %v6738_v48, %v4977_v6  ;;  %v6741_v37 = vadd.f32 %v6740_v59, %v6739_v58  ;;  %v7017_v6 = vld [vmem:[#allocation6 + $0x28] ss:$16 sps:$4 sm:$0xff]  }
 0x3f5   :  { %v5021_v41 = vadd.f32 %v6741_v37, %v4980_v1  ;;  %v7020_v37 = vld [vmem:[%s8084_s6 + $0x40] sm:$0xff]  }
 0x4af   :  { %v6758_v14 = vpop.f32.mrb[20].mxu1 }
 0x4b0   :  { %v6780_v27 = vpop.f32.mrb[24].mxu0  ;;  %v6759_v47 = vpop.f32.mrb[21].mxu1 }
 0x4b1   :  { %v6760_v23 = vadd.f32 %v6759_v47, %v6758_v14  ;;  %v6781_v25 = vpop.f32.mrb[25].mxu0  ;;  %v6761_v44 = vpop.f32.mrb[22].mxu1  ;;  %v7033_v14 = vld [vmem:[%s8084_s6 + $0xd8] sm:$0xff]  }
 0x4b2   :  { %v6782_v39 = vadd.f32 %v6781_v25, %v6780_v27  ;;  %v6783_v43 = vpop.f32.mrb[26].mxu0  ;;  %v6762_v4 = vpop.f32.mrb[23].mxu1  ;;  %v7034_v27 = vld [vmem:[%s8084_s6 + $0x18] sm:$0xff]   ;;  %v7037_v25 = vld [vmem:[%s8084_s6 + $0xe0] sm:$0xff]  }
 0x4b3   :  { %v5059_v31 = vadd.f32 %v6760_v23, %v5018_v22  ;;  %v6763_v26 = vadd.f32 %v6762_v4, %v6761_v44  ;;  %v6784_v5 = vpop.f32.mrb[27].mxu0  ;;  %v7035_v47 = vld [vmem:[%s8084_s6 + $0x98] sm:$0xff]   ;;  %v7036_v23 = vld [vmem:[%s8084_s6 + $0x60] sm:$0xff]   ;;  %v7041_v4 = vld [vmem:[%s8084_s6 + $0xe8] sm:$0xff]  }
 0x4b4   :  { %v6785_v50 = vadd.f32 %v6784_v5, %v6783_v43  ;;  %v7038_v44 = vld [vmem:[%s8084_s6 + $0x20] sm:$0xff]   ;;  %v7040_v43 = vld [vmem:[%s8084_s6 + $0x68] sm:$0xff]   ;;  %v7044_v5 = vld [vmem:[%s8084_s6 + $0x70] sm:$0xff]  }
 0x4b5   :  { %v5062_v61 = vadd.f32 %v6763_v26, %v5021_v41  ;;  %v5100_v19 = vadd.f32 %v6782_v39, %v5059_v31  ;;  %v7022_v41 = vld [vmem:[%s8084_s6] sm:$0xff]   ;;  %v7042_v31 = vld [vmem:[%s8084_s6 + $0x28] sm:$0xff]  }
 0x4b6   :  { %v7039_v39 = vld [vmem:[%s8084_s6 + $0xa0] sm:$0xff]   ;;  %v7043_v26 = vld [vmem:[%s8084_s6 + $0xa8] sm:$0xff]  }
 0x4b7   :  { %v5153_v21 = vpop.f32.mrb[24].mxu1  ;;  %v5103_v40 = vadd.f32 %v6785_v50, %v5062_v61  ;;  %v7045_v50 = vld [vmem:[%s8084_s6 + $0xf0] sm:$0xff]  }
 0x4b8   :  { %v5160_v28 = vadd.f32 %v5153_v21, %v5100_v19  ;;  %v6844_v3 = vpop.f32.mrb[25].mxu1  ;;  %v7046_v61 = vld [vmem:[%s8084_s6 + $0x30] sm:$0xff]   ;;  %v7049_v21 = vld [vmem:[%s8084_s6 + $0xf8] sm:$0xff]  }
 0x4b9   :  { %v5156_v2 = vpop.f32.mrb[26].mxu1  ;;  %v7047_v19 = vld [vmem:[%s8084_s6 + $0xb0] sm:$0xff]  }
 0x4ba   :  { %v5162_v20 = vadd.f32 %v5160_v28, %v94_v32  ;;  %v5161_v12 = vadd.f32 %v5156_v2, %v5103_v40  ;;  %v6845_v15 = vpop.f32.mrb[27].mxu1  ;;  %v7050_v40 = vld [vmem:[%s8084_s6 + $0x38] sm:$0xff]  }
 0x4bb   :  { %v7051_v28 = vld [vmem:[%s8084_s6 + $0xb8] sm:$0xff]  }
 0x4bc   :  { %v5164_v62 = vsel %vm236_vm0, %v5162_v20, -inf  ;;  %v5163_v29 = vadd.f32 %v5161_v12, %v94_v32  ;;  %v7048_v32 = vld [vmem:[%s8084_s6 + $0x78] sm:$0xff]  }
 0x4bd   :  { %v5165_v7 = vrot.slane %v5164_v62, 4  ;;  %v96_v3 = vld [vmem:[#allocation7 + $0x3] ss:$8 sm:$0xf] }
 0x4be   :  { %v5171_v52 = vsel %vm236_vm0, %v5163_v29, -inf  ;;  %v5187_v30 = vpack.c.bf16 %v5163_v29, %v5162_v20  ;;  %v5458_v2 = vrot.slane %v96_v3, %v7331_v53  ;;  %v5466_v20 = vrot.slane %v96_v3, %v7337_v55 }
 0x4bf   :  { %v5166_v45 = vmax.f32 %v5164_v62, %v5165_v7  ;;  %v5172_v9 = vrot.slane %v5171_v52, 4  ;;  %v5462_v12 = vrot.slane %v96_v3, %v7334_v54  ;;  %v5470_v15 = vrot.slane %v96_v3, %v7340_v56 }
 0x4c0   :  { %6651 = vmatmul.mubr.msk.bf16.vlgmr.msra.gmra.mrb[28].mxu0 %vm236_vm0, %v5187_v30  ;;  %6652 = vmatmul.mubr.msk.bf16.vlgmr.msra.gmra.mrb[28].mxu1 %vm236_vm0, %v5187_v30 }
 0x4c1   :  { %v5167_v42 = vrot.slane %v5166_v45, 2  ;;  %v5173_v46 = vmax.f32 %v5171_v52, %v5172_v9  ;;  %5369 = vmatpush1.bf16.msra.mxu0 %v7008_v49  ;;  %5412 = vmatpush1.bf16.msra.mxu1 %v7011_v34 }
 0x4c2   :  { %5370 = vmatprep.subr.bf16.mxu0 %v7016_v0  ;;  %5413 = vmatprep.subr.bf16.mxu1 %v7019_v35 }
 0x4c3   :  { %v5168_v63 = vmax.f32 %v5166_v45, %v5167_v42  ;;  %v5174_v1 = vrot.slane %v5173_v46, 2  ;;  %5400 = vmatprep.mubr.bf16.mxu0 %v8097_v18  ;;  %5443 = vmatprep.mubr.bf16.mxu1 %v8097_v18  ;;  %v7021_v18 = vld [vmem:[%s8084_s6 + $0xc0] sm:$0xff]  }
 0x4c5   :  { %v5169_v11 = vrot.slane %v5168_v63, 1  ;;  %v5175_v51 = vmax.f32 %v5173_v46, %v5174_v1  ;;  %5371 = vmatpush1.bf16.msra.mxu0 %v7014_v8  ;;  %5414 = vmatpush1.bf16.msra.mxu1 %v7017_v6 }
 0x4c6   :  { %6788 = vmatprep.subr.bf16.mxu0 %v7020_v37  ;;  %6810 = vmatprep.subr.bf16.mxu1 %v7021_v18 }
 0x4c7   :  { %v5176_v48 = vrot.slane %v5175_v51, 1  ;;  %v5170_v58 = vmax.f32 %v5168_v63, %v5169_v11 }
 0x4c9   :  { %v5177_v59 = vmax.f32 %v5175_v51, %v5176_v48 }
 0x4cb   :  { %v5178_v22 = vpack.c.bf16 %v5177_v59, %v5170_v58 }
 0x4cd   :  { %6661 = vmatmul.mubr.msk.bf16.vlgmr.msra.gmra.mrb[28].mxu0 %vm236_vm0, %v5178_v22  ;;  %6662 = vmatmul.mubr.msk.bf16.vlgmr.msra.gmra.mrb[28].mxu1 %vm236_vm0, %v5178_v22 }
 0x4ce   :  { %6789 = vmatpush3.bf16.msra.mxu0 %v7022_v41  ;;  %6811 = vmatpush3.bf16.msra.mxu1 %v7023_v33 }
 0x4cf   :  { %6790 = vmatprep.subr.bf16.mxu0 %v7024_v57  ;;  %6812 = vmatprep.subr.bf16.mxu1 %v7025_v60 }
 0x4d2   :  { %6791 = vmatpush3.bf16.msra.mxu0 %v7026_v36  ;;  %6813 = vmatpush3.bf16.msra.mxu1 %v7027_v24 }
 0x4d3   :  { %6792 = vmatprep.subr.bf16.mxu0 %v7028_v38  ;;  %6814 = vmatprep.subr.bf16.mxu1 %v7029_v17 }
 0x4d6   :  { %6793 = vmatpush3.bf16.msra.mxu0 %v7030_v10  ;;  %6815 = vmatpush3.bf16.msra.mxu1 %v7031_v13 }
 0x4d7   :  { %6794 = vmatprep.subr.bf16.mxu0 %v7032_v16  ;;  %6816 = vmatprep.subr.bf16.mxu1 %v7033_v14 }
 0x4da   :  { %6795 = vmatpush3.bf16.msra.mxu0 %v7034_v27  ;;  %6817 = vmatpush3.bf16.msra.mxu1 %v7035_v47 }
 0x4db   :  { %6796 = vmatprep.subr.bf16.mxu0 %v7036_v23  ;;  %6818 = vmatprep.subr.bf16.mxu1 %v7037_v25 }
 0x4de   :  { %6797 = vmatpush3.bf16.msra.mxu0 %v7038_v44  ;;  %6819 = vmatpush3.bf16.msra.mxu1 %v7039_v39 }
 0x4df   :  { %6798 = vmatprep.subr.bf16.mxu0 %v7040_v43  ;;  %6820 = vmatprep.subr.bf16.mxu1 %v7041_v4 }
 0x4e2   :  { %6799 = vmatpush3.bf16.msra.mxu0 %v7042_v31  ;;  %6821 = vmatpush3.bf16.msra.mxu1 %v7043_v26 }
 0x4e3   :  { %6800 = vmatprep.subr.bf16.mxu0 %v7044_v5  ;;  %6822 = vmatprep.subr.bf16.mxu1 %v7045_v50 }
 0x4e6   :  { %6801 = vmatpush3.bf16.msra.mxu0 %v7046_v61  ;;  %6823 = vmatpush3.bf16.msra.mxu1 %v7047_v19 }
 0x4e7   :  { %6802 = vmatprep.subr.bf16.mxu0 %v7048_v32  ;;  %6824 = vmatprep.subr.bf16.mxu1 %v7049_v21 }
 0x4ea   :  { %6803 = vmatpush3.bf16.msra.mxu0 %v7050_v40  ;;  %6825 = vmatpush3.bf16.msra.mxu1 %v7051_v28 }
 0x5a0   :  { %v5402_v62 = vpop.f32.mrb[28].mxu0  ;;  %v5445_v29 = vpop.f32.mrb[28].mxu1 }
 0x5a1   :  { %v7945_v7 = vadd.f32 %v5458_v2, %v5402_v62  ;;  %v7947_v49 = vadd.f32 %v5466_v20, %v5445_v29  ;;  %v5404_v34 = vpop.f32.mrb[29].mxu0  ;;  %v5447_v52 = vpop.f32.mrb[29].mxu1 }
 0x5a2   :  { %v7949_v30 = vadd.f32 %v5462_v12, %v5404_v34  ;;  %v7951_v0 = vadd.f32 %v5470_v15, %v5447_v52  ;;  %v5406_v35 = vpop.f32.mrb[30].mxu0  ;;  %v5449_v53 = vpop.f32.mrb[30].mxu1 }
 0x5a3   :  { %v7954_v55 = vmul.f32 0.70710677, %v7945_v7  ;;  %v7957_v54 = vmul.f32 0.70710677, %v7947_v49  ;;  %v5408_v58 = vpop.f32.mrb[31].mxu0  ;;  %v5451_v59 = vpop.f32.mrb[31].mxu1  ;;  %v7969_v37 = vadd.f32 %v5458_v2, %v5406_v35  ;;  %v7971_v18 = vadd.f32 %v5466_v20, %v5449_v53 }
 0x5a4   :  { %v7960_v56 = vmul.f32 0.70710677, %v7949_v30  ;;  %v7963_v45 = vmul.f32 0.70710677, %v7951_v0  ;;  %v7976_v57 = vadd.f32 %v5462_v12, %v5408_v58  ;;  %v7982_v38 = vadd.f32 %v5470_v15, %v5451_v59 }
 0x5a5   :  { %v5499_v9 = vand.u32 2147483647, %v7954_v55  ;;  %v5501_v42 = vand.u32 2147483647, %v7957_v54  ;;  %v7974_v33 = vmul.f32 0.70710677, %v7969_v37 }
 0x5a6   :  { %v5500_v46 = vand.u32 2147483647, %v7960_v56  ;;  %v5502_v8 = vand.u32 2147483647, %v7963_v45  ;;  %v7979_v36 = vmul.f32 0.70710677, %v7971_v18 }
 0x5a7   :  { %v5507_v6 = vmul.f32 0.3275911, %v5499_v9  ;;  %v5509_v63 = vmul.f32 0.3275911, %v5501_v42  ;;  %v5603_v60 = vsub.f32 0.0, %v5499_v9  ;;  %v5605_v17 = vsub.f32 0.0, %v5501_v42 }
 0x5a8   :  { %v5508_v1 = vmul.f32 0.3275911, %v5500_v46  ;;  %v5510_v48 = vmul.f32 0.3275911, %v5502_v8  ;;  %v5503_v24 = vand.u32 2147483647, %v7974_v33 }
 0x5a9   :  { %v5515_v11 = vadd.f32 1.0, %v5507_v6  ;;  %v5517_v51 = vadd.f32 1.0, %v5509_v63  ;;  %v5604_v10 = vsub.f32 0.0, %v5500_v46  ;;  %v5505_v13 = vand.u32 2147483647, %v7979_v36 }
 0x5aa   :  { %v5516_v22 = vadd.f32 1.0, %v5508_v1  ;;  %v5518_v41 = vadd.f32 1.0, %v5510_v48  ;;  %v7986_v16 = vmul.f32 0.70710677, %v7976_v57  ;;  %v5606_v14 = vsub.f32 0.0, %v5502_v8 }
 0x5ab   :  { %7052 = vrcp.f32 %v5515_v11  ;;  %v5511_v27 = vmul.f32 0.3275911, %v5503_v24  ;;  %v5611_v47 = vmul.f32 %v5603_v60, %v5499_v9  ;;  %v5513_v23 = vmul.f32 0.3275911, %v5505_v13 }
 0x5ac   :  { %7054 = vrcp.f32 %v5517_v51  ;;  %v5504_v25 = vand.u32 2147483647, %v7986_v16  ;;  %v7990_v39 = vmul.f32 0.70710677, %v7982_v38  ;;  %v5613_v43 = vmul.f32 %v5605_v17, %v5501_v42 }
 0x5ad   :  { %7056 = vrcp.f32 %v5516_v22  ;;  %v5519_v44 = vadd.f32 1.0, %v5511_v27  ;;  %v5612_v4 = vmul.f32 %v5604_v10, %v5500_v46  ;;  %v5521_v31 = vadd.f32 1.0, %v5513_v23 }
 0x5ae   :  { %7058 = vrcp.f32 %v5518_v41  ;;  %v5512_v26 = vmul.f32 0.3275911, %v5504_v25  ;;  %v5614_v50 = vmul.f32 %v5606_v14, %v5502_v8  ;;  %v5607_v61 = vsub.f32 0.0, %v5503_v24 }
 0x5af   :  { %7060 = vrcp.f32 %v5519_v44  ;;  %v7995_v19 = vand.u32 2147483647, %v7990_v39  ;;  %v5619_v40 = vmul.f32 1.442695, %v5611_v47  ;;  %v5609_v2 = vsub.f32 0.0, %v5505_v13 }
 0x5b0   :  { %7062 = vrcp.f32 %v5521_v31  ;;  %v5520_v28 = vadd.f32 1.0, %v5512_v26  ;;  %v5623_v15 = vmul.f32 1.442695, %v5613_v43  ;;  %v5615_v34 = vmul.f32 %v5607_v61, %v5503_v24 }
 0x5b1   :  { %v5514_v20 = vmul.f32 0.3275911, %v7995_v19  ;;  %v5621_v9 = vmul.f32 1.442695, %v5612_v4  ;;  %v5625_v42 = vmul.f32 1.442695, %v5614_v50  ;;  %v5617_v6 = vmul.f32 %v5609_v2, %v5505_v13 }
 0x5b2   :  { %7064 = vrcp.f32 %v5520_v28  ;;  %v5608_v63 = vsub.f32 0.0, %v5504_v25  ;;  %v5627_v58 = vmul.f32 1.442695, %v5615_v34  ;;  %v5610_v4 = vsub.f32 0.0, %v7995_v19 }
 0x5b3   :  { %v5522_v52 = vadd.f32 1.0, %v5514_v20  ;;  %7066 = vpow2.f32 %v5619_v40  ;;  %v5631_v17 = vmul.f32 1.442695, %v5617_v6  ;;  %vm5651_vm0 = vcmp.ge.f32.partialorder %v7954_v55, 0.0 }
 0x5b4   :  { %v5616_v10 = vmul.f32 %v5608_v63, %v5504_v25  ;;  %vm5653_vm6 = vcmp.ge.f32.partialorder %v7957_v54, 0.0  ;;  %vm5652_vm7 = vcmp.ge.f32.partialorder %v7960_v56, 0.0  ;;  %vm5655_vm8 = vcmp.ge.f32.partialorder %v7974_v33, 0.0 }
 0x5b5   :  { %v7992_v5 = vpop.eup %7052  ;;  %7068 = vrcp.f32 %v5522_v52  ;;  %vm5657_vm9 = vcmp.ge.f32.partialorder %v7979_v36, 0.0  ;;  %vm5656_vm10 = vcmp.ge.f32.partialorder %v7986_v16, 0.0  ;;  %vm5654_vm11 = vcmp.ge.f32.partialorder %v7963_v45, 0.0 }
 0x5b6   :  { %v7997_v32 = vpop.eup %7054  ;;  %v5531_v21 = vmul.f32 1.0614054, %v7992_v5  ;;  %7070 = vpow2.f32 %v5623_v15  ;;  %v5629_v28 = vmul.f32 1.442695, %v5616_v10  ;;  %vm5658_vm12 = vcmp.ge.f32.partialorder %v7990_v39, 0.0 }
 0x5b7   :  { %v5533_v3 = vmul.f32 1.0614054, %v7997_v32  ;;  %v8002_v62 = vpop.eup %7056  ;;  %7072 = vpow2.f32 %v5621_v9  ;;  %v5490_v45 = vmul.f32 0.5, %v7982_v38 }
 0x5b8   :  { %v5539_v12 = vadd.f32 -1.4531521, %v5531_v21  ;;  %v5532_v53 = vmul.f32 1.0614054, %v8002_v62  ;;  %v8006_v46 = vpop.eup %7058  ;;  %7074 = vpow2.f32 %v5625_v42 }
 0x5b9   :  { %v5541_v29 = vadd.f32 -1.4531521, %v5533_v3  ;;  %v5534_v51 = vmul.f32 1.0614054, %v8006_v46  ;;  %v8012_v60 = vpop.eup %7060  ;;  %7076 = vpow2.f32 %v5627_v58 }
 0x5ba   :  { %v5547_v35 = vmul.f32 %v7992_v5, %v5539_v12  ;;  %v5540_v11 = vadd.f32 -1.4531521, %v5532_v53  ;;  %v8015_v13 = vpop.eup %7062  ;;  %v5535_v23 = vmul.f32 1.0614054, %v8012_v60  ;;  %7078 = vpow2.f32 %v5631_v17 }
 0x5bb   :  { %v5549_v8 = vmul.f32 %v7997_v32, %v5541_v29  ;;  %v5542_v41 = vadd.f32 -1.4531521, %v5534_v51  ;;  %v5537_v43 = vmul.f32 1.0614054, %v8015_v13  ;;  %7080 = vpow2.f32 %v5629_v28 }
 0x5bc   :  { %v5555_v1 = vadd.f32 1.4214138, %v5547_v35  ;;  %v5548_v22 = vmul.f32 %v8002_v62, %v5540_v11  ;;  %v5543_v25 = vadd.f32 -1.4531521, %v5535_v23  ;;  %v8023_v61 = vpop.eup %7064  ;;  %v5618_v35 = vmul.f32 %v5610_v4, %v7995_v19 }
 0x5bd   :  { %v5557_v48 = vadd.f32 1.4214138, %v5549_v8  ;;  %v5550_v47 = vmul.f32 %v8006_v46, %v5542_v41  ;;  %v5545_v40 = vadd.f32 -1.4531521, %v5537_v43  ;;  %v7067_v15 = vpop.eup %7066  ;;  %v5536_v52 = vmul.f32 1.0614054, %v8023_v61 }
 0x5be   :  { %v5563_v59 = vmul.f32 %v7992_v5, %v5555_v1  ;;  %v5556_v27 = vadd.f32 1.4214138, %v5548_v22  ;;  %v5551_v12 = vmul.f32 %v8012_v60, %v5543_v25  ;;  %v5633_v25 = vmul.f32 1.442695, %v5618_v35 }
 0x5bf   :  { %v5565_v24 = vmul.f32 %v7997_v32, %v5557_v48  ;;  %v5558_v50 = vadd.f32 1.4214138, %v5550_v47  ;;  %v5553_v34 = vmul.f32 %v8015_v13, %v5545_v40  ;;  %v8031_v53 = vpop.eup %7068  ;;  %v5544_v51 = vadd.f32 -1.4531521, %v5536_v52 }
 0x5c0   :  { %v5571_v14 = vadd.f32 -0.28449672, %v5563_v59  ;;  %v5564_v26 = vmul.f32 %v8002_v62, %v5556_v27  ;;  %v5559_v6 = vadd.f32 1.4214138, %v5551_v12  ;;  %v7071_v63 = vpop.eup %7070  ;;  %v5538_v48 = vmul.f32 1.0614054, %v8031_v53 }
 0x5c1   :  { %v5573_v44 = vadd.f32 -0.28449672, %v5565_v24  ;;  %v5566_v20 = vmul.f32 %v8006_v46, %v5558_v50  ;;  %v5561_v11 = vadd.f32 1.4214138, %v5553_v34  ;;  %v7073_v58 = vpop.eup %7072  ;;  %v5552_v10 = vmul.f32 %v8023_v61, %v5544_v51 }
 0x5c2   :  { %v5579_v31 = vmul.f32 %v7992_v5, %v5571_v14  ;;  %v5572_v2 = vadd.f32 -0.28449672, %v5564_v26  ;;  %v5567_v41 = vmul.f32 %v8012_v60, %v5559_v6  ;;  %v7075_v24 = vpop.eup %7074  ;;  %v5546_v14 = vadd.f32 -1.4531521, %v5538_v48 }
 0x5c3   :  { %v5581_v21 = vmul.f32 %v7997_v32, %v5573_v44  ;;  %v5574_v8 = vadd.f32 -0.28449672, %v5566_v20  ;;  %v5569_v17 = vmul.f32 %v8015_v13, %v5561_v11  ;;  %v7077_v23 = vpop.eup %7076  ;;  %v5560_v43 = vadd.f32 1.4214138, %v5552_v10 }
 0x5c4   :  { %v5587_v3 = vadd.f32 0.2548296, %v5579_v31  ;;  %v5580_v42 = vmul.f32 %v8002_v62, %v5572_v2  ;;  %v5575_v47 = vadd.f32 -0.28449672, %v5567_v41  ;;  %v5554_v4 = vmul.f32 %v8031_v53, %v5546_v14 }
 0x5c5   :  { %v5589_v29 = vadd.f32 0.2548296, %v5581_v21  ;;  %v5582_v19 = vmul.f32 %v8006_v46, %v5574_v8  ;;  %v5577_v44 = vadd.f32 -0.28449672, %v5569_v17  ;;  %v7079_v21 = vpop.eup %7078  ;;  %v5568_v2 = vmul.f32 %v8023_v61, %v5560_v43 }
 0x5c6   :  { %v5595_v9 = vmul.f32 %v7992_v5, %v5587_v3  ;;  %v5588_v22 = vadd.f32 0.2548296, %v5580_v42  ;;  %v5583_v50 = vmul.f32 %v8012_v60, %v5575_v47  ;;  %7082 = vpow2.f32 %v5633_v25 }
 0x5c7   :  { %v5597_v1 = vmul.f32 %v7997_v32, %v5589_v29  ;;  %v5590_v27 = vadd.f32 0.2548296, %v5582_v19  ;;  %v5585_v3 = vmul.f32 %v8015_v13, %v5577_v44  ;;  %v5576_v29 = vadd.f32 -0.28449672, %v5568_v2 }
 0x5c8   :  { %v5635_v59 = vmul.f32 %v7067_v15, %v5595_v9  ;;  %v5596_v32 = vmul.f32 %v8002_v62, %v5588_v22  ;;  %v5562_v62 = vadd.f32 1.4214138, %v5554_v4  ;;  %v5591_v12 = vadd.f32 0.2548296, %v5583_v50 }
 0x5c9   :  { %v5637_v5 = vmul.f32 %v7071_v63, %v5597_v1  ;;  %v5598_v20 = vmul.f32 %v8006_v46, %v5590_v27  ;;  %v5483_v15 = vmul.f32 0.5, %v7945_v7  ;;  %v5593_v28 = vadd.f32 0.2548296, %v5585_v3 }
 0x5ca   :  { %v5643_v31 = vsub.f32 1.0, %v5635_v59  ;;  %v5636_v40 = vmul.f32 %v7073_v58, %v5596_v32  ;;  %v5599_v9 = vmul.f32 %v8012_v60, %v5591_v12  ;;  %v5584_v8 = vmul.f32 %v8023_v61, %v5576_v29  ;;  %v7081_v58 = vpop.eup %7080 }
 0x5cb   :  { %v5645_v26 = vsub.f32 1.0, %v5637_v5  ;;  %v5601_v42 = vmul.f32 %v8015_v13, %v5593_v28  ;;  %v5570_v6 = vmul.f32 %v8031_v53, %v5562_v62  ;;  %v5485_v63 = vmul.f32 0.5, %v7947_v49 }
 0x5cc   :  { %v5659_v34 = vsub.f32 0.0, %v5643_v31  ;;  %v5644_v35 = vsub.f32 1.0, %v5636_v40  ;;  %v5484_v46 = vmul.f32 0.5, %v7949_v30  ;;  %v5638_v1 = vmul.f32 %v7075_v24, %v5598_v20 }
 0x5cd   :  { %v5661_v52 = vsub.f32 0.0, %v5645_v26  ;;  %v5639_v7 = vmul.f32 %v7077_v23, %v5599_v9  ;;  %v5641_v11 = vmul.f32 %v7079_v21, %v5601_v42  ;;  %v5592_v51 = vadd.f32 0.2548296, %v5584_v8 }
 0x5ce   :  { %v5578_v48 = vadd.f32 -0.28449672, %v5570_v6  ;;  %v5667_v60 = vsel %vm5651_vm0, %v5643_v31, %v5659_v34  ;;  %v5660_v22 = vsub.f32 0.0, %v5644_v35  ;;  %v5646_v30 = vsub.f32 1.0, %v5638_v1 }
 0x5cf   :  { %v5647_v13 = vsub.f32 1.0, %v5639_v7  ;;  %v5669_v59 = vsel %vm5653_vm6, %v5645_v26, %v5661_v52  ;;  %v5649_v19 = vsub.f32 1.0, %v5641_v11  ;;  %v5600_v49 = vmul.f32 %v8023_v61, %v5592_v51 }
 0x5d0   :  { %v5487_v41 = vmul.f32 0.5, %v7969_v37  ;;  %v5586_v55 = vmul.f32 %v8031_v53, %v5578_v48  ;;  %v5675_v5 = vadd.f32 1.0, %v5667_v60  ;;  %v5677_v10 = vadd.f32 1.0, %v5669_v59  ;;  %v7083_v37 = vpop.eup %7082 }
 0x5d1   :  { %v5663_v24 = vsub.f32 0.0, %v5647_v13  ;;  %v5665_v17 = vsub.f32 0.0, %v5649_v19  ;;  %v5640_v54 = vmul.f32 %v7081_v58, %v5600_v49  ;;  %v5668_v27 = vsel %vm5652_vm7, %v5644_v35, %v5660_v22 }
 0x5d2   :  { %v5594_v32 = vadd.f32 0.2548296, %v5586_v55  ;;  %v5662_v44 = vsub.f32 0.0, %v5646_v30  ;;  %v5489_v43 = vmul.f32 0.5, %v7971_v18  ;;  %v5683_v31 = vmul.f32 %v5675_v5, %v5483_v15 }
 0x5d3   :  { %v5671_v14 = vsel %vm5655_vm8, %v5647_v13, %v5663_v24  ;;  %v5673_v47 = vsel %vm5657_vm9, %v5649_v19, %v5665_v17  ;;  %v5648_v23 = vsub.f32 1.0, %v5640_v54  ;;  %v5685_v36 = vmul.f32 %v5677_v10, %v5485_v63  ;;  %v97_v63 = vld [vmem:[#allocation7 + $0x4] ss:$0 sm:$0xff] }
 0x5d4   :  { %v5679_v61 = vadd.f32 1.0, %v5671_v14  ;;  %v5681_v4 = vadd.f32 1.0, %v5673_v47  ;;  %v5602_v33 = vmul.f32 %v8031_v53, %v5594_v32  ;;  %v5676_v25 = vadd.f32 1.0, %v5668_v27 }
 0x5d5   :  { %v5664_v50 = vsub.f32 0.0, %v5648_v23  ;;  %v5488_v3 = vmul.f32 0.5, %v7976_v57  ;;  %v5670_v62 = vsel %vm5654_vm11, %v5646_v30, %v5662_v44  ;;  %v5486_v52 = vmul.f32 0.5, %v7951_v0 }
 0x5d6   :  { %v5687_v26 = vmul.f32 %v5679_v61, %v5487_v41  ;;  %v5689_v21 = vmul.f32 %v5681_v4, %v5489_v43  ;;  %v5642_v56 = vmul.f32 %v7083_v37, %v5602_v33  ;;  %v5684_v53 = vmul.f32 %v5676_v25, %v5484_v46 }
 0x5d7   :  { %v5672_v2 = vsel %vm5656_vm10, %v5648_v23, %v5664_v50  ;;  %v5678_v29 = vadd.f32 1.0, %v5670_v62 }
 0x5d8   :  { %v5691_v40 = vpack.c.bf16 %v5687_v26, %v5683_v31  ;;  %v5693_v18 = vpack.c.bf16 %v5689_v21, %v5685_v36  ;;  %v5680_v20 = vadd.f32 1.0, %v5672_v2  ;;  %v5650_v12 = vsub.f32 1.0, %v5642_v56 }
 0x5d9   :  { %v5686_v57 = vmul.f32 %v5678_v29, %v5486_v52 }
 0x5da   :  { %v5688_v15 = vmul.f32 %v5680_v20, %v5488_v3  ;;  %v5666_v28 = vsub.f32 0.0, %v5650_v12 }
 0x5dc   :  { %v5674_v16 = vsel %vm5658_vm12, %v5650_v12, %v5666_v28  ;;  %v5692_v34 = vpack.c.bf16 %v5688_v15, %v5684_v53 }
 0x5dd   :  { %v5682_v9 = vadd.f32 1.0, %v5674_v16 }
 0x5de   :  { %5983 = vmatprep.mubr.bf16.mxu0 %v5692_v34 }
 0x5df   :  { %v5690_v35 = vmul.f32 %v5682_v9, %v5490_v45  ;;  %5984 = vmatmul.mubr.bf16.vlgmr.msra.gmra.mrb[32].mxu0 %v5691_v40 }
 0x5e1   :  { %v5694_v42 = vpack.c.bf16 %v5690_v35, %v5686_v57 }
 0x5e3   :  { %6024 = vmatprep.mubr.bf16.mxu1 %v5694_v42 }
 0x5e4   :  { %6025 = vmatmul.mubr.bf16.vlgmr.msra.gmra.mrb[32].mxu1 %v5693_v18 }
 0x6b2   :  { %v6804_v8 = vpop.f32.mrb[32].mxu0 }
 0x6b3   :  { %v6805_v6 = vpop.f32.mrb[33].mxu0 }
 0x6b4   :  { %v6806_v46 = vadd.f32 %v6805_v6, %v6804_v8  ;;  %v6807_v1 = vpop.f32.mrb[34].mxu0 }
 0x6b5   :  { %v6808_v39 = vpop.f32.mrb[35].mxu0 }
 0x6b6   :  { %v6809_v7 = vadd.f32 %v6808_v39, %v6807_v1  ;;  %v5986_v51 = vadd.f32 %v6806_v46, %v97_v63 }
 0x6b7   :  { %v6826_v11 = vpop.f32.mrb[32].mxu1 }
 0x6b8   :  { %v6827_v0 = vpop.f32.mrb[33].mxu1  ;;  %v5989_v60 = vadd.f32 %v6809_v7, %v97_v63 }
 0x6b9   :  { %v6828_v48 = vadd.f32 %v6827_v0, %v6826_v11  ;;  %v6829_v38 = vpop.f32.mrb[34].mxu1 }
 0x6ba   :  { %v6830_v13 = vpop.f32.mrb[35].mxu1 }
 0x6bb   :  { %v6027_v58 = vadd.f32 %v6828_v48, %v5986_v51  ;;  %v6831_v59 = vadd.f32 %v6830_v13, %v6829_v38 }
 0x6bd   :  { %6034 = vst.msk [vmem:[%s8086_s8] sm:$0xff] %vm6033_vm13, %v6027_v58  ;;  %v6030_v22 = vadd.f32 %v6831_v59, %v5989_v60 }
 0x6bf   :  { %6035 = vst.msk [vmem:[%s8086_s8 + $0x8] sm:$0xff] %vm6033_vm13, %v6030_v22 }
 0x6c0   :  { %6040 = vsyncpa [#allocation3], 1 }
 0x6c1   :  { %6041 = vsyncpa [#allocation5], 1 }
 0x6c2   :  { %6042 = vsyncpa [#allocation8], 1 }

</bundles_post_ra>
